<compile_context>
chip_gen: v7x
topology: tpu7x:2x2x1
jax: 0.10.0
libtpu: 0.0.40
codegen_flags: <defaults>
</compile_context>

<pallas_src>
import functools
import numpy as np
import jax
import jax.numpy as jnp
from jax.experimental import pallas as pl
from jax.experimental.pallas import tpu as pltpu

BN_EPS = 1e-5
LANES = 128          # all channel dims are zero-padded to this lane width


def _round_up(x, m):
    return ((x + m - 1) // m) * m


# ------------------------------ Pallas kernel -------------------------------

def dqn_fused_kernel(dims, p1_ref, sel_ref, w_ref, v_ref, o_ref):
    """Whole DQN forward on VMEM-resident data.

    Inputs (all f32):
      p1_ref : (r1p, Cin*8*8)  conv1 im2col patches (rows zero-padded)
      sel_ref: packed 0/1 selection matrices (conv2 taps stacked, conv3 taps
               stacked; conv3 output rows ordered (position, batch))
      w_ref  : packed weight slab, every block 128-lane padded
      v_ref  : (8, max(128,256)) packed BN gamma/beta + fc biases
    """
    (n, r1, r1p, r2, r2p, r3, r3p, t2, t3, pos, k1sq, cf, npad) = dims
    C = LANES

    def elu(z):
        return jnp.where(z > 0, z, jnp.exp(z) - 1.0)

    def bn_elu(y, count, g, b):
        # Train-mode batch stats.  Pad rows of y are exactly zero, so summing
        # over the padded array and dividing by the true row count is exact.
        s = jnp.sum(y, axis=0, keepdims=True)
        ssq = jnp.sum(y * y, axis=0, keepdims=True)
        inv = 1.0 / count
        mu = s * inv
        var = jnp.maximum(ssq * inv - mu * mu, 0.0)     # clamp one-pass cancellation
        z = g * (y - mu) * jax.lax.rsqrt(var + BN_EPS) + b
        return elu(z)

    # ---- static row offsets inside the packed weight slab ----
    w2_row = 0
    w3_row = w2_row + t2 * C
    f1_row = w3_row + t3 * C
    w1_row = f1_row + pos * C
    f2_row = w1_row + k1sq

    # ---- conv1 + BN + ELU: one GEMM on pre-extracted patches ------ (r1p,128)
    w1 = w_ref[w1_row:w1_row + k1sq, 0:C]
    y1 = jnp.dot(p1_ref[...], w1, preferred_element_type=jnp.float32)
    a1 = bn_elu(y1, r1, v_ref[0:1, 0:C], v_ref[1:2, 0:C])

    # ---- conv2 + BN + ELU: one tall gather GEMM + per-tap weight GEMMs -----
    rows2 = jnp.dot(sel_ref[0:t2 * r2p, 0:r1p], a1,
                    preferred_element_type=jnp.float32)          # (t2*r2p, 128)
    y2 = None
    for t in range(t2):
        part = jnp.dot(rows2[t * r2p:(t + 1) * r2p, :],
                       w_ref[w2_row + t * C:w2_row + (t + 1) * C, 0:C],
                       preferred_element_type=jnp.float32)
        y2 = part if y2 is None else y2 + part                   # (r2p, 128)
    a2 = bn_elu(y2, r2, v_ref[2:3, 0:C], v_ref[3:4, 0:C])

    # ---- conv3 + BN + ELU: output rows ordered (position, batch) so the
    #      PyTorch NCHW flatten needs no extra gather before fc1. ------------
    s3 = sel_ref[t2 * r2p:t2 * r2p + t3 * r3p, 0:r2p]
    rows3 = jnp.dot(s3, a2, preferred_element_type=jnp.float32)  # (t3*r3p, 128)
    y3 = None
    for t in range(t3):
        part = jnp.dot(rows3[t * r3p:(t + 1) * r3p, :],
                       w_ref[w3_row + t * C:w3_row + (t + 1) * C, 0:C],
                       preferred_element_type=jnp.float32)
        y3 = part if y3 is None else y3 + part                   # (r3p, 128)
    a3 = bn_elu(y3, r3, v_ref[4:5, 0:C], v_ref[5:6, 0:C])

    # ---- fc1 + ELU: NCHW flatten folded into per-position weight blocks ----
    h = None
    for p in range(pos):
        part = jnp.dot(a3[p * n:(p + 1) * n, :],
                       w_ref[f1_row + p * C:f1_row + (p + 1) * C, 0:cf],
                       preferred_element_type=jnp.float32)
        h = part if h is None else h + part                      # (n, cf)
    h = elu(h + v_ref[6:7, 0:cf])

    # ---- fc2: lane-padded (actions -> 128) dense store ---------------------
    f2 = w_ref[f2_row:f2_row + cf, 0:npad]
    o_ref[...] = (jnp.dot(h, f2, preferred_element_type=jnp.float32)
                  + v_ref[7:8, 0:npad])


# ------------------------------ JAX glue -------------------------------------

def im2col(x, k, s):
    """x: (N, C, H, W) -> patches (N*Ho*Wo, C*k*k); column order (C, kh, kw)."""
    N, C, H, W = x.shape
    Ho = (H - k) // s + 1
    Wo = (W - k) // s + 1
    cols = []
    for kh in range(k):
        for kw in range(k):
            cols.append(x[:, :, kh: kh + s * (Ho - 1) + 1: s,
                              kw: kw + s * (Wo - 1) + 1: s])     # (N, C, Ho, Wo)
    p = jnp.stack(cols, axis=2)                      # (N, C, k*k, Ho, Wo)
    p = p.reshape(N, C * k * k, Ho, Wo)
    p = p.transpose(0, 2, 3, 1).reshape(N * Ho * Wo, C * k * k)
    return p


def build_plan(params, batch, h, w, actions):
    """One-time constant prep: stacked 0/1 selection matrices, one packed
    lane-padded weight slab, one packed BN/bias slab, static dims, cost est."""
    def csize(s, k, st):
        return (s - (k - 1) - 1) // st + 1

    C = LANES
    n = batch
    h1, w1 = csize(h, 8, 4), csize(w, 8, 4)
    h2, w2 = csize(h1, 4, 2), csize(w1, 4, 2)
    h3, w3 = csize(h2, 2, 1), csize(w2, 2, 1)
    pos = h3 * w3
    r1, r2, r3 = n * h1 * w1, n * h2 * w2, n * pos
    r1p, r2p, r3p = _round_up(r1, 8), _round_up(r2, 8), _round_up(r3, 8)
    t2, t3 = 16, 4
    c1, c2, c3 = 32, 64, 64
    k1sq = 4 * 8 * 8                 # conv1 Cin*k*k = 256
    cf = 256                         # fc1 output width
    npad = _round_up(actions, C)
    wcols = max(C, cf, npad)

    # ---- selection pack: conv2 taps stacked, then conv3 taps stacked -------
    selcols = max(r1p, r2p)
    sel = np.zeros((t2 * r2p + t3 * r3p, selcols), np.float32)
    for kh in range(4):                              # conv2: k=4, stride=2
        for kw in range(4):
            t = kh * 4 + kw
            for b in range(n):
                for oh in range(h2):
                    for ow in range(w2):
                        row = t * r2p + b * h2 * w2 + oh * w2 + ow
                        col = b * h1 * w1 + (oh * 2 + kh) * w1 + (ow * 2 + kw)
                        sel[row, col] = 1.0
    base = t2 * r2p
    for kh in range(2):                              # conv3: k=2, stride=1
        for kw in range(2):
            t = kh * 2 + kw
            for b in range(n):
                for oh in range(h3):
                    for ow in range(w3):
                        p = oh * w3 + ow
                        row = base + t * r3p + p * n + b     # (position, batch)
                        col = b * h2 * w2 + (oh + kh) * w2 + (ow + kw)
                        sel[row, col] = 1.0

    # ---- packed weight slab (all channel dims zero-padded to 128 lanes) ----
    rows_total = (t2 + t3 + pos) * C + k1sq + cf
    wbig = np.zeros((rows_total, wcols), np.float32)
    w2_np = np.asarray(params["w2"])                 # (64, 32, 4, 4)
    for kh in range(4):
        for kw in range(4):
            t = kh * 4 + kw
            wbig[t * C:t * C + c1, 0:c2] = w2_np[:, :, kh, kw].T
    w3_row = t2 * C
    w3_np = np.asarray(params["w3"])                 # (64, 64, 2, 2)
    for kh in range(2):
        for kw in range(2):
            t = kh * 2 + kw
            wbig[w3_row + t * C:w3_row + t * C + c2, 0:c3] = w3_np[:, :, kh, kw].T
    f1_row = w3_row + t3 * C
    fw1_np = np.asarray(params["fw1"])               # (256, 64*pos), flat = c*pos + p
    for p in range(pos):
        wbig[f1_row + p * C:f1_row + p * C + c3, 0:cf] = fw1_np[:, p::pos].T
    w1_row = f1_row + pos * C
    wbig[w1_row:w1_row + k1sq, 0:c1] = np.asarray(params["w1"]).reshape(c1, -1).T
    f2_row = w1_row + k1sq
    wbig[f2_row:f2_row + cf, 0:actions] = np.asarray(params["fw2"]).T

    # ---- packed BN gamma/beta + fc biases (betas / biases padded with 0) ----
    vecs = np.zeros((8, wcols), np.float32)
    vecs[0, 0:c1] = np.asarray(params["g1"]);  vecs[1, 0:c1] = np.asarray(params["be1"])
    vecs[2, 0:c2] = np.asarray(params["g2"]);  vecs[3, 0:c2] = np.asarray(params["be2"])
    vecs[4, 0:c3] = np.asarray(params["g3"]);  vecs[5, 0:c3] = np.asarray(params["be3"])
    vecs[6, 0:cf] = np.asarray(params["fb1"]); vecs[7, 0:actions] = np.asarray(params["fb2"])

    dims = (n, r1, r1p, r2, r2p, r3, r3p, t2, t3, pos, k1sq, cf, npad)

    flops = 2 * (r1p * k1sq * C                      # conv1 GEMM
                 + (t2 * r2p) * r1p * C              # conv2 gather
                 + t2 * r2p * C * C                  # conv2 weight taps
                 + (t3 * r3p) * r2p * C              # conv3 gather
                 + t3 * r3p * C * C                  # conv3 weight taps
                 + pos * n * C * cf                  # fc1
                 + n * cf * npad)                    # fc2
    trans = (r1p + r2p + r3p) * C + n * cf + 3 * C   # exp + rsqrt, rough
    byts = 4 * (r1p * k1sq + sel.size + wbig.size + vecs.size + n * npad)

    return dict(
        dims=dims,
        sel=jnp.asarray(sel),
        wbig=jnp.asarray(wbig),
        vecs=jnp.asarray(vecs),
        cost=pl.CostEstimate(flops=flops, transcendentals=trans,
                             bytes_accessed=byts),
    )


def dqn_forward(x, sel, wbig, vecs, *, dims, cost, actions):
    n, r1, r1p = dims[0], dims[1], dims[2]
    npad = dims[12]
    # Only per-call XLA glue: conv1 im2col (fused under jit), padded to a
    # sublane-aligned row count with zero rows (exact under sum/true-count BN).
    p1 = im2col(x, 8, 4)
    p1 = jnp.pad(p1, ((0, r1p - r1), (0, 0)))
    out = pl.pallas_call(
        functools.partial(dqn_fused_kernel, dims),
        out_shape=jax.ShapeDtypeStruct((n, npad), jnp.float32),
        cost_estimate=cost,
    )(p1, sel, wbig, vecs)
    return out[:, :actions]


# --------------------------- parameter init ----------------------------------

def _init_conv(key, cout, cin, k):
    kw, kb = jax.random.split(key)
    bound = 1.0 / np.sqrt(cin * k * k)
    w = jax.random.uniform(kw, (cout, cin, k, k), jnp.float32, -bound, bound)
    b = jax.random.uniform(kb, (cout,), jnp.float32, -bound, bound)
    return w, b


def _init_linear(key, cout, cin):
    kw, kb = jax.random.split(key)
    bound = 1.0 / np.sqrt(cin)
    w = jax.random.uniform(kw, (cout, cin), jnp.float32, -bound, bound)
    b = jax.random.uniform(kb, (cout,), jnp.float32, -bound, bound)
    return w, b


def make_params(key, h, w, actions_qty):
    def conv_size(size, k, s):
        return (size - (k - 1) - 1) // s + 1
    conv_w = conv_size(conv_size(conv_size(w, 8, 4), 4, 2), 2, 1)
    conv_h = conv_size(conv_size(conv_size(h, 8, 4), 4, 2), 2, 1)
    flat = 64 * conv_h * conv_w

    k1, k2, k3, k4, k5 = jax.random.split(key, 5)
    w1, b1 = _init_conv(k1, 32, 4, 8)
    w2, b2 = _init_conv(k2, 64, 32, 4)
    w3, b3 = _init_conv(k3, 64, 64, 2)
    fw1, fb1 = _init_linear(k4, 256, flat)
    fw2, fb2 = _init_linear(k5, actions_qty, 256)
    # Conv biases are kept in the dict (the reference uses them) but are a
    # no-op through batch-statistics BN, so the fused kernel never sees them.
    return dict(
        w1=w1, b1=b1, g1=jnp.ones(32), be1=jnp.zeros(32),
        w2=w2, b2=b2, g2=jnp.ones(64), be2=jnp.zeros(64),
        w3=w3, b3=b3, g3=jnp.ones(64), be3=jnp.zeros(64),
        fw1=fw1, fb1=fb1, fw2=fw2, fb2=fb2,
    )


# --------------------------- pure-JAX reference -------------------------------

def reference_forward(x, p):
    def conv(x, w, b, s):
        y = jax.lax.conv_general_dilated(
            x, w, (s, s), "VALID",
            dimension_numbers=("NCHW", "OIHW", "NCHW"))
        return y + b.reshape(1, -1, 1, 1)

    def bn(x, g, be):
        mu = jnp.mean(x, axis=(0, 2, 3), keepdims=True)
        var = jnp.mean((x - mu) ** 2, axis=(0, 2, 3), keepdims=True)
        return (g.reshape(1, -1, 1, 1) * (x - mu) * jax.lax.rsqrt(var + BN_EPS)
                + be.reshape(1, -1, 1, 1))

    def elu(x):
        return jnp.where(x > 0, x, jnp.exp(x) - 1.0)

    x = elu(bn(conv(x, p["w1"], p["b1"], 4), p["g1"], p["be1"]))
    x = elu(bn(conv(x, p["w2"], p["b2"], 2), p["g2"], p["be2"]))
    x = elu(bn(conv(x, p["w3"], p["b3"], 1), p["g3"], p["be3"]))
    x = x.reshape(x.shape[0], -1)
    x = elu(x @ p["fw1"].T + p["fb1"])
    return x @ p["fw2"].T + p["fb2"]


# --------------------------------- main ---------------------------------------

if __name__ == "__main__":
    BATCH, H, W = 2, 40, 40          # -> conv_h = conv_w = 2, flat = 256
    ACTIONS = 6
    STATES_QTY = 4                   # stored by the module, unused in forward

    key = jax.random.PRNGKey(0)
    kx, kp = jax.random.split(key)
    x = jax.random.normal(kx, (BATCH, 4, H, W), jnp.float32)
    params = make_params(kp, H, W, ACTIONS)

    plan = build_plan(params, BATCH, H, W, ACTIONS)      # one-time constant prep
    fwd = jax.jit(functools.partial(dqn_forward, dims=plan["dims"],
                                    cost=plan["cost"], actions=ACTIONS))

    q = jax.block_until_ready(fwd(x, plan["sel"], plan["wbig"], plan["vecs"]))
    q_ref = jax.block_until_ready(reference_forward(x, params))

    assert q.shape == (BATCH, ACTIONS), q.shape
    assert jnp.max(jnp.abs(q - q_ref)) < 1e-3, float(jnp.max(jnp.abs(q - q_ref)))
    print("KERNEL_OK")
</pallas_src>

<mosaic_0001>
module attributes {stable_mosaic.version = 11 : i64} {
  func.func @dqn_fused_kernel(%arg0: memref<168x256xf32, #tpu.memory_space<vmem>>, %arg1: memref<416x168xf32, #tpu.memory_space<vmem>>, %arg2: memref<3584x256xf32, #tpu.memory_space<vmem>>, %arg3: memref<8x256xf32, #tpu.memory_space<vmem>>, %arg4: memref<2x128xf32, #tpu.memory_space<vmem>>) attributes {dimension_semantics = [], scalar_prefetch = 0 : i64, scratch_operands = 0 : i64, tpu.core_type = #tpu.core_type<tc>} {
    %c3072 = arith.constant 3072 : index
    %c0 = arith.constant 0 : index
    %0 = vector.load %arg2[%c3072, %c0] : memref<3584x256xf32, #tpu.memory_space<vmem>>, vector<256x128xf32>
    %c0_0 = arith.constant 0 : index
    %c0_1 = arith.constant 0 : index
    %1 = vector.load %arg0[%c0_0, %c0_1] : memref<168x256xf32, #tpu.memory_space<vmem>>, vector<168x256xf32>
    %cst = arith.constant dense<0.000000e+00> : vector<168x128xf32>
    %2 = tpu.matmul %1, %0, %cst {dimension_numbers = #tpu.dot_dimension_numbers<[1], [0], [0], [1], [0, 0, 1, 1], [], []>} : vector<168x256xf32>, vector<256x128xf32>, vector<168x128xf32> -> vector<168x128xf32>
    %c0_2 = arith.constant 0 : index
    %c0_3 = arith.constant 0 : index
    %3 = vector.load %arg3[%c0_2, %c0_3] : memref<8x256xf32, #tpu.memory_space<vmem>>, vector<1x128xf32>
    %c1 = arith.constant 1 : index
    %c0_4 = arith.constant 0 : index
    %4 = vector.load %arg3[%c1, %c0_4] : memref<8x256xf32, #tpu.memory_space<vmem>>, vector<1x128xf32>
    %cst_5 = arith.constant dense<0.000000e+00> : vector<128xf32>
    %5 = vector.multi_reduction <add>, %2, %cst_5 [0] : vector<168x128xf32> to vector<128xf32>
    %6 = vector.shape_cast %5 : vector<128xf32> to vector<1x128xf32>
    %7 = arith.mulf %2, %2 : vector<168x128xf32>
    %cst_6 = arith.constant dense<0.000000e+00> : vector<128xf32>
    %8 = vector.multi_reduction <add>, %7, %cst_6 [0] : vector<168x128xf32> to vector<128xf32>
    %9 = vector.shape_cast %8 : vector<128xf32> to vector<1x128xf32>
    %cst_7 = arith.constant 0.00617283955 : f32
    %10 = vector.broadcast %cst_7 : f32 to vector<1x128xf32>
    %11 = arith.mulf %6, %10 : vector<1x128xf32>
    %cst_8 = arith.constant 0.00617283955 : f32
    %12 = vector.broadcast %cst_8 : f32 to vector<1x128xf32>
    %13 = arith.mulf %9, %12 : vector<1x128xf32>
    %14 = arith.mulf %11, %11 : vector<1x128xf32>
    %15 = arith.subf %13, %14 : vector<1x128xf32>
    %cst_9 = arith.constant 0.000000e+00 : f32
    %16 = vector.broadcast %cst_9 : f32 to vector<1x128xf32>
    %17 = arith.maximumf %15, %16 : vector<1x128xf32>
    %18 = vector.broadcast %11 : vector<1x128xf32> to vector<168x128xf32>
    %19 = arith.subf %2, %18 : vector<168x128xf32>
    %20 = vector.broadcast %3 : vector<1x128xf32> to vector<168x128xf32>
    %21 = arith.mulf %20, %19 : vector<168x128xf32>
    %cst_10 = arith.constant 9.99999974E-6 : f32
    %22 = vector.broadcast %cst_10 : f32 to vector<1x128xf32>
    %23 = arith.addf %17, %22 : vector<1x128xf32>
    %24 = math.rsqrt %23 : vector<1x128xf32>
    %25 = vector.broadcast %24 : vector<1x128xf32> to vector<168x128xf32>
    %26 = arith.mulf %21, %25 : vector<168x128xf32>
    %27 = vector.broadcast %4 : vector<1x128xf32> to vector<168x128xf32>
    %28 = arith.addf %26, %27 : vector<168x128xf32>
    %cst_11 = arith.constant 0.000000e+00 : f32
    %29 = vector.broadcast %cst_11 : f32 to vector<168x128xf32>
    %30 = arith.cmpf ogt, %28, %29 : vector<168x128xf32>
    %31 = math.exp %28 : vector<168x128xf32>
    %cst_12 = arith.constant 1.000000e+00 : f32
    %32 = vector.broadcast %cst_12 : f32 to vector<168x128xf32>
    %33 = arith.subf %31, %32 : vector<168x128xf32>
    %34 = arith.select %30, %28, %33 : vector<168x128xi1>, vector<168x128xf32>
    %c0_13 = arith.constant 0 : index
    %c0_14 = arith.constant 0 : index
    %35 = vector.load %arg1[%c0_13, %c0_14] : memref<416x168xf32, #tpu.memory_space<vmem>>, vector<384x168xf32>
    %cst_15 = arith.constant dense<0.000000e+00> : vector<384x128xf32>
    %36 = tpu.matmul %35, %34, %cst_15 {dimension_numbers = #tpu.dot_dimension_numbers<[1], [0], [0], [1], [0, 0, 1, 1], [], []>} : vector<384x168xf32>, vector<168x128xf32>, vector<384x128xf32> -> vector<384x128xf32>
    %37 = vector.extract_strided_slice %36 {offsets = [0, 0], sizes = [24, 128], strides = [1, 1]} : vector<384x128xf32> to vector<24x128xf32>
    %c0_16 = arith.constant 0 : index
    %c0_17 = arith.constant 0 : index
    %38 = vector.load %arg2[%c0_16, %c0_17] : memref<3584x256xf32, #tpu.memory_space<vmem>>, vector<128x128xf32>
    %cst_18 = arith.constant dense<0.000000e+00> : vector<24x128xf32>
    %39 = tpu.matmul %37, %38, %cst_18 {dimension_numbers = #tpu.dot_dimension_numbers<[1], [0], [0], [1], [0, 0, 1, 1], [], []>} : vector<24x128xf32>, vector<128x128xf32>, vector<24x128xf32> -> vector<24x128xf32>
    %40 = vector.extract_strided_slice %36 {offsets = [24, 0], sizes = [24, 128], strides = [1, 1]} : vector<384x128xf32> to vector<24x128xf32>
    %c128 = arith.constant 128 : index
    %c0_19 = arith.constant 0 : index
    %41 = vector.load %arg2[%c128, %c0_19] : memref<3584x256xf32, #tpu.memory_space<vmem>>, vector<128x128xf32>
    %cst_20 = arith.constant dense<0.000000e+00> : vector<24x128xf32>
    %42 = tpu.matmul %40, %41, %cst_20 {dimension_numbers = #tpu.dot_dimension_numbers<[1], [0], [0], [1], [0, 0, 1, 1], [], []>} : vector<24x128xf32>, vector<128x128xf32>, vector<24x128xf32> -> vector<24x128xf32>
    %43 = arith.addf %39, %42 : vector<24x128xf32>
    %44 = vector.extract_strided_slice %36 {offsets = [48, 0], sizes = [24, 128], strides = [1, 1]} : vector<384x128xf32> to vector<24x128xf32>
    %c256 = arith.constant 256 : index
    %c0_21 = arith.constant 0 : index
    %45 = vector.load %arg2[%c256, %c0_21] : memref<3584x256xf32, #tpu.memory_space<vmem>>, vector<128x128xf32>
    %cst_22 = arith.constant dense<0.000000e+00> : vector<24x128xf32>
    %46 = tpu.matmul %44, %45, %cst_22 {dimension_numbers = #tpu.dot_dimension_numbers<[1], [0], [0], [1], [0, 0, 1, 1], [], []>} : vector<24x128xf32>, vector<128x128xf32>, vector<24x128xf32> -> vector<24x128xf32>
    %47 = arith.addf %43, %46 : vector<24x128xf32>
    %48 = vector.extract_strided_slice %36 {offsets = [72, 0], sizes = [24, 128], strides = [1, 1]} : vector<384x128xf32> to vector<24x128xf32>
    %c384 = arith.constant 384 : index
    %c0_23 = arith.constant 0 : index
    %49 = vector.load %arg2[%c384, %c0_23] : memref<3584x256xf32, #tpu.memory_space<vmem>>, vector<128x128xf32>
    %cst_24 = arith.constant dense<0.000000e+00> : vector<24x128xf32>
    %50 = tpu.matmul %48, %49, %cst_24 {dimension_numbers = #tpu.dot_dimension_numbers<[1], [0], [0], [1], [0, 0, 1, 1], [], []>} : vector<24x128xf32>, vector<128x128xf32>, vector<24x128xf32> -> vector<24x128xf32>
    %51 = arith.addf %47, %50 : vector<24x128xf32>
    %52 = vector.extract_strided_slice %36 {offsets = [96, 0], sizes = [24, 128], strides = [1, 1]} : vector<384x128xf32> to vector<24x128xf32>
    %c512 = arith.constant 512 : index
    %c0_25 = arith.constant 0 : index
    %53 = vector.load %arg2[%c512, %c0_25] : memref<3584x256xf32, #tpu.memory_space<vmem>>, vector<128x128xf32>
    %cst_26 = arith.constant dense<0.000000e+00> : vector<24x128xf32>
    %54 = tpu.matmul %52, %53, %cst_26 {dimension_numbers = #tpu.dot_dimension_numbers<[1], [0], [0], [1], [0, 0, 1, 1], [], []>} : vector<24x128xf32>, vector<128x128xf32>, vector<24x128xf32> -> vector<24x128xf32>
    %55 = arith.addf %51, %54 : vector<24x128xf32>
    %56 = vector.extract_strided_slice %36 {offsets = [120, 0], sizes = [24, 128], strides = [1, 1]} : vector<384x128xf32> to vector<24x128xf32>
    %c640 = arith.constant 640 : index
    %c0_27 = arith.constant 0 : index
    %57 = vector.load %arg2[%c640, %c0_27] : memref<3584x256xf32, #tpu.memory_space<vmem>>, vector<128x128xf32>
    %cst_28 = arith.constant dense<0.000000e+00> : vector<24x128xf32>
    %58 = tpu.matmul %56, %57, %cst_28 {dimension_numbers = #tpu.dot_dimension_numbers<[1], [0], [0], [1], [0, 0, 1, 1], [], []>} : vector<24x128xf32>, vector<128x128xf32>, vector<24x128xf32> -> vector<24x128xf32>
    %59 = arith.addf %55, %58 : vector<24x128xf32>
    %60 = vector.extract_strided_slice %36 {offsets = [144, 0], sizes = [24, 128], strides = [1, 1]} : vector<384x128xf32> to vector<24x128xf32>
    %c768 = arith.constant 768 : index
    %c0_29 = arith.constant 0 : index
    %61 = vector.load %arg2[%c768, %c0_29] : memref<3584x256xf32, #tpu.memory_space<vmem>>, vector<128x128xf32>
    %cst_30 = arith.constant dense<0.000000e+00> : vector<24x128xf32>
    %62 = tpu.matmul %60, %61, %cst_30 {dimension_numbers = #tpu.dot_dimension_numbers<[1], [0], [0], [1], [0, 0, 1, 1], [], []>} : vector<24x128xf32>, vector<128x128xf32>, vector<24x128xf32> -> vector<24x128xf32>
    %63 = arith.addf %59, %62 : vector<24x128xf32>
    %64 = vector.extract_strided_slice %36 {offsets = [168, 0], sizes = [24, 128], strides = [1, 1]} : vector<384x128xf32> to vector<24x128xf32>
    %c896 = arith.constant 896 : index
    %c0_31 = arith.constant 0 : index
    %65 = vector.load %arg2[%c896, %c0_31] : memref<3584x256xf32, #tpu.memory_space<vmem>>, vector<128x128xf32>
    %cst_32 = arith.constant dense<0.000000e+00> : vector<24x128xf32>
    %66 = tpu.matmul %64, %65, %cst_32 {dimension_numbers = #tpu.dot_dimension_numbers<[1], [0], [0], [1], [0, 0, 1, 1], [], []>} : vector<24x128xf32>, vector<128x128xf32>, vector<24x128xf32> -> vector<24x128xf32>
    %67 = arith.addf %63, %66 : vector<24x128xf32>
    %68 = vector.extract_strided_slice %36 {offsets = [192, 0], sizes = [24, 128], strides = [1, 1]} : vector<384x128xf32> to vector<24x128xf32>
    %c1024 = arith.constant 1024 : index
    %c0_33 = arith.constant 0 : index
    %69 = vector.load %arg2[%c1024, %c0_33] : memref<3584x256xf32, #tpu.memory_space<vmem>>, vector<128x128xf32>
    %cst_34 = arith.constant dense<0.000000e+00> : vector<24x128xf32>
    %70 = tpu.matmul %68, %69, %cst_34 {dimension_numbers = #tpu.dot_dimension_numbers<[1], [0], [0], [1], [0, 0, 1, 1], [], []>} : vector<24x128xf32>, vector<128x128xf32>, vector<24x128xf32> -> vector<24x128xf32>
    %71 = arith.addf %67, %70 : vector<24x128xf32>
    %72 = vector.extract_strided_slice %36 {offsets = [216, 0], sizes = [24, 128], strides = [1, 1]} : vector<384x128xf32> to vector<24x128xf32>
    %c1152 = arith.constant 1152 : index
    %c0_35 = arith.constant 0 : index
    %73 = vector.load %arg2[%c1152, %c0_35] : memref<3584x256xf32, #tpu.memory_space<vmem>>, vector<128x128xf32>
    %cst_36 = arith.constant dense<0.000000e+00> : vector<24x128xf32>
    %74 = tpu.matmul %72, %73, %cst_36 {dimension_numbers = #tpu.dot_dimension_numbers<[1], [0], [0], [1], [0, 0, 1, 1], [], []>} : vector<24x128xf32>, vector<128x128xf32>, vector<24x128xf32> -> vector<24x128xf32>
    %75 = arith.addf %71, %74 : vector<24x128xf32>
    %76 = vector.extract_strided_slice %36 {offsets = [240, 0], sizes = [24, 128], strides = [1, 1]} : vector<384x128xf32> to vector<24x128xf32>
    %c1280 = arith.constant 1280 : index
    %c0_37 = arith.constant 0 : index
    %77 = vector.load %arg2[%c1280, %c0_37] : memref<3584x256xf32, #tpu.memory_space<vmem>>, vector<128x128xf32>
    %cst_38 = arith.constant dense<0.000000e+00> : vector<24x128xf32>
    %78 = tpu.matmul %76, %77, %cst_38 {dimension_numbers = #tpu.dot_dimension_numbers<[1], [0], [0], [1], [0, 0, 1, 1], [], []>} : vector<24x128xf32>, vector<128x128xf32>, vector<24x128xf32> -> vector<24x128xf32>
    %79 = arith.addf %75, %78 : vector<24x128xf32>
    %80 = vector.extract_strided_slice %36 {offsets = [264, 0], sizes = [24, 128], strides = [1, 1]} : vector<384x128xf32> to vector<24x128xf32>
    %c1408 = arith.constant 1408 : index
    %c0_39 = arith.constant 0 : index
    %81 = vector.load %arg2[%c1408, %c0_39] : memref<3584x256xf32, #tpu.memory_space<vmem>>, vector<128x128xf32>
    %cst_40 = arith.constant dense<0.000000e+00> : vector<24x128xf32>
    %82 = tpu.matmul %80, %81, %cst_40 {dimension_numbers = #tpu.dot_dimension_numbers<[1], [0], [0], [1], [0, 0, 1, 1], [], []>} : vector<24x128xf32>, vector<128x128xf32>, vector<24x128xf32> -> vector<24x128xf32>
    %83 = arith.addf %79, %82 : vector<24x128xf32>
    %84 = vector.extract_strided_slice %36 {offsets = [288, 0], sizes = [24, 128], strides = [1, 1]} : vector<384x128xf32> to vector<24x128xf32>
    %c1536 = arith.constant 1536 : index
    %c0_41 = arith.constant 0 : index
    %85 = vector.load %arg2[%c1536, %c0_41] : memref<3584x256xf32, #tpu.memory_space<vmem>>, vector<128x128xf32>
    %cst_42 = arith.constant dense<0.000000e+00> : vector<24x128xf32>
    %86 = tpu.matmul %84, %85, %cst_42 {dimension_numbers = #tpu.dot_dimension_numbers<[1], [0], [0], [1], [0, 0, 1, 1], [], []>} : vector<24x128xf32>, vector<128x128xf32>, vector<24x128xf32> -> vector<24x128xf32>
    %87 = arith.addf %83, %86 : vector<24x128xf32>
    %88 = vector.extract_strided_slice %36 {offsets = [312, 0], sizes = [24, 128], strides = [1, 1]} : vector<384x128xf32> to vector<24x128xf32>
    %c1664 = arith.constant 1664 : index
    %c0_43 = arith.constant 0 : index
    %89 = vector.load %arg2[%c1664, %c0_43] : memref<3584x256xf32, #tpu.memory_space<vmem>>, vector<128x128xf32>
    %cst_44 = arith.constant dense<0.000000e+00> : vector<24x128xf32>
    %90 = tpu.matmul %88, %89, %cst_44 {dimension_numbers = #tpu.dot_dimension_numbers<[1], [0], [0], [1], [0, 0, 1, 1], [], []>} : vector<24x128xf32>, vector<128x128xf32>, vector<24x128xf32> -> vector<24x128xf32>
    %91 = arith.addf %87, %90 : vector<24x128xf32>
    %92 = vector.extract_strided_slice %36 {offsets = [336, 0], sizes = [24, 128], strides = [1, 1]} : vector<384x128xf32> to vector<24x128xf32>
    %c1792 = arith.constant 1792 : index
    %c0_45 = arith.constant 0 : index
    %93 = vector.load %arg2[%c1792, %c0_45] : memref<3584x256xf32, #tpu.memory_space<vmem>>, vector<128x128xf32>
    %cst_46 = arith.constant dense<0.000000e+00> : vector<24x128xf32>
    %94 = tpu.matmul %92, %93, %cst_46 {dimension_numbers = #tpu.dot_dimension_numbers<[1], [0], [0], [1], [0, 0, 1, 1], [], []>} : vector<24x128xf32>, vector<128x128xf32>, vector<24x128xf32> -> vector<24x128xf32>
    %95 = arith.addf %91, %94 : vector<24x128xf32>
    %96 = vector.extract_strided_slice %36 {offsets = [360, 0], sizes = [24, 128], strides = [1, 1]} : vector<384x128xf32> to vector<24x128xf32>
    %c1920 = arith.constant 1920 : index
    %c0_47 = arith.constant 0 : index
    %97 = vector.load %arg2[%c1920, %c0_47] : memref<3584x256xf32, #tpu.memory_space<vmem>>, vector<128x128xf32>
    %cst_48 = arith.constant dense<0.000000e+00> : vector<24x128xf32>
    %98 = tpu.matmul %96, %97, %cst_48 {dimension_numbers = #tpu.dot_dimension_numbers<[1], [0], [0], [1], [0, 0, 1, 1], [], []>} : vector<24x128xf32>, vector<128x128xf32>, vector<24x128xf32> -> vector<24x128xf32>
    %99 = arith.addf %95, %98 : vector<24x128xf32>
    %c2 = arith.constant 2 : index
    %c0_49 = arith.constant 0 : index
    %100 = vector.load %arg3[%c2, %c0_49] : memref<8x256xf32, #tpu.memory_space<vmem>>, vector<1x128xf32>
    %c3 = arith.constant 3 : index
    %c0_50 = arith.constant 0 : index
    %101 = vector.load %arg3[%c3, %c0_50] : memref<8x256xf32, #tpu.memory_space<vmem>>, vector<1x128xf32>
    %cst_51 = arith.constant dense<0.000000e+00> : vector<128xf32>
    %102 = vector.multi_reduction <add>, %99, %cst_51 [0] : vector<24x128xf32> to vector<128xf32>
    %103 = vector.shape_cast %102 : vector<128xf32> to vector<1x128xf32>
    %104 = arith.mulf %99, %99 : vector<24x128xf32>
    %cst_52 = arith.constant dense<0.000000e+00> : vector<128xf32>
    %105 = vector.multi_reduction <add>, %104, %cst_52 [0] : vector<24x128xf32> to vector<128xf32>
    %106 = vector.shape_cast %105 : vector<128xf32> to vector<1x128xf32>
    %cst_53 = arith.constant 0.055555556 : f32
    %107 = vector.broadcast %cst_53 : f32 to vector<1x128xf32>
    %108 = arith.mulf %103, %107 : vector<1x128xf32>
    %cst_54 = arith.constant 0.055555556 : f32
    %109 = vector.broadcast %cst_54 : f32 to vector<1x128xf32>
    %110 = arith.mulf %106, %109 : vector<1x128xf32>
    %111 = arith.mulf %108, %108 : vector<1x128xf32>
    %112 = arith.subf %110, %111 : vector<1x128xf32>
    %cst_55 = arith.constant 0.000000e+00 : f32
    %113 = vector.broadcast %cst_55 : f32 to vector<1x128xf32>
    %114 = arith.maximumf %112, %113 : vector<1x128xf32>
    %115 = vector.broadcast %108 : vector<1x128xf32> to vector<24x128xf32>
    %116 = arith.subf %99, %115 : vector<24x128xf32>
    %117 = vector.broadcast %100 : vector<1x128xf32> to vector<24x128xf32>
    %118 = arith.mulf %117, %116 : vector<24x128xf32>
    %cst_56 = arith.constant 9.99999974E-6 : f32
    %119 = vector.broadcast %cst_56 : f32 to vector<1x128xf32>
    %120 = arith.addf %114, %119 : vector<1x128xf32>
    %121 = math.rsqrt %120 : vector<1x128xf32>
    %122 = vector.broadcast %121 : vector<1x128xf32> to vector<24x128xf32>
    %123 = arith.mulf %118, %122 : vector<24x128xf32>
    %124 = vector.broadcast %101 : vector<1x128xf32> to vector<24x128xf32>
    %125 = arith.addf %123, %124 : vector<24x128xf32>
    %cst_57 = arith.constant 0.000000e+00 : f32
    %126 = vector.broadcast %cst_57 : f32 to vector<24x128xf32>
    %127 = arith.cmpf ogt, %125, %126 : vector<24x128xf32>
    %128 = math.exp %125 : vector<24x128xf32>
    %cst_58 = arith.constant 1.000000e+00 : f32
    %129 = vector.broadcast %cst_58 : f32 to vector<24x128xf32>
    %130 = arith.subf %128, %129 : vector<24x128xf32>
    %131 = arith.select %127, %125, %130 : vector<24x128xi1>, vector<24x128xf32>
    %c384_59 = arith.constant 384 : index
    %c0_60 = arith.constant 0 : index
    %132 = vector.load %arg1[%c384_59, %c0_60] : memref<416x168xf32, #tpu.memory_space<vmem>>, vector<32x24xf32>
    %cst_61 = arith.constant dense<0.000000e+00> : vector<32x128xf32>
    %133 = tpu.matmul %132, %131, %cst_61 {dimension_numbers = #tpu.dot_dimension_numbers<[1], [0], [0], [1], [0, 0, 1, 1], [], []>} : vector<32x24xf32>, vector<24x128xf32>, vector<32x128xf32> -> vector<32x128xf32>
    %134 = vector.extract_strided_slice %133 {offsets = [0, 0], sizes = [8, 128], strides = [1, 1]} : vector<32x128xf32> to vector<8x128xf32>
    %c2048 = arith.constant 2048 : index
    %c0_62 = arith.constant 0 : index
    %135 = vector.load %arg2[%c2048, %c0_62] : memref<3584x256xf32, #tpu.memory_space<vmem>>, vector<128x128xf32>
    %cst_63 = arith.constant dense<0.000000e+00> : vector<8x128xf32>
    %136 = tpu.matmul %134, %135, %cst_63 {dimension_numbers = #tpu.dot_dimension_numbers<[1], [0], [0], [1], [0, 0, 1, 1], [], []>} : vector<8x128xf32>, vector<128x128xf32>, vector<8x128xf32> -> vector<8x128xf32>
    %137 = vector.extract_strided_slice %133 {offsets = [8, 0], sizes = [8, 128], strides = [1, 1]} : vector<32x128xf32> to vector<8x128xf32>
    %c2176 = arith.constant 2176 : index
    %c0_64 = arith.constant 0 : index
    %138 = vector.load %arg2[%c2176, %c0_64] : memref<3584x256xf32, #tpu.memory_space<vmem>>, vector<128x128xf32>
    %cst_65 = arith.constant dense<0.000000e+00> : vector<8x128xf32>
    %139 = tpu.matmul %137, %138, %cst_65 {dimension_numbers = #tpu.dot_dimension_numbers<[1], [0], [0], [1], [0, 0, 1, 1], [], []>} : vector<8x128xf32>, vector<128x128xf32>, vector<8x128xf32> -> vector<8x128xf32>
    %140 = arith.addf %136, %139 : vector<8x128xf32>
    %141 = vector.extract_strided_slice %133 {offsets = [16, 0], sizes = [8, 128], strides = [1, 1]} : vector<32x128xf32> to vector<8x128xf32>
    %c2304 = arith.constant 2304 : index
    %c0_66 = arith.constant 0 : index
    %142 = vector.load %arg2[%c2304, %c0_66] : memref<3584x256xf32, #tpu.memory_space<vmem>>, vector<128x128xf32>
    %cst_67 = arith.constant dense<0.000000e+00> : vector<8x128xf32>
    %143 = tpu.matmul %141, %142, %cst_67 {dimension_numbers = #tpu.dot_dimension_numbers<[1], [0], [0], [1], [0, 0, 1, 1], [], []>} : vector<8x128xf32>, vector<128x128xf32>, vector<8x128xf32> -> vector<8x128xf32>
    %144 = arith.addf %140, %143 : vector<8x128xf32>
    %145 = vector.extract_strided_slice %133 {offsets = [24, 0], sizes = [8, 128], strides = [1, 1]} : vector<32x128xf32> to vector<8x128xf32>
    %c2432 = arith.constant 2432 : index
    %c0_68 = arith.constant 0 : index
    %146 = vector.load %arg2[%c2432, %c0_68] : memref<3584x256xf32, #tpu.memory_space<vmem>>, vector<128x128xf32>
    %cst_69 = arith.constant dense<0.000000e+00> : vector<8x128xf32>
    %147 = tpu.matmul %145, %146, %cst_69 {dimension_numbers = #tpu.dot_dimension_numbers<[1], [0], [0], [1], [0, 0, 1, 1], [], []>} : vector<8x128xf32>, vector<128x128xf32>, vector<8x128xf32> -> vector<8x128xf32>
    %148 = arith.addf %144, %147 : vector<8x128xf32>
    %c4 = arith.constant 4 : index
    %c0_70 = arith.constant 0 : index
    %149 = vector.load %arg3[%c4, %c0_70] : memref<8x256xf32, #tpu.memory_space<vmem>>, vector<1x128xf32>
    %c5 = arith.constant 5 : index
    %c0_71 = arith.constant 0 : index
    %150 = vector.load %arg3[%c5, %c0_71] : memref<8x256xf32, #tpu.memory_space<vmem>>, vector<1x128xf32>
    %cst_72 = arith.constant dense<0.000000e+00> : vector<128xf32>
    %151 = vector.multi_reduction <add>, %148, %cst_72 [0] : vector<8x128xf32> to vector<128xf32>
    %152 = vector.shape_cast %151 : vector<128xf32> to vector<1x128xf32>
    %153 = arith.mulf %148, %148 : vector<8x128xf32>
    %cst_73 = arith.constant dense<0.000000e+00> : vector<128xf32>
    %154 = vector.multi_reduction <add>, %153, %cst_73 [0] : vector<8x128xf32> to vector<128xf32>
    %155 = vector.shape_cast %154 : vector<128xf32> to vector<1x128xf32>
    %cst_74 = arith.constant 1.250000e-01 : f32
    %156 = vector.broadcast %cst_74 : f32 to vector<1x128xf32>
    %157 = arith.mulf %152, %156 : vector<1x128xf32>
    %cst_75 = arith.constant 1.250000e-01 : f32
    %158 = vector.broadcast %cst_75 : f32 to vector<1x128xf32>
    %159 = arith.mulf %155, %158 : vector<1x128xf32>
    %160 = arith.mulf %157, %157 : vector<1x128xf32>
    %161 = arith.subf %159, %160 : vector<1x128xf32>
    %cst_76 = arith.constant 0.000000e+00 : f32
    %162 = vector.broadcast %cst_76 : f32 to vector<1x128xf32>
    %163 = arith.maximumf %161, %162 : vector<1x128xf32>
    %164 = vector.broadcast %157 : vector<1x128xf32> to vector<8x128xf32>
    %165 = arith.subf %148, %164 : vector<8x128xf32>
    %166 = vector.broadcast %149 : vector<1x128xf32> to vector<8x128xf32>
    %167 = arith.mulf %166, %165 : vector<8x128xf32>
    %cst_77 = arith.constant 9.99999974E-6 : f32
    %168 = vector.broadcast %cst_77 : f32 to vector<1x128xf32>
    %169 = arith.addf %163, %168 : vector<1x128xf32>
    %170 = math.rsqrt %169 : vector<1x128xf32>
    %171 = vector.broadcast %170 : vector<1x128xf32> to vector<8x128xf32>
    %172 = arith.mulf %167, %171 : vector<8x128xf32>
    %173 = vector.broadcast %150 : vector<1x128xf32> to vector<8x128xf32>
    %174 = arith.addf %172, %173 : vector<8x128xf32>
    %cst_78 = arith.constant 0.000000e+00 : f32
    %175 = vector.broadcast %cst_78 : f32 to vector<8x128xf32>
    %176 = arith.cmpf ogt, %174, %175 : vector<8x128xf32>
    %177 = math.exp %174 : vector<8x128xf32>
    %cst_79 = arith.constant 1.000000e+00 : f32
    %178 = vector.broadcast %cst_79 : f32 to vector<8x128xf32>
    %179 = arith.subf %177, %178 : vector<8x128xf32>
    %180 = arith.select %176, %174, %179 : vector<8x128xi1>, vector<8x128xf32>
    %181 = vector.extract_strided_slice %180 {offsets = [0, 0], sizes = [2, 128], strides = [1, 1]} : vector<8x128xf32> to vector<2x128xf32>
    %c2560 = arith.constant 2560 : index
    %c0_80 = arith.constant 0 : index
    %182 = vector.load %arg2[%c2560, %c0_80] : memref<3584x256xf32, #tpu.memory_space<vmem>>, vector<128x256xf32>
    %cst_81 = arith.constant dense<0.000000e+00> : vector<2x256xf32>
    %183 = tpu.matmul %181, %182, %cst_81 {dimension_numbers = #tpu.dot_dimension_numbers<[1], [0], [0], [1], [0, 0, 1, 1], [], []>} : vector<2x128xf32>, vector<128x256xf32>, vector<2x256xf32> -> vector<2x256xf32>
    %184 = vector.extract_strided_slice %180 {offsets = [2, 0], sizes = [2, 128], strides = [1, 1]} : vector<8x128xf32> to vector<2x128xf32>
    %c2688 = arith.constant 2688 : index
    %c0_82 = arith.constant 0 : index
    %185 = vector.load %arg2[%c2688, %c0_82] : memref<3584x256xf32, #tpu.memory_space<vmem>>, vector<128x256xf32>
    %cst_83 = arith.constant dense<0.000000e+00> : vector<2x256xf32>
    %186 = tpu.matmul %184, %185, %cst_83 {dimension_numbers = #tpu.dot_dimension_numbers<[1], [0], [0], [1], [0, 0, 1, 1], [], []>} : vector<2x128xf32>, vector<128x256xf32>, vector<2x256xf32> -> vector<2x256xf32>
    %187 = arith.addf %183, %186 : vector<2x256xf32>
    %188 = vector.extract_strided_slice %180 {offsets = [4, 0], sizes = [2, 128], strides = [1, 1]} : vector<8x128xf32> to vector<2x128xf32>
    %c2816 = arith.constant 2816 : index
    %c0_84 = arith.constant 0 : index
    %189 = vector.load %arg2[%c2816, %c0_84] : memref<3584x256xf32, #tpu.memory_space<vmem>>, vector<128x256xf32>
    %cst_85 = arith.constant dense<0.000000e+00> : vector<2x256xf32>
    %190 = tpu.matmul %188, %189, %cst_85 {dimension_numbers = #tpu.dot_dimension_numbers<[1], [0], [0], [1], [0, 0, 1, 1], [], []>} : vector<2x128xf32>, vector<128x256xf32>, vector<2x256xf32> -> vector<2x256xf32>
    %191 = arith.addf %187, %190 : vector<2x256xf32>
    %192 = vector.extract_strided_slice %180 {offsets = [6, 0], sizes = [2, 128], strides = [1, 1]} : vector<8x128xf32> to vector<2x128xf32>
    %c2944 = arith.constant 2944 : index
    %c0_86 = arith.constant 0 : index
    %193 = vector.load %arg2[%c2944, %c0_86] : memref<3584x256xf32, #tpu.memory_space<vmem>>, vector<128x256xf32>
    %cst_87 = arith.constant dense<0.000000e+00> : vector<2x256xf32>
    %194 = tpu.matmul %192, %193, %cst_87 {dimension_numbers = #tpu.dot_dimension_numbers<[1], [0], [0], [1], [0, 0, 1, 1], [], []>} : vector<2x128xf32>, vector<128x256xf32>, vector<2x256xf32> -> vector<2x256xf32>
    %195 = arith.addf %191, %194 : vector<2x256xf32>
    %c6 = arith.constant 6 : index
    %c0_88 = arith.constant 0 : index
    %196 = vector.load %arg3[%c6, %c0_88] : memref<8x256xf32, #tpu.memory_space<vmem>>, vector<1x256xf32>
    %197 = vector.broadcast %196 : vector<1x256xf32> to vector<2x256xf32>
    %198 = arith.addf %195, %197 : vector<2x256xf32>
    %cst_89 = arith.constant 0.000000e+00 : f32
    %199 = vector.broadcast %cst_89 : f32 to vector<2x256xf32>
    %200 = arith.cmpf ogt, %198, %199 : vector<2x256xf32>
    %201 = math.exp %198 : vector<2x256xf32>
    %cst_90 = arith.constant 1.000000e+00 : f32
    %202 = vector.broadcast %cst_90 : f32 to vector<2x256xf32>
    %203 = arith.subf %201, %202 : vector<2x256xf32>
    %204 = arith.select %200, %198, %203 : vector<2x256xi1>, vector<2x256xf32>
    %c3328 = arith.constant 3328 : index
    %c0_91 = arith.constant 0 : index
    %205 = vector.load %arg2[%c3328, %c0_91] : memref<3584x256xf32, #tpu.memory_space<vmem>>, vector<256x128xf32>
    %cst_92 = arith.constant dense<0.000000e+00> : vector<2x128xf32>
    %206 = tpu.matmul %204, %205, %cst_92 {dimension_numbers = #tpu.dot_dimension_numbers<[1], [0], [0], [1], [0, 0, 1, 1], [], []>} : vector<2x256xf32>, vector<256x128xf32>, vector<2x128xf32> -> vector<2x128xf32>
    %c7 = arith.constant 7 : index
    %c0_93 = arith.constant 0 : index
    %207 = vector.load %arg3[%c7, %c0_93] : memref<8x256xf32, #tpu.memory_space<vmem>>, vector<1x128xf32>
    %208 = vector.broadcast %207 : vector<1x128xf32> to vector<2x128xf32>
    %209 = arith.addf %206, %208 : vector<2x128xf32>
    %c0_94 = arith.constant 0 : index
    %c0_95 = arith.constant 0 : index
    %210 = vector.load %arg4[%c0_94, %c0_95] : memref<2x128xf32, #tpu.memory_space<vmem>>, vector<2x128xf32>
    tpu.vector_store %arg4[%c0_94, %c0_95], %209 {strides = array<i32>} : memref<2x128xf32, #tpu.memory_space<vmem>>, vector<2x128xf32>,
    return
  }
}

</mosaic_0001>

<bundles_post_ra>
// kernel: dqn_forward.1
= control target key start
LH: loop header
LB: loop body
LE: loop exit
PB: predicated region body
PF: predicated region fallthrough
CT: control target
= control target key end

     0   :  { %v6003_v3 = vmov 0.0|0.0   ;;  %s8870_s0 = inlined_call_operand.vmem [shape: f32[168,256], index: 0, kind: input, shape index: {}]   ;;  %s8871_s1 = inlined_call_operand.vmem [shape: f32[416,168], index: 1, kind: input, shape index: {}]   ;;  %s8872_s2 = inlined_call_operand.vmem [shape: f32[3584,256], index: 2, kind: input, shape index: {}]   ;;  %s8873_s3 = inlined_call_operand.vmem [shape: f32[8,256], index: 3, kind: input, shape index: {}]   ;;  %s8874_s4 = inlined_call_operand.hbm [shape: f32[2,128], index: 4, kind: output, shape index: {}]  }
   0x1   :  { %v18_v0 = vld [vmem:[%s8872_s2 + $0x1800] sm:$0xff]  ;;  %v19_v1 = vld [vmem:[%s8872_s2 + $0x1810] sm:$0xff]  ;;  %5059 = vmatprep.subr.bf16.mxu0 %v6003_v3  ;;  %5781 = vmatprep.subr.bf16.mxu1 %v6003_v3  ;;  %v51_v12 = vld [vmem:[%s8870_s0 + $0x8] sm:$0xff] }
   0x2   :  { %v20_v2 = vld [vmem:[%s8872_s2 + $0x1820] sm:$0xff]  ;;  %v5060_v4 = vpack.c.bf16 %v19_v1, %v18_v0  ;;  %v21_v5 = vld [vmem:[%s8872_s2 + $0x1830] sm:$0xff]  ;;  %156 = vmatprep.mubr.f32.mxu0 %v51_v12  ;;  %v71_v16 = vld [vmem:[%s8870_s0 + $0xa8] sm:$0xff] }
   0x3   :  { %v5063_v6 = vpack.c.bf16 %v21_v5, %v20_v2  ;;  %v22_v7 = vld [vmem:[%s8872_s2 + $0x1840] sm:$0xff]  ;;  %v23_v8 = vld [vmem:[%s8872_s2 + $0x1850] sm:$0xff]  ;;  %206 = vmatprep.mubr.f32.mxu1 %v71_v16 }
   0x4   :  { %5061 = vmatpush1.bf16.msra.mxu0 %v5060_v4  ;;  %5797 = vmatpush1.bf16.msra.mxu1 %v5060_v4  ;;  %v5066_v9 = vpack.c.bf16 %v23_v8, %v22_v7  ;;  %v24_v10 = vld [vmem:[%s8872_s2 + $0x1860] sm:$0xff]  ;;  %v25_v11 = vld [vmem:[%s8872_s2 + $0x1870] sm:$0xff] }
   0x5   :  { %5062 = vmatprep.subr.bf16.mxu0 %v6003_v3  ;;  %5782 = vmatprep.subr.bf16.mxu1 %v6003_v3  ;;  %v5069_v13 = vpack.c.bf16 %v25_v11, %v24_v10  ;;  %v26_v14 = vld [vmem:[%s8872_s2 + $0x1880] sm:$0xff]  ;;  %v27_v15 = vld [vmem:[%s8872_s2 + $0x1890] sm:$0xff] }
   0x6   :  { %v5072_v17 = vpack.c.bf16 %v27_v15, %v26_v14  ;;  %v28_v18 = vld [vmem:[%s8872_s2 + $0x18a0] sm:$0xff]  ;;  %v29_v19 = vld [vmem:[%s8872_s2 + $0x18b0] sm:$0xff] }
   0x7   :  { %v5075_v20 = vpack.c.bf16 %v29_v19, %v28_v18  ;;  %v30_v21 = vld [vmem:[%s8872_s2 + $0x18c0] sm:$0xff]  ;;  %v31_v22 = vld [vmem:[%s8872_s2 + $0x18d0] sm:$0xff] }
   0x8   :  { %5064 = vmatpush1.bf16.msra.mxu0 %v5063_v6  ;;  %5798 = vmatpush1.bf16.msra.mxu1 %v5063_v6  ;;  %v5078_v23 = vpack.c.bf16 %v31_v22, %v30_v21  ;;  %v32_v24 = vld [vmem:[%s8872_s2 + $0x18e0] sm:$0xff]  ;;  %v33_v25 = vld [vmem:[%s8872_s2 + $0x18f0] sm:$0xff] }
   0x9   :  { %5065 = vmatprep.subr.bf16.mxu0 %v6003_v3  ;;  %5783 = vmatprep.subr.bf16.mxu1 %v6003_v3 }
   0xc   :  { %5067 = vmatpush1.bf16.msra.mxu0 %v5066_v9  ;;  %5799 = vmatpush1.bf16.msra.mxu1 %v5066_v9 }
   0xd   :  { %5068 = vmatprep.subr.bf16.mxu0 %v6003_v3  ;;  %5784 = vmatprep.subr.bf16.mxu1 %v6003_v3 }
  0x10   :  { %5070 = vmatpush1.bf16.msra.mxu0 %v5069_v13  ;;  %5800 = vmatpush1.bf16.msra.mxu1 %v5069_v13 }
  0x11   :  { %5071 = vmatprep.subr.bf16.mxu0 %v6003_v3  ;;  %5785 = vmatprep.subr.bf16.mxu1 %v6003_v3 }
  0x14   :  { %5073 = vmatpush1.bf16.msra.mxu0 %v5072_v17  ;;  %5801 = vmatpush1.bf16.msra.mxu1 %v5072_v17 }
  0x15   :  { %5074 = vmatprep.subr.bf16.mxu0 %v6003_v3  ;;  %5786 = vmatprep.subr.bf16.mxu1 %v6003_v3 }
  0x18   :  { %5076 = vmatpush1.bf16.msra.mxu0 %v5075_v20  ;;  %5802 = vmatpush1.bf16.msra.mxu1 %v5075_v20 }
  0x19   :  { %5077 = vmatprep.subr.bf16.mxu0 %v6003_v3  ;;  %5787 = vmatprep.subr.bf16.mxu1 %v6003_v3 }
  0x1a   :  { %9 = vsyncpa [#allocation3], 0  ;;  %v5081_v26 = vpack.c.bf16 %v33_v25, %v32_v24  ;;  %v34_v27 = vld [vmem:[%s8872_s2 + $0x1900] sm:$0xff]  ;;  %v35_v28 = vld [vmem:[%s8872_s2 + $0x1910] sm:$0xff]  ;;  %vm629_vm0 = vcmask 326656   ;;  %s6006_s5 = smov [#allocation2]  }
  0x1b   :  { %v5084_v29 = vpack.c.bf16 %v35_v28, %v34_v27  ;;  %v36_v30 = vld [vmem:[%s8872_s2 + $0x1920] sm:$0xff]  ;;  %v37_v31 = vld [vmem:[%s8872_s2 + $0x1930] sm:$0xff]  ;;  %v53_v53 = vld [vmem:[%s8870_s0 + $0x18] sm:$0xff]  ;;  %s3749_s6 = sshll.u32 %s6006_s5, 4  ;;  %s3750_s6 = int_to_ptr.vmem [resolvable:$true] %s3749_s6 }
  0x1c   :  { %5079 = vmatpush1.bf16.msra.mxu0 %v5078_v23  ;;  %5803 = vmatpush1.bf16.msra.mxu1 %v5078_v23  ;;  %v5087_v32 = vpack.c.bf16 %v37_v31, %v36_v30  ;;  %v38_v33 = vld [vmem:[%s8872_s2 + $0x1940] sm:$0xff]  ;;  %v39_v34 = vld [vmem:[%s8872_s2 + $0x1950] sm:$0xff]  ;;  %v73_v54 = vld [vmem:[%s8870_s0 + $0xb8] sm:$0xff]  ;;  %p5984_p1 = scmp.lt.s32.totalorder %s3750_s6, %s3750_s6 }
  0x1d   :  { %5080 = vmatprep.subr.bf16.mxu0 %v6003_v3  ;;  %5788 = vmatprep.subr.bf16.mxu1 %v6003_v3  ;;  %v5090_v35 = vpack.c.bf16 %v39_v34, %v38_v33  ;;  %v40_v36 = vld [vmem:[%s8872_s2 + $0x1960] sm:$0xff]  ;;  %v41_v37 = vld [vmem:[%s8872_s2 + $0x1970] sm:$0xff]  ;;  %v55_v57 = vld [vmem:[%s8870_s0 + $0x28] sm:$0xff] }
  0x1e   :  { %v5093_v38 = vpack.c.bf16 %v41_v37, %v40_v36  ;;  %v42_v39 = vld [vmem:[%s8872_s2 + $0x1980] sm:$0xff]  ;;  %v43_v40 = vld [vmem:[%s8872_s2 + $0x1990] sm:$0xff]  ;;  %v75_v58 = vld [vmem:[%s8870_s0 + $0xc8] sm:$0xff] }
  0x1f   :  { %v5096_v41 = vpack.c.bf16 %v43_v40, %v42_v39  ;;  %v44_v42 = vld [vmem:[%s8872_s2 + $0x19a0] sm:$0xff]  ;;  %v45_v43 = vld [vmem:[%s8872_s2 + $0x19b0] sm:$0xff]  ;;  %v57_v61 = vld [vmem:[%s8870_s0 + $0x38] sm:$0xff] }
  0x20   :  { %5082 = vmatpush1.bf16.msra.mxu0 %v5081_v26  ;;  %5804 = vmatpush1.bf16.msra.mxu1 %v5081_v26  ;;  %v5099_v44 = vpack.c.bf16 %v45_v43, %v44_v42  ;;  %v46_v45 = vld [vmem:[%s8872_s2 + $0x19c0] sm:$0xff]  ;;  %v47_v46 = vld [vmem:[%s8872_s2 + $0x19d0] sm:$0xff]  ;;  %v77_v62 = vld [vmem:[%s8870_s0 + $0xd8] sm:$0xff] }
  0x21   :  { %5083 = vmatprep.subr.bf16.mxu0 %v6003_v3  ;;  %5789 = vmatprep.subr.bf16.mxu1 %v6003_v3  ;;  %v5102_v47 = vpack.c.bf16 %v47_v46, %v46_v45  ;;  %v48_v48 = vld [vmem:[%s8872_s2 + $0x19e0] sm:$0xff]  ;;  %v49_v49 = vld [vmem:[%s8872_s2 + $0x19f0] sm:$0xff]  ;;  %v59_v1 = vld [vmem:[%s8870_s0 + $0x48] sm:$0xff] }
  0x22   :  { %v5105_v50 = vpack.c.bf16 %v49_v49, %v48_v48  ;;  %v50_v51 = vld [vmem:[%s8870_s0] sm:$0xff]  ;;  %v52_v55 = vld [vmem:[%s8870_s0 + $0x10] sm:$0xff]  ;;  %v79_v2 = vld [vmem:[%s8870_s0 + $0xe8] sm:$0xff] }
  0x23   :  { %v70_v52 = vld [vmem:[%s8870_s0 + $0xa0] sm:$0xff]  ;;  %v72_v56 = vld [vmem:[%s8870_s0 + $0xb0] sm:$0xff]  ;;  %v61_v6 = vld [vmem:[%s8870_s0 + $0x58] sm:$0xff] }
  0x24   :  { %5085 = vmatpush1.bf16.msra.mxu0 %v5084_v29  ;;  %5805 = vmatpush1.bf16.msra.mxu1 %v5084_v29  ;;  %v54_v59 = vld [vmem:[%s8870_s0 + $0x20] sm:$0xff]  ;;  %v56_v63 = vld [vmem:[%s8870_s0 + $0x30] sm:$0xff]  ;;  %v81_v7 = vld [vmem:[%s8870_s0 + $0xf8] sm:$0xff] }
  0x25   :  { %5086 = vmatprep.subr.bf16.mxu0 %v6003_v3  ;;  %5790 = vmatprep.subr.bf16.mxu1 %v6003_v3  ;;  %v74_v60 = vld [vmem:[%s8870_s0 + $0xc0] sm:$0xff]  ;;  %v76_v0 = vld [vmem:[%s8870_s0 + $0xd0] sm:$0xff]  ;;  %v63_v10 = vld [vmem:[%s8870_s0 + $0x68] sm:$0xff] }
  0x26   :  { %v58_v4 = vld [vmem:[%s8870_s0 + $0x40] sm:$0xff]  ;;  %v60_v8 = vld [vmem:[%s8870_s0 + $0x50] sm:$0xff]  ;;  %v83_v11 = vld [vmem:[%s8870_s0 + $0x108] sm:$0xff] }
  0x27   :  { %v78_v5 = vld [vmem:[%s8870_s0 + $0xe0] sm:$0xff]  ;;  %v80_v9 = vld [vmem:[%s8870_s0 + $0xf0] sm:$0xff]  ;;  %v65_v14 = vld [vmem:[%s8870_s0 + $0x78] sm:$0xff] }
  0x28   :  { %5088 = vmatpush1.bf16.msra.mxu0 %v5087_v32  ;;  %5806 = vmatpush1.bf16.msra.mxu1 %v5087_v32  ;;  %v62_v12 = vld [vmem:[%s8870_s0 + $0x60] sm:$0xff]  ;;  %v85_v15 = vld [vmem:[%s8870_s0 + $0x118] sm:$0xff]  ;;  %v64_v16 = vld [vmem:[%s8870_s0 + $0x70] sm:$0xff] }
  0x29   :  { %5089 = vmatprep.subr.bf16.mxu0 %v6003_v3  ;;  %5791 = vmatprep.subr.bf16.mxu1 %v6003_v3  ;;  %v82_v13 = vld [vmem:[%s8870_s0 + $0x100] sm:$0xff]  ;;  %v84_v17 = vld [vmem:[%s8870_s0 + $0x110] sm:$0xff]  ;;  %v67_v18 = vld [vmem:[%s8870_s0 + $0x88] sm:$0xff] }
  0x2a   :  { %v87_v19 = vld [vmem:[%s8870_s0 + $0x128] sm:$0xff]  ;;  %v66_v20 = vld [vmem:[%s8870_s0 + $0x80] sm:$0xff]  ;;  %v69_v22 = vld [vmem:[%s8870_s0 + $0x98] sm:$0xff] }
  0x2b   :  { %v86_v21 = vld [vmem:[%s8870_s0 + $0x120] sm:$0xff]  ;;  %v89_v23 = vld [vmem:[%s8870_s0 + $0x138] sm:$0xff]  ;;  %v68_v24 = vld [vmem:[%s8870_s0 + $0x90] sm:$0xff] }
  0x2c   :  { %5091 = vmatpush1.bf16.msra.mxu0 %v5090_v35  ;;  %5807 = vmatpush1.bf16.msra.mxu1 %v5090_v35  ;;  %v88_v25 = vld [vmem:[%s8870_s0 + $0x130] sm:$0xff]  ;;  %v91_v26 = vld [vmem:[%s8870_s0 + $0x148] sm:$0xff]  ;;  %v90_v27 = vld [vmem:[%s8870_s0 + $0x140] sm:$0xff]  ;;  %s5979_s0 = scalar_lea.vmem %s3750_s6, 32 }
  0x2d   :  { %5092 = vmatprep.subr.bf16.mxu0 %v6003_v3  ;;  %5792 = vmatprep.subr.bf16.mxu1 %v6003_v3  ;;  %p5980_p0 = scmp.ne.s32.totalorder %s3750_s6, %s5979_s0  ;;  %p5985_p2 = scmp.lt.s32.totalorder %s5979_s0, %s5979_s0 }
  0x2f   :  { %p5986_p3 = por %p5985_p2, %p5984_p1 }
  0x30   :  { %5094 = vmatpush1.bf16.msra.mxu0 %v5093_v38  ;;  %5808 = vmatpush1.bf16.msra.mxu1 %v5093_v38 }
  0x31   :  { %5095 = vmatprep.subr.bf16.mxu0 %v6003_v3  ;;  %5793 = vmatprep.subr.bf16.mxu1 %v6003_v3  ;;  %p5987_p4 = pnand %p5986_p3, %p5980_p0 }
  0x34   :  { %5097 = vmatpush1.bf16.msra.mxu0 %v5096_v41  ;;  %5809 = vmatpush1.bf16.msra.mxu1 %v5096_v41 }
  0x35   :  { %5098 = vmatprep.subr.bf16.mxu0 %v6003_v3  ;;  %5794 = vmatprep.subr.bf16.mxu1 %v6003_v3 }
  0x38   :  { %5100 = vmatpush1.bf16.msra.mxu0 %v5099_v44  ;;  %5810 = vmatpush1.bf16.msra.mxu1 %v5099_v44 }
  0x39   :  { %5101 = vmatprep.subr.bf16.mxu0 %v6003_v3  ;;  %5795 = vmatprep.subr.bf16.mxu1 %v6003_v3 }
  0x3c   :  { %5103 = vmatpush1.bf16.msra.mxu0 %v5102_v47  ;;  %5811 = vmatpush1.bf16.msra.mxu1 %v5102_v47 }
  0x3d   :  { %5104 = vmatprep.subr.bf16.mxu0 %v6003_v3  ;;  %5796 = vmatprep.subr.bf16.mxu1 %v6003_v3 }
  0x40   :  { %5106 = vmatpush1.bf16.msra.mxu0 %v5105_v50  ;;  %5812 = vmatpush1.bf16.msra.mxu1 %v5105_v50 }
  0x41   :  { %5107 = vmatprep.subr.bf16.mxu1 %v6003_v3  ;;  %5137 = vmatprep.subr.bf16.mxu0 %v6003_v3 }
  0x43   :  { %157 = vmatmul.mubr.f32.vlgmr.msra.gmra.mrb[0].mxu0 %v50_v51  ;;  %207 = vmatmul.mubr.f32.vlgmr.msra.gmra.mrb[0].mxu1 %v70_v52 }
  0x44   :  { %161 = vmatprep.mubr.f32.mxu0 %v53_v53  ;;  %211 = vmatprep.mubr.f32.mxu1 %v73_v54 }
  0x47   :  { %162 = vmatmul.mubr.f32.gmra.mrb[2].mxu0 %v52_v55  ;;  %212 = vmatmul.mubr.f32.gmra.mrb[2].mxu1 %v72_v56 }
  0x48   :  { %166 = vmatprep.mubr.f32.mxu0 %v55_v57  ;;  %216 = vmatprep.mubr.f32.mxu1 %v75_v58 }
  0x4b   :  { %167 = vmatmul.mubr.f32.gmra.mrb[4].mxu0 %v54_v59  ;;  %217 = vmatmul.mubr.f32.gmra.mrb[4].mxu1 %v74_v60 }
  0x4c   :  { %171 = vmatprep.mubr.f32.mxu0 %v57_v61  ;;  %221 = vmatprep.mubr.f32.mxu1 %v77_v62 }
  0x4f   :  { %172 = vmatmul.mubr.f32.gmra.mrb[6].mxu0 %v56_v63  ;;  %222 = vmatmul.mubr.f32.gmra.mrb[6].mxu1 %v76_v0 }
  0x50   :  { %176 = vmatprep.mubr.f32.mxu0 %v59_v1  ;;  %226 = vmatprep.mubr.f32.mxu1 %v79_v2 }
  0x53   :  { %177 = vmatmul.mubr.f32.gmra.mrb[8].mxu0 %v58_v4  ;;  %227 = vmatmul.mubr.f32.gmra.mrb[8].mxu1 %v78_v5 }
  0x54   :  { %181 = vmatprep.mubr.f32.mxu0 %v61_v6  ;;  %231 = vmatprep.mubr.f32.mxu1 %v81_v7 }
  0x57   :  { %182 = vmatmul.mubr.f32.gmra.mrb[10].mxu0 %v60_v8  ;;  %232 = vmatmul.mubr.f32.gmra.mrb[10].mxu1 %v80_v9 }
  0x58   :  { %186 = vmatprep.mubr.f32.mxu0 %v63_v10  ;;  %236 = vmatprep.mubr.f32.mxu1 %v83_v11 }
  0x5b   :  { %187 = vmatmul.mubr.f32.gmra.mrb[12].mxu0 %v62_v12  ;;  %237 = vmatmul.mubr.f32.gmra.mrb[12].mxu1 %v82_v13 }
  0x5c   :  { %191 = vmatprep.mubr.f32.mxu0 %v65_v14  ;;  %241 = vmatprep.mubr.f32.mxu1 %v85_v15 }
  0x5f   :  { %192 = vmatmul.mubr.f32.gmra.mrb[14].mxu0 %v64_v16  ;;  %242 = vmatmul.mubr.f32.gmra.mrb[14].mxu1 %v84_v17 }
  0x60   :  { %196 = vmatprep.mubr.f32.mxu0 %v67_v18  ;;  %246 = vmatprep.mubr.f32.mxu1 %v87_v19  ;;  %v534_v18 = vld [vmem:[%s8871_s1 + $0x8] sm:$0xff] }
  0x63   :  { %197 = vmatmul.mubr.f32.gmra.mrb[16].mxu0 %v66_v20  ;;  %247 = vmatmul.mubr.f32.gmra.mrb[16].mxu1 %v86_v21 }
  0x64   :  { %201 = vmatprep.mubr.f32.mxu0 %v69_v22  ;;  %251 = vmatprep.mubr.f32.mxu1 %v89_v23 }
  0x67   :  { %202 = vmatmul.mubr.f32.gmra.mrb[18].mxu0 %v68_v24  ;;  %252 = vmatmul.mubr.f32.gmra.mrb[18].mxu1 %v88_v25 }
  0x68   :  { %256 = vmatprep.mubr.f32.mxu1 %v91_v26 }
  0x6b   :  { %257 = vmatmul.mubr.f32.gmra.mrb[20].mxu1 %v90_v27 }
  0x6c   :  { %3778 = vmatprep.mubr.msk.f32.mxu1 %vm629_vm0, %v534_v18 }
 0x116   :  { %v6288_v28 = vpop.f32.mrb[0].mxu0  ;;  %v6290_v29 = vpop.f32.mrb[0].mxu1 }
 0x117   :  { %v160_v30 = vpop.f32.mrb[1].mxu0  ;;  %v210_v31 = vpop.f32.mrb[1].mxu1  ;;  %v290_v34 = vmul.f32 %v6288_v28, %v6288_v28 }
 0x11a   :  { %v6292_v32 = vpop.f32.mrb[2].mxu0  ;;  %v6294_v33 = vpop.f32.mrb[2].mxu1 }
 0x11b   :  { %v264_v35 = vadd.f32 %v6292_v32, %v6288_v28  ;;  %v291_v36 = vmul.f32 %v6292_v32, %v6292_v32  ;;  %v165_v37 = vpop.f32.mrb[3].mxu0  ;;  %v215_v38 = vpop.f32.mrb[3].mxu1 }
 0x11c   :  { %v300_v37 = vmul.f32 %v6290_v29, %v6290_v29 }
 0x11d   :  { %v311_v39 = vadd.f32 %v291_v36, %v290_v34 }
 0x11e   :  { %v6302_v40 = vpop.f32.mrb[4].mxu0  ;;  %v6304_v41 = vpop.f32.mrb[4].mxu1 }
 0x11f   :  { %v265_v42 = vadd.f32 %v264_v35, %v6302_v40  ;;  %v292_v43 = vmul.f32 %v6302_v40, %v6302_v40  ;;  %v170_v44 = vpop.f32.mrb[5].mxu0  ;;  %v220_v45 = vpop.f32.mrb[5].mxu1 }
 0x121   :  { %v312_v46 = vadd.f32 %v311_v39, %v292_v43  ;;  %v301_v43 = vmul.f32 %v6294_v33, %v6294_v33 }
 0x122   :  { %v6309_v47 = vpop.f32.mrb[6].mxu0  ;;  %v6311_v48 = vpop.f32.mrb[6].mxu1 }
 0x123   :  { %v266_v49 = vadd.f32 %v265_v42, %v6309_v47  ;;  %v293_v50 = vmul.f32 %v6309_v47, %v6309_v47  ;;  %v175_v51 = vpop.f32.mrb[7].mxu0  ;;  %v225_v52 = vpop.f32.mrb[7].mxu1 }
 0x124   :  { %v303_v52 = vmul.f32 %v6311_v48, %v6311_v48 }
 0x125   :  { %v313_v53 = vadd.f32 %v312_v46, %v293_v50 }
 0x126   :  { %v6316_v54 = vpop.f32.mrb[8].mxu0  ;;  %v6318_v55 = vpop.f32.mrb[8].mxu1 }
 0x127   :  { %v267_v56 = vadd.f32 %v266_v49, %v6316_v54  ;;  %v294_v57 = vmul.f32 %v6316_v54, %v6316_v54  ;;  %v180_v58 = vpop.f32.mrb[9].mxu0  ;;  %v230_v59 = vpop.f32.mrb[9].mxu1  ;;  %v302_v49 = vmul.f32 %v6304_v41, %v6304_v41 }
 0x129   :  { %v314_v60 = vadd.f32 %v313_v53, %v294_v57  ;;  %v304_v57 = vmul.f32 %v6318_v55, %v6318_v55 }
 0x12a   :  { %v6323_v61 = vpop.f32.mrb[10].mxu0  ;;  %v6325_v62 = vpop.f32.mrb[10].mxu1 }
 0x12b   :  { %v268_v63 = vadd.f32 %v267_v56, %v6323_v61  ;;  %v295_v0 = vmul.f32 %v6323_v61, %v6323_v61  ;;  %v185_v1 = vpop.f32.mrb[11].mxu0  ;;  %v235_v2 = vpop.f32.mrb[11].mxu1 }
 0x12d   :  { %v315_v4 = vadd.f32 %v314_v60, %v295_v0 }
 0x12e   :  { %v6330_v5 = vpop.f32.mrb[12].mxu0  ;;  %v6332_v6 = vpop.f32.mrb[12].mxu1 }
 0x12f   :  { %v269_v7 = vadd.f32 %v268_v63, %v6330_v5  ;;  %v296_v8 = vmul.f32 %v6330_v5, %v6330_v5  ;;  %v190_v9 = vpop.f32.mrb[13].mxu0  ;;  %v240_v10 = vpop.f32.mrb[13].mxu1  ;;  %v305_v63 = vmul.f32 %v6325_v62, %v6325_v62 }
 0x131   :  { %v316_v11 = vadd.f32 %v315_v4, %v296_v8  ;;  %v306_v4 = vmul.f32 %v6332_v6, %v6332_v6 }
 0x132   :  { %v6337_v12 = vpop.f32.mrb[14].mxu0  ;;  %v6339_v13 = vpop.f32.mrb[14].mxu1 }
 0x133   :  { %v270_v14 = vadd.f32 %v269_v7, %v6337_v12  ;;  %v297_v15 = vmul.f32 %v6337_v12, %v6337_v12  ;;  %v195_v16 = vpop.f32.mrb[15].mxu0  ;;  %v245_v17 = vpop.f32.mrb[15].mxu1  ;;  %v307_v9 = vmul.f32 %v6339_v13, %v6339_v13 }
 0x135   :  { %v317_v19 = vadd.f32 %v316_v11, %v297_v15 }
 0x136   :  { %v6348_v20 = vpop.f32.mrb[16].mxu0  ;;  %v6350_v21 = vpop.f32.mrb[16].mxu1 }
 0x137   :  { %v271_v22 = vadd.f32 %v270_v14, %v6348_v20  ;;  %v298_v23 = vmul.f32 %v6348_v20, %v6348_v20  ;;  %v200_v24 = vpop.f32.mrb[17].mxu0  ;;  %v250_v25 = vpop.f32.mrb[17].mxu1  ;;  %v308_v14 = vmul.f32 %v6350_v21, %v6350_v21 }
 0x139   :  { %v318_v26 = vadd.f32 %v317_v19, %v298_v23 }
 0x13a   :  { %v6355_v27 = vpop.f32.mrb[18].mxu0  ;;  %v6357_v30 = vpop.f32.mrb[18].mxu1 }
 0x13b   :  { %v272_v31 = vadd.f32 %v271_v22, %v6355_v27  ;;  %v299_v34 = vmul.f32 %v6355_v27, %v6355_v27  ;;  %v205_v35 = vpop.f32.mrb[19].mxu0  ;;  %v255_v36 = vpop.f32.mrb[19].mxu1  ;;  %v309_v17 = vmul.f32 %v6357_v30, %v6357_v30 }
 0x13d   :  { %v273_v38 = vadd.f32 %v272_v31, %v6290_v29  ;;  %v319_v39 = vadd.f32 %v318_v26, %v299_v34 }
 0x13e   :  { %v6365_v42 = vpop.f32.mrb[20].mxu1 }
 0x13f   :  { %v274_v44 = vadd.f32 %v273_v38, %v6294_v33  ;;  %v320_v45 = vadd.f32 %v319_v39, %v300_v37  ;;  %v260_v46 = vpop.f32.mrb[21].mxu1  ;;  %v310_v18 = vmul.f32 %v6365_v42, %v6365_v42 }
 0x141   :  { %v321_v50 = vadd.f32 %v320_v45, %v301_v43  ;;  %v275_v51 = vadd.f32 %v274_v44, %v6304_v41 }
 0x143   :  { %v276_v53 = vadd.f32 %v275_v51, %v6311_v48  ;;  %v322_v56 = vadd.f32 %v321_v50, %v302_v49 }
 0x145   :  { %v277_v58 = vadd.f32 %v276_v53, %v6318_v55  ;;  %v323_v59 = vadd.f32 %v322_v56, %v303_v52 }
 0x147   :  { %v278_v60 = vadd.f32 %v277_v58, %v6325_v62  ;;  %v324_v0 = vadd.f32 %v323_v59, %v304_v57 }
 0x149   :  { %v325_v1 = vadd.f32 %v324_v0, %v305_v63  ;;  %v279_v2 = vadd.f32 %v278_v60, %v6332_v6 }
 0x14b   :  { %v326_v7 = vadd.f32 %v325_v1, %v306_v4  ;;  %v280_v8 = vadd.f32 %v279_v2, %v6339_v13 }
 0x14d   :  { %v327_v10 = vadd.f32 %v326_v7, %v307_v9  ;;  %v281_v11 = vadd.f32 %v280_v8, %v6350_v21 }
 0x14f   :  { %v328_v15 = vadd.f32 %v327_v10, %v308_v14  ;;  %v282_v16 = vadd.f32 %v281_v11, %v6357_v30  ;;  %v6457_v10 = vld [vmem:[%s8873_s3 + $0x1] ss:$0 sm:$0xff] }
 0x151   :  { %v329_v19 = vadd.f32 %v328_v15, %v309_v17  ;;  %v283_v22 = vadd.f32 %v282_v16, %v6365_v42 }
 0x153   :  { %v284_v23 = vrot.slane %v283_v22, 4  ;;  %v330_v24 = vadd.f32 %v329_v19, %v310_v18 }
 0x155   :  { %v285_v25 = vadd.f32 %v284_v23, %v283_v22  ;;  %v331_v26 = vrot.slane %v330_v24, 4 }
 0x157   :  { %v286_v31 = vrot.slane %v285_v25, 2  ;;  %v332_v34 = vadd.f32 %v331_v26, %v330_v24 }
 0x159   :  { %v287_v35 = vadd.f32 %v286_v31, %v285_v25  ;;  %v333_v36 = vrot.slane %v332_v34, 2 }
 0x15b   :  { %v288_v37 = vrot.slane %v287_v35, 1  ;;  %v334_v38 = vadd.f32 %v333_v36, %v332_v34 }
 0x15d   :  { %v289_v39 = vadd.f32 %v288_v37, %v287_v35  ;;  %v335_v43 = vrot.slane %v334_v38, 1 }
 0x15f   :  { %v336_v44 = vadd.f32 %v335_v43, %v334_v38  ;;  %v6397_v45 = vmul.f32 0.0061728396, %v289_v39 }
 0x161   :  { %v338_v46 = vmul.f32 0.0061728396, %v336_v44  ;;  %v339_v49 = vmul.f32 %v6397_v45, %v6397_v45  ;;  %v362_v50 = vsub.f32 %v6365_v42, %v6397_v45  ;;  %v342_v51 = vsub.f32 %v6288_v28, %v6397_v45 }
 0x162   :  { %v343_v52 = vsub.f32 %v6292_v32, %v6397_v45  ;;  %v344_v53 = vsub.f32 %v6302_v40, %v6397_v45  ;;  %v345_v56 = vsub.f32 %v6309_v47, %v6397_v45  ;;  %v346_v57 = vsub.f32 %v6316_v54, %v6397_v45 }
 0x163   :  { %v340_v58 = vsub.f32 %v338_v46, %v339_v49  ;;  %v347_v59 = vsub.f32 %v6323_v61, %v6397_v45  ;;  %v348_v28 = vsub.f32 %v6330_v5, %v6397_v45  ;;  %v349_v32 = vsub.f32 %v6337_v12, %v6397_v45 }
 0x164   :  { %v350_v40 = vsub.f32 %v6348_v20, %v6397_v45  ;;  %v351_v47 = vsub.f32 %v6355_v27, %v6397_v45  ;;  %v352_v54 = vsub.f32 %v6290_v29, %v6397_v45  ;;  %v353_v60 = vsub.f32 %v6294_v33, %v6397_v45 }
 0x165   :  { %v341_v42 = vmax.f32 %v340_v58, 0.0  ;;  %v354_v63 = vsub.f32 %v6304_v41, %v6397_v45  ;;  %v355_v5 = vsub.f32 %v6311_v48, %v6397_v45  ;;  %v356_v12 = vsub.f32 %v6318_v55, %v6397_v45  ;;  %v262_v48 = vld [vmem:[%s8873_s3] ss:$0 sm:$0xff] }
 0x166   :  { %v357_v20 = vsub.f32 %v6325_v62, %v6397_v45  ;;  %v358_v29 = vsub.f32 %v6332_v6, %v6397_v45  ;;  %v359_v33 = vsub.f32 %v6339_v13, %v6397_v45  ;;  %v360_v27 = vsub.f32 %v6350_v21, %v6397_v45  ;;  %v1095_v62 = vld [vmem:[%s8872_s2 + $0x100] sm:$0xff]  ;;  %v1096_v6 = vld [vmem:[%s8872_s2 + $0x110] sm:$0xff] }
 0x167   :  { %v384_v61 = vadd.f32 1e-05, %v341_v42  ;;  %v361_v41 = vsub.f32 %v6357_v30, %v6397_v45  ;;  %v383_v55 = vmul.f32 %v362_v50, %v262_v48  ;;  %v363_v0 = vmul.f32 %v342_v51, %v262_v48 }
 0x168   :  { %v364_v13 = vmul.f32 %v343_v52, %v262_v48  ;;  %v365_v1 = vmul.f32 %v344_v53, %v262_v48  ;;  %v366_v21 = vmul.f32 %v345_v56, %v262_v48  ;;  %v5138_v2 = vpack.c.bf16 %v1096_v6, %v1095_v62 }
 0x169   :  { %5919 = vrsqrt.f32 %v384_v61  ;;  %v367_v4 = vmul.f32 %v346_v57, %v262_v48  ;;  %v368_v30 = vmul.f32 %v347_v59, %v262_v48  ;;  %v369_v7 = vmul.f32 %v348_v28, %v262_v48 }
 0x16a   :  { %v370_v8 = vmul.f32 %v349_v32, %v262_v48  ;;  %v371_v11 = vmul.f32 %v350_v40, %v262_v48  ;;  %v372_v14 = vmul.f32 %v351_v47, %v262_v48  ;;  %v373_v15 = vmul.f32 %v352_v54, %v262_v48  ;;  %5139 = vmatpush3.bf16.msra.mxu0 %v5138_v2 }
 0x16b   :  { %v374_v16 = vmul.f32 %v353_v60, %v262_v48  ;;  %5140 = vmatprep.subr.bf16.mxu0 %v6003_v3  ;;  %v375_v43 = vmul.f32 %v354_v63, %v262_v48  ;;  %v376_v49 = vmul.f32 %v355_v5, %v262_v48  ;;  %v377_v52 = vmul.f32 %v356_v12, %v262_v48 }
 0x16c   :  { %v378_v53 = vmul.f32 %v357_v20, %v262_v48  ;;  %v379_v57 = vmul.f32 %v358_v29, %v262_v48  ;;  %v6497_v58 = vmul.f32 %v359_v33, %v262_v48  ;;  %v6503_v28 = vmul.f32 %v360_v27, %v262_v48 }
 0x16d   :  { %v6510_v61 = vmul.f32 %v361_v41, %v262_v48 }
 0x173   :  { %v6452_v9 = vpop.eup %5919 }
 0x174   :  { %v6460_v17 = vmul.f32 %v6452_v9, %v383_v55  ;;  %v386_v18 = vmul.f32 %v6452_v9, %v363_v0  ;;  %v387_v19 = vmul.f32 %v6452_v9, %v364_v13  ;;  %v388_v22 = vmul.f32 %v6452_v9, %v365_v1 }
 0x175   :  { %v389_v23 = vmul.f32 %v6452_v9, %v366_v21  ;;  %v390_v24 = vmul.f32 %v6452_v9, %v367_v4  ;;  %v391_v25 = vmul.f32 %v6452_v9, %v368_v30  ;;  %v392_v26 = vmul.f32 %v6452_v9, %v369_v7 }
 0x176   :  { %v6471_v31 = vadd.f32 %v386_v18, %v6457_v10  ;;  %v6474_v34 = vadd.f32 %v387_v19, %v6457_v10  ;;  %v6477_v35 = vadd.f32 %v388_v22, %v6457_v10  ;;  %v393_v36 = vmul.f32 %v6452_v9, %v370_v8 }
 0x177   :  { %v6481_v37 = vadd.f32 %v389_v23, %v6457_v10  ;;  %v6484_v38 = vadd.f32 %v390_v24, %v6457_v10  ;;  %v6487_v39 = vadd.f32 %v391_v25, %v6457_v10  ;;  %v6492_v46 = vadd.f32 %v392_v26, %v6457_v10 }
 0x178   :  { %v449_v44 = vmul.f32 1.442695, %v6471_v31  ;;  %v451_v45 = vmul.f32 1.442695, %v6474_v34  ;;  %v453_v50 = vmul.f32 1.442695, %v6477_v35  ;;  %v6501_v42 = vadd.f32 %v393_v36, %v6457_v10 }
 0x179   :  { %v455_v51 = vmul.f32 1.442695, %v6481_v37  ;;  %v457_v56 = vmul.f32 1.442695, %v6484_v38  ;;  %v459_v59 = vmul.f32 1.442695, %v6487_v39  ;;  %v394_v40 = vmul.f32 %v6452_v9, %v371_v11 }
 0x17a   :  { %5921 = vpow2.f32 %v449_v44  ;;  %v461_v32 = vmul.f32 1.442695, %v6492_v46  ;;  %v395_v47 = vmul.f32 %v6452_v9, %v372_v14  ;;  %v463_v54 = vmul.f32 1.442695, %v6501_v42 }
 0x17b   :  { %5923 = vpow2.f32 %v451_v45  ;;  %v396_v60 = vmul.f32 %v6452_v9, %v373_v15  ;;  %vm428_vm1 = vcmp.gt.f32.partialorder %v6471_v31, 0.0  ;;  %v6514_v63 = vadd.f32 %v394_v40, %v6457_v10 }
 0x17c   :  { %5925 = vpow2.f32 %v453_v50  ;;  %v6517_v5 = vadd.f32 %v395_v47, %v6457_v10  ;;  %v397_v12 = vmul.f32 %v6452_v9, %v374_v16  ;;  %v398_v29 = vmul.f32 %v6452_v9, %v375_v43 }
 0x17d   :  { %5927 = vpow2.f32 %v455_v51  ;;  %v6521_v20 = vadd.f32 %v396_v60, %v6457_v10  ;;  %v399_v33 = vmul.f32 %v6452_v9, %v376_v49  ;;  %vm429_vm2 = vcmp.gt.f32.partialorder %v6474_v34, 0.0 }
 0x17e   :  { %5929 = vpow2.f32 %v457_v56  ;;  %vm430_vm3 = vcmp.gt.f32.partialorder %v6477_v35, 0.0  ;;  %v465_v27 = vmul.f32 1.442695, %v6514_v63  ;;  %vm431_vm4 = vcmp.gt.f32.partialorder %v6481_v37, 0.0 }
 0x17f   :  { %5931 = vpow2.f32 %v459_v59  ;;  %v467_v41 = vmul.f32 1.442695, %v6517_v5  ;;  %v6531_v48 = vadd.f32 %v397_v12, %v6457_v10  ;;  %v469_v55 = vmul.f32 1.442695, %v6521_v20 }
 0x180   :  { %5933 = vpow2.f32 %v461_v32  ;;  %v6535_v0 = vadd.f32 %v398_v29, %v6457_v10  ;;  %v6538_v62 = vadd.f32 %v399_v33, %v6457_v10  ;;  %vm432_vm5 = vcmp.gt.f32.partialorder %v6484_v38, 0.0 }
 0x181   :  { %5935 = vpow2.f32 %v463_v54  ;;  %v471_v6 = vmul.f32 1.442695, %v6531_v48  ;;  %v400_v13 = vmul.f32 %v6452_v9, %v377_v52  ;;  %vm433_vm6 = vcmp.gt.f32.partialorder %v6487_v39, 0.0 }
 0x182   :  { %5937 = vpow2.f32 %v465_v27  ;;  %vm434_vm7 = vcmp.gt.f32.partialorder %v6492_v46, 0.0  ;;  %v473_v21 = vmul.f32 1.442695, %v6535_v0  ;;  %vm435_vm8 = vcmp.gt.f32.partialorder %v6501_v42, 0.0 }
 0x183   :  { %5939 = vpow2.f32 %v467_v41  ;;  %v475_v30 = vmul.f32 1.442695, %v6538_v62  ;;  %v401_v7 = vmul.f32 %v6452_v9, %v378_v53  ;;  %vm436_vm9 = vcmp.gt.f32.partialorder %v6514_v63, 0.0 }
 0x184   :  { %v5922_v1 = vpop.eup %5921  ;;  %5941 = vpow2.f32 %v469_v55  ;;  %v6551_v14 = vadd.f32 %v400_v13, %v6457_v10  ;;  %v402_v15 = vmul.f32 %v6452_v9, %v379_v57  ;;  %vm437_vm10 = vcmp.gt.f32.partialorder %v6517_v5, 0.0 }
 0x185   :  { %v5924_v2 = vpop.eup %5923  ;;  %v3757_v4 = vadd.f32 -1.0, %v5922_v1  ;;  %5943 = vpow2.f32 %v471_v6  ;;  %v6558_v22 = vadd.f32 %v401_v7, %v6457_v10  ;;  %vm438_vm11 = vcmp.gt.f32.partialorder %v6521_v20, 0.0 }
 0x186   :  { %v5926_v8 = vpop.eup %5925  ;;  %v3758_v11 = vadd.f32 -1.0, %v5924_v2  ;;  %5945 = vpow2.f32 %v473_v21  ;;  %v477_v26 = vmul.f32 1.442695, %v6551_v14  ;;  %v403_v56 = vmul.f32 %v6452_v9, %v6497_v58 }
 0x187   :  { %v5928_v16 = vpop.eup %5927  ;;  %v512_v18 = vsel %vm428_vm1, %v6471_v31, %v3757_v4  ;;  %v3759_v19 = vadd.f32 -1.0, %v5926_v8  ;;  %5947 = vpow2.f32 %v475_v30  ;;  %v479_v50 = vmul.f32 1.442695, %v6558_v22  ;;  %v1097_v30 = vld [vmem:[%s8872_s2 + $0x120] sm:$0xff] }
 0x188   :  { %v5930_v23 = vpop.eup %5929  ;;  %v513_v24 = vsel %vm429_vm2, %v6474_v34, %v3758_v11  ;;  %v3760_v25 = vadd.f32 -1.0, %v5928_v16  ;;  %5949 = vpow2.f32 %v477_v26  ;;  %v6583_v32 = vadd.f32 %v402_v15, %v6457_v10  ;;  %v1100_v16 = vld [vmem:[%s8872_s2 + $0x150] sm:$0xff] }
 0x189   :  { %v5932_v36 = vpop.eup %5931  ;;  %v5108_v43 = vpack.c.bf16 %v513_v24, %v512_v18  ;;  %v514_v31 = vsel %vm430_vm3, %v6477_v35, %v3759_v19  ;;  %v3761_v44 = vadd.f32 -1.0, %v5930_v23  ;;  %5951 = vpow2.f32 %v479_v50 }
 0x18a   :  { %v5934_v45 = vpop.eup %5933  ;;  %v515_v49 = vsel %vm431_vm4, %v6481_v37, %v3760_v25  ;;  %v3762_v34 = vadd.f32 -1.0, %v5932_v36  ;;  %v6589_v58 = vadd.f32 %v403_v56, %v6457_v10  ;;  %vm439_vm12 = vcmp.gt.f32.partialorder %v6531_v48, 0.0 }
 0x18b   :  { %v5936_v51 = vpop.eup %5935  ;;  %5109 = vmatpush1.bf16.msra.mxu1 %v5108_v43  ;;  %v5111_v52 = vpack.c.bf16 %v515_v49, %v514_v31  ;;  %v516_v53 = vsel %vm432_vm5, %v6484_v38, %v3761_v44  ;;  %v3763_v35 = vadd.f32 -1.0, %v5934_v45  ;;  %v481_v29 = vmul.f32 1.442695, %v6583_v32  ;;  %v1102_v44 = vld [vmem:[%s8872_s2 + $0x170] sm:$0xff] }
 0x18c   :  { %v5938_v57 = vpop.eup %5937  ;;  %5110 = vmatprep.subr.bf16.mxu1 %v6003_v3  ;;  %v517_v37 = vsel %vm433_vm6, %v6487_v39, %v3762_v34  ;;  %v3764_v59 = vadd.f32 -1.0, %v5936_v51  ;;  %vm440_vm13 = vcmp.gt.f32.partialorder %v6535_v0, 0.0  ;;  %v483_v13 = vmul.f32 1.442695, %v6589_v58 }
 0x18d   :  { %v5940_v40 = vpop.eup %5939  ;;  %v5114_v47 = vpack.c.bf16 %v517_v37, %v516_v53  ;;  %v518_v38 = vsel %vm434_vm7, %v6492_v46, %v3763_v35  ;;  %v3765_v54 = vadd.f32 -1.0, %v5938_v57  ;;  %5953 = vpow2.f32 %v481_v29  ;;  %v1104_v53 = vld [vmem:[%s8872_s2 + $0x190] sm:$0xff]  ;;  %v533_v29 = vld [vmem:[%s8871_s1] sm:$0xff] }
 0x18e   :  { %v5942_v60 = vpop.eup %5941  ;;  %v519_v39 = vsel %vm435_vm8, %v6501_v42, %v3764_v59  ;;  %v3766_v12 = vadd.f32 -1.0, %v5940_v40  ;;  %v404_v4 = vmul.f32 %v6452_v9, %v6503_v28  ;;  %5955 = vpow2.f32 %v483_v13  ;;  %v542_v13 = vld [vmem:[%s8871_s1 + $0x48] sm:$0xff] }
 0x18f   :  { %v5944_v33 = vpop.eup %5943  ;;  %5112 = vmatpush1.bf16.msra.mxu1 %v5111_v52  ;;  %v5117_v27 = vpack.c.bf16 %v519_v39, %v518_v38  ;;  %v520_v46 = vsel %vm436_vm9, %v6514_v63, %v3765_v54  ;;  %v3767_v41 = vadd.f32 -1.0, %v5942_v60  ;;  %vm441_vm14 = vcmp.gt.f32.partialorder %v6538_v62, 0.0  ;;  %v1103_v52 = vld [vmem:[%s8872_s2 + $0x180] sm:$0xff] }
 0x190   :  { %v5946_v55 = vpop.eup %5945  ;;  %5113 = vmatprep.subr.bf16.mxu1 %v6003_v3  ;;  %v521_v42 = vsel %vm437_vm10, %v6517_v5, %v3766_v12  ;;  %v3768_v6 = vadd.f32 -1.0, %v5944_v33  ;;  %v1098_v5 = vld [vmem:[%s8872_s2 + $0x130] sm:$0xff]  ;;  %v6626_v15 = vadd.f32 %v404_v4, %v6457_v10  ;;  %vm442_vm15 = vcmp.gt.f32.partialorder %v6551_v14, 0.0  ;;  %v545_v4 = vld [vmem:[%s8871_s1 + $0x60] sm:$0xff] }
 0x191   :  { %v5948_v1 = vpop.eup %5947  ;;  %v5120_v21 = vpack.c.bf16 %v521_v42, %v520_v46  ;;  %v522_v63 = vsel %vm438_vm11, %v6521_v20, %v3767_v41  ;;  %v3769_v2 = vadd.f32 -1.0, %v5946_v55  ;;  %v405_v20 = vmul.f32 %v6452_v9, %v6510_v61  ;;  %v535_v46 = vld [vmem:[%s8871_s1 + $0x10] sm:$0xff]  ;;  %v538_v41 = vld [vmem:[%s8871_s1 + $0x28] sm:$0xff]  ;;  %v537_v55 = vld [vmem:[%s8871_s1 + $0x20] sm:$0xff] }
 0x192   :  { %v523_v7 = vsel %vm439_vm12, %v6531_v48, %v3768_v6  ;;  %v3770_v8 = vadd.f32 -1.0, %v5948_v1  ;;  %v1099_v48 = vld [vmem:[%s8872_s2 + $0x140] sm:$0xff]  ;;  %v5950_v9 = vpop.eup %5949  ;;  %v5141_v19 = vpack.c.bf16 %v1098_v5, %v1097_v30  ;;  %v485_v24 = vmul.f32 1.442695, %v6626_v15  ;;  %v540_v42 = vld [vmem:[%s8871_s1 + $0x38] sm:$0xff]  ;;  %v539_v6 = vld [vmem:[%s8871_s1 + $0x30] sm:$0xff] }
 0x193   :  { %5115 = vmatpush1.bf16.msra.mxu1 %v5114_v47  ;;  %v5123_v11 = vpack.c.bf16 %v523_v7, %v522_v63  ;;  %v524_v28 = vsel %vm440_vm13, %v6535_v0, %v3769_v2  ;;  %v426_v18 = vadd.f32 %v405_v20, %v6457_v10  ;;  %v3771_v23 = vadd.f32 -1.0, %v5950_v9  ;;  %v5952_v25 = vpop.eup %5951  ;;  %v541_v1 = vld [vmem:[%s8871_s1 + $0x40] sm:$0xff]  ;;  %v543_v63 = vld [vmem:[%s8871_s1 + $0x50] sm:$0xff]  ;;  %v546_v2 = vld [vmem:[%s8871_s1 + $0x68] sm:$0xff] }
 0x194   :  { %5116 = vmatprep.subr.bf16.mxu1 %v6003_v3  ;;  %v525_v61 = vsel %vm441_vm14, %v6538_v62, %v3770_v8  ;;  %5142 = vmatpush3.bf16.msra.mxu0 %v5141_v19  ;;  %v5144_v36 = vpack.c.bf16 %v1100_v16, %v1099_v48  ;;  %v3772_v43 = vadd.f32 -1.0, %v5952_v25  ;;  %5957 = vpow2.f32 %v485_v24  ;;  %v1101_v62 = vld [vmem:[%s8872_s2 + $0x160] sm:$0xff]  ;;  %v548_v30 = vld [vmem:[%s8871_s1 + $0x78] sm:$0xff]  ;;  %v547_v5 = vld [vmem:[%s8871_s1 + $0x70] sm:$0xff] }
 0x195   :  { %v5126_v0 = vpack.c.bf16 %v525_v61, %v524_v28  ;;  %v487_v26 = vmul.f32 1.442695, %v426_v18  ;;  %v526_v31 = vsel %vm442_vm15, %v6551_v14, %v3771_v23  ;;  %5143 = vmatprep.subr.bf16.mxu0 %v6003_v3  ;;  %vm443_vm1 = vcmp.gt.f32.partialorder %v6558_v22, 0.0  ;;  %v550_v7 = vld [vmem:[%s8871_s1 + $0x88] sm:$0xff]  ;;  %v549_v8 = vld [vmem:[%s8871_s1 + $0x80] sm:$0xff]  ;;  %v552_v20 = vld [vmem:[%s8871_s1 + $0x98] sm:$0xff] }
 0x196   :  { %v527_v45 = vsel %vm443_vm1, %v6558_v22, %v3772_v43  ;;  %v427_v14 = vadd.f32 %v6460_v17, %v6457_v10  ;;  %v5147_v50 = vpack.c.bf16 %v1102_v44, %v1101_v62  ;;  %vm444_vm2 = vcmp.gt.f32.partialorder %v6583_v32, 0.0  ;;  %v554_v28 = vld [vmem:[%s8871_s1 + $0xa8] sm:$0xff]  ;;  %v556_v48 = vld [vmem:[%s8871_s1 + $0xb8] sm:$0xff]  ;;  %v555_v16 = vld [vmem:[%s8871_s1 + $0xb0] sm:$0xff] }
 0x197   :  { %5118 = vmatpush1.bf16.msra.mxu1 %v5117_v27  ;;  %5959 = vpow2.f32 %v487_v26  ;;  %v5954_v49 = vpop.eup %5953  ;;  %v5129_v34 = vpack.c.bf16 %v527_v45, %v526_v31  ;;  %vm445_vm3 = vcmp.gt.f32.partialorder %v6589_v58, 0.0  ;;  %v5150_v56 = vpack.c.bf16 %v1104_v53, %v1103_v52  ;;  %v536_v27 = vld [vmem:[%s8871_s1 + $0x18] sm:$0xff]  ;;  %v558_v9 = vld [vmem:[%s8871_s1 + $0xc8] sm:$0xff]  ;;  %v557_v61 = vld [vmem:[%s8871_s1 + $0xc0] sm:$0xff] }
 0x198   :  { %5119 = vmatprep.subr.bf16.mxu1 %v6003_v3  ;;  %5145 = vmatpush3.bf16.msra.mxu0 %v5144_v36  ;;  %v3773_v51 = vadd.f32 -1.0, %v5954_v49  ;;  %v5956_v22 = vpop.eup %5955  ;;  %v489_v35 = vmul.f32 1.442695, %v427_v14  ;;  %vm446_vm4 = vcmp.gt.f32.partialorder %v6626_v15, 0.0  ;;  %vm447_vm5 = vcmp.gt.f32.partialorder %v426_v18, 0.0  ;;  %v559_v19 = vld [vmem:[%s8871_s1 + $0xd0] sm:$0xff] }
 0x199   :  { %5146 = vmatprep.subr.bf16.mxu0 %v6003_v3  ;;  %v3774_v10 = vadd.f32 -1.0, %v5956_v22  ;;  %v6004_v12 = vmov 0.0   ;;  %vm448_vm6 = vcmp.gt.f32.partialorder %v427_v14, 0.0  ;;  %v561_v23 = vld [vmem:[%s8871_s1 + $0xe0] sm:$0xff]  ;;  %v564_v24 = vld [vmem:[%s8871_s1 + $0xf8] sm:$0xff]  ;;  %v563_v25 = vld [vmem:[%s8871_s1 + $0xf0] sm:$0xff] }
 0x19a   :  { %v528_v17 = vsel %vm444_vm2, %v6583_v32, %v3773_v51  ;;  %5961 = vpow2.f32 %v489_v35  ;;  %v566_v26 = vld [vmem:[%s8871_s1 + $0x108] sm:$0xff]  ;;  %v565_v36 = vld [vmem:[%s8871_s1 + $0x100] sm:$0xff]  ;;  %v568_v43 = vld [vmem:[%s8871_s1 + $0x118] sm:$0xff]  ;;  %vm6005_vm7 = vmmov 0  }
 0x19b   :  { %5121 = vmatpush1.bf16.msra.mxu1 %v5120_v21  ;;  %v529_v57 = vsel %vm445_vm3, %v6589_v58, %v3774_v10  ;;  %v544_v21 = vld [vmem:[%s8871_s1 + $0x58] sm:$0xff]  ;;  %v567_v31 = vld [vmem:[%s8871_s1 + $0x110] sm:$0xff]  ;;  %v570_v62 = vld [vmem:[%s8871_s1 + $0x128] sm:$0xff]  ;;  %4283 = vmatprep.mubr.msk.f32.mxu0 %vm6005_vm7, %v6004_v12 }
 0x19c   :  { %5122 = vmatprep.subr.bf16.mxu1 %v6003_v3  ;;  %5148 = vmatpush3.bf16.msra.mxu0 %v5147_v50  ;;  %v5132_v37 = vpack.c.bf16 %v529_v57, %v528_v17  ;;  %v569_v44 = vld [vmem:[%s8871_s1 + $0x120] sm:$0xff]  ;;  %v1108_v50 = vld [vmem:[%s8872_s2 + $0x1d0] sm:$0xff]  ;;  %v572_v10 = vld [vmem:[%s8871_s1 + $0x138] sm:$0xff] }
 0x19d   :  { %5149 = vmatprep.subr.bf16.mxu0 %v6003_v3  ;;  %v1105_v45 = vld [vmem:[%s8872_s2 + $0x1a0] sm:$0xff]  ;;  %v1110_v53 = vld [vmem:[%s8872_s2 + $0x1f0] sm:$0xff]  ;;  %v574_v35 = vld [vmem:[%s8871_s1 + $0x148] sm:$0xff] }
 0x19e   :  { %v5958_v59 = vpop.eup %5957  ;;  %v1109_v52 = vld [vmem:[%s8872_s2 + $0x1e0] sm:$0xff]  ;;  %v571_v17 = vld [vmem:[%s8871_s1 + $0x130] sm:$0xff]  ;;  %v576_v57 = vld [vmem:[%s8871_s1 + $0x158] sm:$0xff] }
 0x19f   :  { %5124 = vmatpush1.bf16.msra.mxu1 %v5123_v11  ;;  %v3775_v47 = vadd.f32 -1.0, %v5958_v59  ;;  %v551_v11 = vld [vmem:[%s8871_s1 + $0x90] sm:$0xff]  ;;  %v5159_v22 = vpack.c.bf16 %v1110_v53, %v1109_v52  ;;  %v578_v59 = vld [vmem:[%s8871_s1 + $0x168] sm:$0xff]  ;;  %v1089_v52 = vld [vmem:[%s8872_s2 + $0xa0] sm:$0xff] }
 0x1a0   :  { %5125 = vmatprep.subr.bf16.mxu1 %v6003_v3  ;;  %5151 = vmatpush3.bf16.msra.mxu0 %v5150_v56  ;;  %v573_v56 = vld [vmem:[%s8871_s1 + $0x140] sm:$0xff]  ;;  %v1090_v53 = vld [vmem:[%s8872_s2 + $0xb0] sm:$0xff] }
 0x1a1   :  { %v5960_v40 = vpop.eup %5959  ;;  %5152 = vmatprep.subr.bf16.mxu0 %v6003_v3  ;;  %v530_v38 = vsel %vm446_vm4, %v6626_v15, %v3775_v47  ;;  %v553_v15 = vld [vmem:[%s8871_s1 + $0xa0] sm:$0xff]  ;;  %v580_v47 = vld [vmem:[%s8871_s1 + $0x178] sm:$0xff] }
 0x1a2   :  { %v3776_v32 = vadd.f32 -1.0, %v5960_v40  ;;  %v577_v40 = vld [vmem:[%s8871_s1 + $0x160] sm:$0xff] }
 0x1a3   :  { %5127 = vmatpush1.bf16.msra.mxu1 %v5126_v0  ;;  %v562_v0 = vld [vmem:[%s8871_s1 + $0xe8] sm:$0xff] }
 0x1a4   :  { %5128 = vmatprep.subr.bf16.mxu1 %v6003_v3  ;;  %v531_v54 = vsel %vm447_vm5, %v426_v18, %v3776_v32  ;;  %v5962_v60 = vpop.eup %5961  ;;  %v560_v18 = vld [vmem:[%s8871_s1 + $0xd8] sm:$0xff]  ;;  %v579_v32 = vld [vmem:[%s8871_s1 + $0x170] sm:$0xff] }
 0x1a5   :  { %v5135_v58 = vpack.c.bf16 %v531_v54, %v530_v38  ;;  %v3777_v39 = vadd.f32 -1.0, %v5962_v60  ;;  %v582_v38 = vld [vmem:[%s8871_s1 + $0x188] sm:$0xff]  ;;  %v581_v54 = vld [vmem:[%s8871_s1 + $0x180] sm:$0xff]  ;;  %v583_v60 = vld [vmem:[%s8871_s1 + $0x190] sm:$0xff] }
 0x1a7   :  { %5130 = vmatpush1.bf16.msra.mxu1 %v5129_v34  ;;  %v532_v33 = vsel %vm448_vm6, %v427_v14, %v3777_v39  ;;  %v1106_v14 = vld [vmem:[%s8872_s2 + $0x1b0] sm:$0xff]  ;;  %v1107_v34 = vld [vmem:[%s8872_s2 + $0x1c0] sm:$0xff]  ;;  %v586_v39 = vld [vmem:[%s8871_s1 + $0x1a8] sm:$0xff] }
 0x1a8   :  { %5131 = vmatprep.subr.bf16.mxu1 %v6003_v3  ;;  %v5153_v49 = vpack.c.bf16 %v1106_v14, %v1105_v45  ;;  %v5156_v51 = vpack.c.bf16 %v1108_v50, %v1107_v34  ;;  %v599_v45 = vld [vmem:[%s8871_s1 + $0x210] sm:$0xff]  ;;  %v1087_v14 = vld [vmem:[%s8872_s2 + $0x80] sm:$0xff] }
 0x1aa   :  { %5154 = vmatpush3.bf16.msra.mxu0 %v5153_v49  ;;  %v1088_v49 = vld [vmem:[%s8872_s2 + $0x90] sm:$0xff] }
 0x1ab   :  { %5133 = vmatpush1.bf16.msra.mxu1 %v5132_v37  ;;  %5155 = vmatprep.subr.bf16.mxu0 %v6003_v3  ;;  %v575_v37 = vld [vmem:[%s8871_s1 + $0x150] sm:$0xff] }
 0x1ac   :  { %5134 = vmatprep.subr.bf16.mxu1 %v6003_v3 }
 0x1ae   :  { %5157 = vmatpush3.bf16.msra.mxu0 %v5156_v51  ;;  %v5174_v51 = vpack.c.bf16 %v1088_v49, %v1087_v14 }
 0x1af   :  { %5136 = vmatpush1.bf16.msra.mxu1 %v5135_v58  ;;  %5158 = vmatprep.subr.bf16.mxu0 %v6003_v3  ;;  %v584_v58 = vld [vmem:[%s8871_s1 + $0x198] sm:$0xff] }
 0x1b0   :  { %814 = vmatprep.subr.mxu1 %v6004_v12 }
 0x1b2   :  { %5160 = vmatpush3.bf16.msra.mxu0 %v5159_v22 }
 0x1b3   :  { %815 = vmatpush1.msra.mxu1 %v532_v33  ;;  %5161 = vmatprep.subr.bf16.mxu0 %v6003_v3  ;;  %v588_v33 = vld [vmem:[%s8871_s1 + $0x1b8] sm:$0xff] }
 0x1b4   :  { %839 = vmatmul.mubr.f32.vlgmr.msra.gmra.mrb[22].mxu1 %v533_v29  ;;  %v585_v29 = vld [vmem:[%s8871_s1 + $0x1a0] sm:$0xff] }
 0x1b5   :  { %3779 = vmatprep.mubr.msk.f32.mxu1 %vm629_vm0, %v536_v27  ;;  %v587_v27 = vld [vmem:[%s8871_s1 + $0x1b0] sm:$0xff] }
 0x1b8   :  { %844 = vmatmul.mubr.f32.gmra.mrb[24].mxu1 %v535_v46  ;;  %v590_v46 = vld [vmem:[%s8871_s1 + $0x1c8] sm:$0xff] }
 0x1b9   :  { %3780 = vmatprep.mubr.msk.f32.mxu1 %vm629_vm0, %v538_v41  ;;  %v589_v41 = vld [vmem:[%s8871_s1 + $0x1c0] sm:$0xff] }
 0x1bc   :  { %849 = vmatmul.mubr.f32.gmra.mrb[26].mxu1 %v537_v55  ;;  %v592_v55 = vld [vmem:[%s8871_s1 + $0x1d8] sm:$0xff] }
 0x1bd   :  { %3781 = vmatprep.mubr.msk.f32.mxu1 %vm629_vm0, %v540_v42  ;;  %v591_v42 = vld [vmem:[%s8871_s1 + $0x1d0] sm:$0xff] }
 0x1c0   :  { %854 = vmatmul.mubr.f32.gmra.mrb[28].mxu1 %v539_v6  ;;  %v594_v6 = vld [vmem:[%s8871_s1 + $0x1e8] sm:$0xff] }
 0x1c1   :  { %3782 = vmatprep.mubr.msk.f32.mxu1 %vm629_vm0, %v542_v13  ;;  %v593_v13 = vld [vmem:[%s8871_s1 + $0x1e0] sm:$0xff] }
 0x1c4   :  { %859 = vmatmul.mubr.f32.gmra.mrb[30].mxu1 %v541_v1 }
 0x1c5   :  { %3783 = vmatprep.mubr.msk.f32.mxu1 %vm629_vm0, %v544_v21 }
 0x1c8   :  { %864 = vmatmul.mubr.f32.gmra.mrb[32].mxu1 %v543_v63 }
 0x1c9   :  { %3784 = vmatprep.mubr.msk.f32.mxu1 %vm629_vm0, %v546_v2 }
 0x1cc   :  { %869 = vmatmul.mubr.f32.gmra.mrb[34].mxu1 %v545_v4  ;;  %v1079_v4 = vld [vmem:[%s8872_s2] sm:$0xff] }
 0x1cd   :  { %3785 = vmatprep.mubr.msk.f32.mxu1 %vm629_vm0, %v548_v30  ;;  %v1080_v30 = vld [vmem:[%s8872_s2 + $0x10] sm:$0xff] }
 0x1d0   :  { %874 = vmatmul.mubr.f32.gmra.mrb[36].mxu1 %v547_v5 }
 0x1d1   :  { %3786 = vmatprep.mubr.msk.f32.mxu1 %vm629_vm0, %v550_v7 }
 0x1d4   :  { %879 = vmatmul.mubr.f32.gmra.mrb[38].mxu1 %v549_v8  ;;  %v5162_v8 = vpack.c.bf16 %v1080_v30, %v1079_v4 }
 0x1d5   :  { %3787 = vmatprep.mubr.msk.f32.mxu1 %vm629_vm0, %v552_v20  ;;  %v1081_v20 = vld [vmem:[%s8872_s2 + $0x20] sm:$0xff] }
 0x1d8   :  { %884 = vmatmul.mubr.f32.gmra.mrb[40].mxu1 %v551_v11  ;;  %v1082_v11 = vld [vmem:[%s8872_s2 + $0x30] sm:$0xff] }
 0x1d9   :  { %3788 = vmatprep.mubr.msk.f32.mxu1 %vm629_vm0, %v554_v28 }
 0x1dc   :  { %889 = vmatmul.mubr.f32.gmra.mrb[42].mxu1 %v553_v15 }
 0x1dd   :  { %3789 = vmatprep.mubr.msk.f32.mxu1 %vm629_vm0, %v556_v48  ;;  %v5165_v48 = vpack.c.bf16 %v1082_v11, %v1081_v20  ;;  %v1278_v20 = vld [vmem:[%s8872_s2 + $0x270] sm:$0xff] }
 0x1e0   :  { %894 = vmatmul.mubr.f32.gmra.mrb[44].mxu1 %v555_v16  ;;  %v596_v16 = vld [vmem:[%s8871_s1 + $0x1f8] sm:$0xff] }
 0x1e1   :  { %3790 = vmatprep.mubr.msk.f32.mxu1 %vm629_vm0, %v558_v9  ;;  %v595_v9 = vld [vmem:[%s8871_s1 + $0x1f0] sm:$0xff] }
 0x1e4   :  { %899 = vmatmul.mubr.f32.gmra.mrb[46].mxu1 %v557_v61  ;;  %v1083_v61 = vld [vmem:[%s8872_s2 + $0x40] sm:$0xff] }
 0x1e5   :  { %3791 = vmatprep.mubr.msk.f32.mxu1 %vm629_vm0, %v560_v18  ;;  %v1084_v18 = vld [vmem:[%s8872_s2 + $0x50] sm:$0xff] }
 0x1e8   :  { %904 = vmatmul.mubr.f32.gmra.mrb[48].mxu1 %v559_v19 }
 0x1e9   :  { %3792 = vmatprep.mubr.msk.f32.mxu1 %vm629_vm0, %v562_v0 }
 0x1ec   :  { %909 = vmatmul.mubr.f32.gmra.mrb[50].mxu1 %v561_v23  ;;  %v5168_v23 = vpack.c.bf16 %v1084_v18, %v1083_v61 }
 0x1ed   :  { %3793 = vmatprep.mubr.msk.f32.mxu1 %vm629_vm0, %v564_v24  ;;  %v598_v24 = vld [vmem:[%s8871_s1 + $0x208] sm:$0xff] }
 0x1f0   :  { %914 = vmatmul.mubr.f32.gmra.mrb[52].mxu1 %v563_v25  ;;  %v597_v25 = vld [vmem:[%s8871_s1 + $0x200] sm:$0xff] }
 0x1f1   :  { %3794 = vmatprep.mubr.msk.f32.mxu1 %vm629_vm0, %v566_v26  ;;  %v1085_v26 = vld [vmem:[%s8872_s2 + $0x60] sm:$0xff] }
 0x1f4   :  { %919 = vmatmul.mubr.f32.gmra.mrb[54].mxu1 %v565_v36  ;;  %v1086_v36 = vld [vmem:[%s8872_s2 + $0x70] sm:$0xff] }
 0x1f5   :  { %3795 = vmatprep.mubr.msk.f32.mxu1 %vm629_vm0, %v568_v43 }
 0x1f8   :  { %924 = vmatmul.mubr.f32.gmra.mrb[56].mxu1 %v567_v31 }
 0x1f9   :  { %3796 = vmatprep.mubr.msk.f32.mxu1 %vm629_vm0, %v570_v62  ;;  %v5171_v62 = vpack.c.bf16 %v1086_v36, %v1085_v26  ;;  %v1283_v36 = vld [vmem:[%s8872_s2 + $0x2c0] sm:$0xff] }
 0x1fc   :  { %929 = vmatmul.mubr.f32.gmra.mrb[58].mxu1 %v569_v44  ;;  %v600_v44 = vld [vmem:[%s8871_s1 + $0x218] sm:$0xff] }
 0x1fd   :  { %3797 = vmatprep.mubr.msk.f32.mxu1 %vm629_vm0, %v572_v10 }
 0x200   :  { %934 = vmatmul.mubr.f32.gmra.mrb[60].mxu1 %v571_v17  ;;  %v5177_v17 = vpack.c.bf16 %v1090_v53, %v1089_v52  ;;  %v1371_v52 = vld [vmem:[%s8872_s2 + $0x310] sm:$0xff] }
 0x201   :  { %3798 = vmatprep.mubr.msk.f32.mxu1 %vm629_vm0, %v574_v35  ;;  %v1091_v35 = vld [vmem:[%s8872_s2 + $0xc0] sm:$0xff] }
 0x204   :  { %939 = vmatmul.mubr.f32.gmra.mrb[62].mxu1 %v573_v56  ;;  %v1092_v56 = vld [vmem:[%s8872_s2 + $0xd0] sm:$0xff] }
 0x205   :  { %3799 = vmatprep.mubr.msk.f32.mxu1 %vm629_vm0, %v576_v57 }
 0x208   :  { %944 = vmatmul.mubr.f32.gmra.mrb[64].mxu1 %v575_v37 }
 0x209   :  { %3800 = vmatprep.mubr.msk.f32.mxu1 %vm629_vm0, %v578_v59  ;;  %v5180_v59 = vpack.c.bf16 %v1092_v56, %v1091_v35  ;;  %v1372_v35 = vld [vmem:[%s8872_s2 + $0x320] sm:$0xff]  ;;  %v1373_v56 = vld [vmem:[%s8872_s2 + $0x330] sm:$0xff] }
 0x20c   :  { %949 = vmatmul.mubr.f32.gmra.mrb[66].mxu1 %v577_v40  ;;  %v1093_v40 = vld [vmem:[%s8872_s2 + $0xe0] sm:$0xff] }
 0x20d   :  { %3801 = vmatprep.mubr.msk.f32.mxu1 %vm629_vm0, %v580_v47  ;;  %v1094_v47 = vld [vmem:[%s8872_s2 + $0xf0] sm:$0xff] }
 0x210   :  { %954 = vmatmul.mubr.f32.gmra.mrb[68].mxu1 %v579_v32 }
 0x211   :  { %3802 = vmatprep.mubr.msk.f32.mxu1 %vm629_vm0, %v582_v38 }
 0x214   :  { %959 = vmatmul.mubr.f32.gmra.mrb[70].mxu1 %v581_v54  ;;  %v5183_v54 = vpack.c.bf16 %v1094_v47, %v1093_v40  ;;  %v608_v40 = vld [vmem:[%s8871_s1 + $0x258] sm:$0xff]  ;;  %v607_v47 = vld [vmem:[%s8871_s1 + $0x250] sm:$0xff] }
 0x215   :  { %3803 = vmatprep.mubr.msk.f32.mxu1 %vm629_vm0, %v584_v58  ;;  %v1271_v58 = vld [vmem:[%s8872_s2 + $0x200] sm:$0xff] }
 0x218   :  { %964 = vmatmul.mubr.f32.gmra.mrb[72].mxu1 %v583_v60  ;;  %v1272_v60 = vld [vmem:[%s8872_s2 + $0x210] sm:$0xff] }
 0x219   :  { %3804 = vmatprep.mubr.msk.f32.mxu1 %vm629_vm0, %v586_v39 }
 0x21c   :  { %969 = vmatmul.mubr.f32.gmra.mrb[74].mxu1 %v585_v29 }
 0x21d   :  { %3805 = vmatprep.mubr.msk.f32.mxu1 %vm629_vm0, %v588_v33  ;;  %v5186_v33 = vpack.c.bf16 %v1272_v60, %v1271_v58  ;;  %v610_v58 = vld [vmem:[%s8871_s1 + $0x268] sm:$0xff]  ;;  %v609_v60 = vld [vmem:[%s8871_s1 + $0x260] sm:$0xff] }
 0x220   :  { %974 = vmatmul.mubr.f32.gmra.mrb[76].mxu1 %v587_v27  ;;  %v1273_v27 = vld [vmem:[%s8872_s2 + $0x220] sm:$0xff] }
 0x221   :  { %3806 = vmatprep.mubr.msk.f32.mxu1 %vm629_vm0, %v590_v46  ;;  %v1274_v46 = vld [vmem:[%s8872_s2 + $0x230] sm:$0xff] }
 0x224   :  { %979 = vmatmul.mubr.f32.gmra.mrb[78].mxu1 %v589_v41 }
 0x225   :  { %3807 = vmatprep.mubr.msk.f32.mxu1 %vm629_vm0, %v592_v55 }
 0x228   :  { %984 = vmatmul.mubr.f32.gmra.mrb[80].mxu1 %v591_v42  ;;  %v5189_v42 = vpack.c.bf16 %v1274_v46, %v1273_v27  ;;  %v612_v27 = vld [vmem:[%s8871_s1 + $0x278] sm:$0xff]  ;;  %v611_v46 = vld [vmem:[%s8871_s1 + $0x270] sm:$0xff] }
 0x229   :  { %3808 = vmatprep.mubr.msk.f32.mxu1 %vm629_vm0, %v594_v6  ;;  %v602_v6 = vld [vmem:[%s8871_s1 + $0x228] sm:$0xff] }
 0x22c   :  { %989 = vmatmul.mubr.f32.gmra.mrb[82].mxu1 %v593_v13  ;;  %v601_v13 = vld [vmem:[%s8871_s1 + $0x220] sm:$0xff] }
 0x22d   :  { %3809 = vmatprep.mubr.msk.f32.mxu1 %vm629_vm0, %v596_v16  ;;  %v605_v16 = vld [vmem:[%s8871_s1 + $0x240] sm:$0xff] }
 0x230   :  { %994 = vmatmul.mubr.f32.gmra.mrb[84].mxu1 %v595_v9  ;;  %v1280_v9 = vld [vmem:[%s8872_s2 + $0x290] sm:$0xff] }
 0x231   :  { %3810 = vmatprep.mubr.msk.f32.mxu1 %vm629_vm0, %v598_v24 }
 0x234   :  { %999 = vmatmul.mubr.f32.gmra.mrb[86].mxu1 %v597_v25 }
 0x235   :  { %3811 = vmatprep.mubr.msk.f32.mxu1 %vm629_vm0, %v600_v44  ;;  %v1285_v44 = vld [vmem:[%s8872_s2 + $0x2e0] sm:$0xff] }
 0x238   :  { %1004 = vmatmul.mubr.f32.gmra.mrb[88].mxu1 %v599_v45  ;;  %v1286_v45 = vld [vmem:[%s8872_s2 + $0x2f0] sm:$0xff] }
 0x239   :  { %3812 = vmatprep.mubr.msk.f32.mxu1 %vm629_vm0, %v602_v6  ;;  %v5207_v49 = vpack.c.bf16 %v1286_v45, %v1285_v44  ;;  %v1380_v6 = vld [vmem:[%s8872_s2 + $0x3a0] sm:$0xff]  ;;  %v616_v44 = vld [vmem:[%s8871_s1 + $0x298] sm:$0xff]  ;;  %v615_v45 = vld [vmem:[%s8871_s1 + $0x290] sm:$0xff] }
 0x23c   :  { %1009 = vmatmul.mubr.f32.gmra.mrb[90].mxu1 %v601_v13  ;;  %v1381_v13 = vld [vmem:[%s8872_s2 + $0x3b0] sm:$0xff] }
 0x287   :  { %v6909_v1 = vpop.f32.mrb[22].mxu1 }
 0x288   :  { %v842_v21 = vpop.f32.mrb[23].mxu1 }
 0x289   :  { %v1276_v21 = vld [vmem:[%s8872_s2 + $0x250] sm:$0xff] }
 0x28b   :  { %v6911_v63 = vpop.f32.mrb[24].mxu1 }
 0x28c   :  { %v847_v2 = vpop.f32.mrb[25].mxu1 }
 0x28f   :  { %v6919_v5 = vpop.f32.mrb[26].mxu1 }
 0x290   :  { %v852_v7 = vpop.f32.mrb[27].mxu1 }
 0x291   :  { %v604_v7 = vld [vmem:[%s8871_s1 + $0x238] sm:$0xff] }
 0x292   :  { %3813 = vmatprep.mubr.msk.f32.mxu1 %vm629_vm0, %v604_v7  ;;  %v1384_v7 = vld [vmem:[%s8872_s2 + $0x3e0] sm:$0xff] }
 0x293   :  { %v855_v28 = vpop.f32.mrb[28].mxu1 }
 0x294   :  { %v857_v15 = vpop.f32.mrb[29].mxu1  ;;  %4284 = vmatmul.mubr.f32.vlgmr.msra.gmra.mrb[20].mxu0 %v855_v28 }
 0x295   :  { %5163 = vmatpush3.bf16.msra.mxu0 %v5162_v8  ;;  %4286 = vmatprep.mubr.msk.f32.mxu0 %vm6005_vm7, %v6004_v12  ;;  %v603_v8 = vld [vmem:[%s8871_s1 + $0x230] sm:$0xff] }
 0x296   :  { %5164 = vmatprep.subr.bf16.mxu0 %v6003_v3  ;;  %1014 = vmatmul.mubr.f32.gmra.mrb[92].mxu1 %v603_v8  ;;  %v1385_v8 = vld [vmem:[%s8872_s2 + $0x3f0] sm:$0xff] }
 0x297   :  { %v860_v19 = vpop.f32.mrb[30].mxu1 }
 0x298   :  { %v862_v0 = vpop.f32.mrb[31].mxu1  ;;  %4287 = vmatmul.mubr.f32.gmra.mrb[22].mxu0 %v860_v19 }
 0x299   :  { %5166 = vmatpush3.bf16.msra.mxu0 %v5165_v48  ;;  %4289 = vmatprep.mubr.msk.f32.mxu0 %vm6005_vm7, %v6004_v12  ;;  %v606_v48 = vld [vmem:[%s8871_s1 + $0x248] sm:$0xff]  ;;  %v1281_v0 = vld [vmem:[%s8872_s2 + $0x2a0] sm:$0xff] }
 0x29a   :  { %5167 = vmatprep.subr.bf16.mxu0 %v6003_v3  ;;  %3814 = vmatprep.mubr.msk.f32.mxu1 %vm629_vm0, %v606_v48  ;;  %v1470_v48 = vld [vmem:[%s8872_s2 + $0x410] sm:$0xff] }
 0x29b   :  { %v865_v43 = vpop.f32.mrb[32].mxu1  ;;  %1019 = vmatmul.mubr.f32.gmra.mrb[94].mxu1 %v605_v16 }
 0x29c   :  { %v867_v31 = vpop.f32.mrb[33].mxu1  ;;  %4290 = vmatmul.mubr.f32.gmra.mrb[24].mxu0 %v865_v43  ;;  %v1284_v43 = vld [vmem:[%s8872_s2 + $0x2d0] sm:$0xff]  ;;  %3815 = vmatprep.mubr.msk.f32.mxu1 %vm629_vm0, %v608_v40 }
 0x29d   :  { %5169 = vmatpush3.bf16.msra.mxu0 %v5168_v23  ;;  %4324 = vmatprep.mubr.msk.f32.mxu0 %vm6005_vm7, %v6004_v12  ;;  %v1282_v23 = vld [vmem:[%s8872_s2 + $0x2b0] sm:$0xff]  ;;  %v5204_v31 = vpack.c.bf16 %v1284_v43, %v1283_v36  ;;  %v613_v36 = vld [vmem:[%s8871_s1 + $0x280] sm:$0xff] }
 0x29e   :  { %5170 = vmatprep.subr.bf16.mxu0 %v6003_v3  ;;  %v5201_v26 = vpack.c.bf16 %v1282_v23, %v1281_v0  ;;  %v1473_v43 = vld [vmem:[%s8872_s2 + $0x440] sm:$0xff]  ;;  %v1482_v40 = vld [vmem:[%s8872_s2 + $0x4d0] sm:$0xff] }
 0x29f   :  { %v6975_v34 = vpop.f32.mrb[34].mxu1  ;;  %1024 = vmatmul.mubr.f32.gmra.mrb[96].mxu1 %v607_v47 }
 0x2a0   :  { %v872_v50 = vpop.f32.mrb[35].mxu1  ;;  %3816 = vmatprep.mubr.msk.f32.mxu1 %vm629_vm0, %v610_v58 }
 0x2a1   :  { %5172 = vmatpush3.bf16.msra.mxu0 %v5171_v62 }
 0x2a2   :  { %5173 = vmatprep.subr.bf16.mxu0 %v6003_v3 }
 0x2a3   :  { %v6984_v22 = vpop.f32.mrb[36].mxu1  ;;  %1029 = vmatmul.mubr.f32.gmra.mrb[98].mxu1 %v609_v60 }
 0x2a4   :  { %v877_v10 = vpop.f32.mrb[37].mxu1  ;;  %3817 = vmatprep.mubr.msk.f32.mxu1 %vm629_vm0, %v612_v27 }
 0x2a5   :  { %5175 = vmatpush3.bf16.msra.mxu0 %v5174_v51  ;;  %v1370_v51 = vld [vmem:[%s8872_s2 + $0x300] sm:$0xff] }
 0x2a6   :  { %5176 = vmatprep.subr.bf16.mxu0 %v6003_v3  ;;  %v5210_v10 = vpack.c.bf16 %v1371_v52, %v1370_v51  ;;  %v618_v51 = vld [vmem:[%s8871_s1 + $0x2a8] sm:$0xff]  ;;  %v617_v52 = vld [vmem:[%s8871_s1 + $0x2a0] sm:$0xff] }
 0x2a7   :  { %v6993_v57 = vpop.f32.mrb[38].mxu1  ;;  %1034 = vmatmul.mubr.f32.gmra.mrb[100].mxu1 %v611_v46 }
 0x2a8   :  { %v882_v37 = vpop.f32.mrb[39].mxu1 }
 0x2a9   :  { %5178 = vmatpush3.bf16.msra.mxu0 %v5177_v17 }
 0x2aa   :  { %5179 = vmatprep.subr.bf16.mxu0 %v6003_v3 }
 0x2ab   :  { %v7002_v32 = vpop.f32.mrb[40].mxu1 }
 0x2ac   :  { %v887_v38 = vpop.f32.mrb[41].mxu1 }
 0x2ad   :  { %5181 = vmatpush3.bf16.msra.mxu0 %v5180_v59  ;;  %v5213_v59 = vpack.c.bf16 %v1373_v56, %v1372_v35  ;;  %v1374_v38 = vld [vmem:[%s8872_s2 + $0x340] sm:$0xff]  ;;  %v1480_v56 = vld [vmem:[%s8872_s2 + $0x4b0] sm:$0xff] }
 0x2ae   :  { %5182 = vmatprep.subr.bf16.mxu0 %v6003_v3  ;;  %v1479_v35 = vld [vmem:[%s8872_s2 + $0x4a0] sm:$0xff] }
 0x2af   :  { %v7011_v39 = vpop.f32.mrb[42].mxu1 }
 0x2b0   :  { %v892_v29 = vpop.f32.mrb[43].mxu1 }
 0x2b1   :  { %5184 = vmatpush3.bf16.msra.mxu0 %v5183_v54  ;;  %v1376_v29 = vld [vmem:[%s8872_s2 + $0x360] sm:$0xff] }
 0x2b2   :  { %5185 = vmatprep.subr.bf16.mxu0 %v6003_v3 }
 0x2b3   :  { %v7020_v41 = vpop.f32.mrb[44].mxu1 }
 0x2b4   :  { %4325 = vmatmul.mubr.f32.vlgmr.msra.gmra.mrb[20].mxu0 %v6909_v1  ;;  %v897_v55 = vpop.f32.mrb[45].mxu1  ;;  %v1275_v1 = vld [vmem:[%s8872_s2 + $0x240] sm:$0xff] }
 0x2b5   :  { %5187 = vmatpush3.bf16.msra.mxu0 %v5186_v33  ;;  %4327 = vmatprep.mubr.msk.f32.mxu0 %vm6005_vm7, %v6004_v12  ;;  %v5192_v30 = vpack.c.bf16 %v1276_v21, %v1275_v1  ;;  %v1378_v55 = vld [vmem:[%s8872_s2 + $0x380] sm:$0xff]  ;;  %v5225_v1 = vpack.c.bf16 %v1381_v13, %v1380_v6 }
 0x2b6   :  { %5188 = vmatprep.subr.bf16.mxu0 %v6003_v3  ;;  %v1382_v21 = vld [vmem:[%s8872_s2 + $0x3c0] sm:$0xff] }
 0x2b7   :  { %v7039_v2 = vpop.f32.mrb[46].mxu1 }
 0x2b8   :  { %4328 = vmatmul.mubr.f32.gmra.mrb[22].mxu0 %v6911_v63  ;;  %v902_v4 = vpop.f32.mrb[47].mxu1  ;;  %v1277_v63 = vld [vmem:[%s8872_s2 + $0x260] sm:$0xff] }
 0x2b9   :  { %5190 = vmatpush3.bf16.msra.mxu0 %v5189_v42  ;;  %4330 = vmatprep.mubr.msk.f32.mxu0 %vm6005_vm7, %v6004_v12  ;;  %v5195_v15 = vpack.c.bf16 %v1278_v20, %v1277_v63  ;;  %v1383_v4 = vld [vmem:[%s8872_s2 + $0x3d0] sm:$0xff] }
 0x2ba   :  { %5191 = vmatprep.subr.bf16.mxu0 %v6003_v3 }
 0x2bb   :  { %v7058_v11 = vpop.f32.mrb[48].mxu1 }
 0x2bc   :  { %4331 = vmatmul.mubr.f32.gmra.mrb[24].mxu0 %v6919_v5  ;;  %v907_v28 = vpop.f32.mrb[49].mxu1  ;;  %v1279_v5 = vld [vmem:[%s8872_s2 + $0x280] sm:$0xff] }
 0x2bd   :  { %5193 = vmatpush3.bf16.msra.mxu0 %v5192_v30  ;;  %4365 = vmatprep.mubr.msk.f32.mxu0 %vm6005_vm7, %v6004_v12  ;;  %v5198_v19 = vpack.c.bf16 %v1280_v9, %v1279_v5  ;;  %v5228_v30 = vpack.c.bf16 %v1383_v4, %v1382_v21  ;;  %v5231_v28 = vpack.c.bf16 %v1385_v8, %v1384_v7  ;;  %v619_v21 = vld [vmem:[%s8871_s1 + $0x2b0] sm:$0xff]  ;;  %v1572_v4 = vld [vmem:[%s8872_s2 + $0x540] sm:$0xff]  ;;  %v622_v7 = vld [vmem:[%s8871_s1 + $0x2c8] sm:$0xff] }
 0x2be   :  { %5194 = vmatprep.subr.bf16.mxu0 %v6003_v3  ;;  %v621_v8 = vld [vmem:[%s8871_s1 + $0x2c0] sm:$0xff] }
 0x2bf   :  { %v7077_v61 = vpop.f32.mrb[50].mxu1 }
 0x2c0   :  { %v912_v18 = vpop.f32.mrb[51].mxu1 }
 0x2c1   :  { %5196 = vmatpush3.bf16.msra.mxu0 %v5195_v15  ;;  %v1469_v15 = vld [vmem:[%s8872_s2 + $0x400] sm:$0xff] }
 0x2c2   :  { %5197 = vmatprep.subr.bf16.mxu0 %v6003_v3  ;;  %v5234_v9 = vpack.c.bf16 %v1470_v48, %v1469_v15  ;;  %v1471_v18 = vld [vmem:[%s8872_s2 + $0x420] sm:$0xff]  ;;  %v624_v15 = vld [vmem:[%s8871_s1 + $0x2d8] sm:$0xff]  ;;  %v623_v48 = vld [vmem:[%s8871_s1 + $0x2d0] sm:$0xff] }
 0x2c3   :  { %v7086_v24 = vpop.f32.mrb[52].mxu1 }
 0x2c4   :  { %v917_v25 = vpop.f32.mrb[53].mxu1 }
 0x2c5   :  { %5199 = vmatpush3.bf16.msra.mxu0 %v5198_v19  ;;  %v1472_v19 = vld [vmem:[%s8872_s2 + $0x430] sm:$0xff] }
 0x2c6   :  { %5200 = vmatprep.subr.bf16.mxu0 %v6003_v3  ;;  %v5237_v25 = vpack.c.bf16 %v1472_v19, %v1471_v18  ;;  %v626_v18 = vld [vmem:[%s8871_s1 + $0x2e8] sm:$0xff]  ;;  %v625_v19 = vld [vmem:[%s8871_s1 + $0x2e0] sm:$0xff] }
 0x2c7   :  { %v7095_v62 = vpop.f32.mrb[54].mxu1 }
 0x2c8   :  { %v922_v14 = vpop.f32.mrb[55].mxu1 }
 0x2c9   :  { %5202 = vmatpush3.bf16.msra.mxu0 %v5201_v26  ;;  %v614_v26 = vld [vmem:[%s8871_s1 + $0x288] sm:$0xff]  ;;  %v1475_v14 = vld [vmem:[%s8872_s2 + $0x460] sm:$0xff] }
 0x2ca   :  { %5203 = vmatprep.subr.bf16.mxu0 %v6003_v3  ;;  %3818 = vmatprep.mubr.msk.f32.mxu1 %vm629_vm0, %v614_v26 }
 0x2cb   :  { %v7104_v50 = vpop.f32.mrb[56].mxu1  ;;  %1039 = vmatmul.mubr.f32.gmra.mrb[102].mxu1 %v613_v36  ;;  %v628_v36 = vld [vmem:[%s8871_s1 + $0x2f8] sm:$0xff] }
 0x2cc   :  { %v927_v53 = vpop.f32.mrb[57].mxu1  ;;  %3819 = vmatprep.mubr.msk.f32.mxu1 %vm629_vm0, %v616_v44 }
 0x2cd   :  { %5205 = vmatpush3.bf16.msra.mxu0 %v5204_v31  ;;  %v1477_v53 = vld [vmem:[%s8872_s2 + $0x480] sm:$0xff] }
 0x2ce   :  { %5206 = vmatprep.subr.bf16.mxu0 %v6003_v3 }
 0x2cf   :  { %v7113_v17 = vpop.f32.mrb[58].mxu1  ;;  %1044 = vmatmul.mubr.f32.gmra.mrb[104].mxu1 %v615_v45  ;;  %v1582_v45 = vld [vmem:[%s8872_s2 + $0x5e0] sm:$0xff] }
 0x2d0   :  { %v932_v37 = vpop.f32.mrb[59].mxu1  ;;  %3820 = vmatprep.mubr.msk.f32.mxu1 %vm629_vm0, %v618_v51 }
 0x2d1   :  { %5208 = vmatpush3.bf16.msra.mxu0 %v5207_v49  ;;  %v5249_v37 = vpack.c.bf16 %v1480_v56, %v1479_v35  ;;  %v1669_v56 = vld [vmem:[%s8872_s2 + $0x620] sm:$0xff] }
 0x2d2   :  { %5209 = vmatprep.subr.bf16.mxu0 %v6003_v3 }
 0x2d3   :  { %v7194_v63 = vpop.f32.mrb[60].mxu1  ;;  %1049 = vmatmul.mubr.f32.gmra.mrb[106].mxu1 %v617_v52  ;;  %v1667_v52 = vld [vmem:[%s8872_s2 + $0x600] sm:$0xff] }
 0x2d4   :  { %4366 = vmatmul.mubr.f32.vlgmr.msra.gmra.mrb[20].mxu0 %v6975_v34  ;;  %v1375_v34 = vld [vmem:[%s8872_s2 + $0x350] sm:$0xff]  ;;  %v937_v20 = vpop.f32.mrb[61].mxu1 }
 0x2d5   :  { %5211 = vmatpush3.bf16.msra.mxu0 %v5210_v10  ;;  %4368 = vmatprep.mubr.msk.f32.mxu0 %vm6005_vm7, %v6004_v12  ;;  %v5216_v54 = vpack.c.bf16 %v1375_v34, %v1374_v38  ;;  %v1483_v38 = vld [vmem:[%s8872_s2 + $0x4e0] sm:$0xff]  ;;  %v1484_v34 = vld [vmem:[%s8872_s2 + $0x4f0] sm:$0xff] }
 0x2d6   :  { %5212 = vmatprep.subr.bf16.mxu0 %v6003_v3  ;;  %v5255_v60 = vpack.c.bf16 %v1484_v34, %v1483_v38  ;;  %v1574_v20 = vld [vmem:[%s8872_s2 + $0x560] sm:$0xff]  ;;  %v1672_v34 = vld [vmem:[%s8872_s2 + $0x650] sm:$0xff] }
 0x2d7   :  { %v7203_v16 = vpop.f32.mrb[62].mxu1  ;;  %v1671_v38 = vld [vmem:[%s8872_s2 + $0x640] sm:$0xff] }
 0x2d8   :  { %4369 = vmatmul.mubr.f32.gmra.mrb[22].mxu0 %v6984_v22  ;;  %v1377_v22 = vld [vmem:[%s8872_s2 + $0x370] sm:$0xff]  ;;  %v942_v5 = vpop.f32.mrb[63].mxu1 }
 0x2d9   :  { %5214 = vmatpush3.bf16.msra.mxu0 %v5213_v59  ;;  %4371 = vmatprep.mubr.msk.f32.mxu0 %vm6005_vm7, %v6004_v12  ;;  %v5219_v33 = vpack.c.bf16 %v1377_v22, %v1376_v29  ;;  %v1481_v59 = vld [vmem:[%s8872_s2 + $0x4c0] sm:$0xff]  ;;  %v1569_v22 = vld [vmem:[%s8872_s2 + $0x510] sm:$0xff] }
 0x2da   :  { %5215 = vmatprep.subr.bf16.mxu0 %v6003_v3  ;;  %v5252_v47 = vpack.c.bf16 %v1482_v40, %v1481_v59  ;;  %v1568_v29 = vld [vmem:[%s8872_s2 + $0x500] sm:$0xff] }
 0x2db   :  { %v7212_v0 = vpop.f32.mrb[64].mxu1  ;;  %v5258_v46 = vpack.c.bf16 %v1569_v22, %v1568_v29  ;;  %v1576_v5 = vld [vmem:[%s8872_s2 + $0x580] sm:$0xff]  ;;  %v1676_v22 = vld [vmem:[%s8872_s2 + $0x690] sm:$0xff] }
 0x2dc   :  { %4372 = vmatmul.mubr.f32.gmra.mrb[24].mxu0 %v6993_v57  ;;  %v1379_v57 = vld [vmem:[%s8872_s2 + $0x390] sm:$0xff]  ;;  %v947_v23 = vpop.f32.mrb[65].mxu1 }
 0x2dd   :  { %5217 = vmatpush3.bf16.msra.mxu0 %v5216_v54  ;;  %4406 = vmatprep.mubr.msk.f32.mxu0 %vm6005_vm7, %v6004_v12  ;;  %v5222_v42 = vpack.c.bf16 %v1379_v57, %v1378_v55  ;;  %v1570_v55 = vld [vmem:[%s8872_s2 + $0x520] sm:$0xff]  ;;  %v1571_v57 = vld [vmem:[%s8872_s2 + $0x530] sm:$0xff] }
 0x2de   :  { %5218 = vmatprep.subr.bf16.mxu0 %v6003_v3  ;;  %v5261_v13 = vpack.c.bf16 %v1571_v57, %v1570_v55  ;;  %v1578_v23 = vld [vmem:[%s8872_s2 + $0x5a0] sm:$0xff] }
 0x2df   :  { %v7286_v54 = vpop.f32.mrb[66].mxu1  ;;  %v1679_v57 = vld [vmem:[%s8872_s2 + $0x6c0] sm:$0xff] }
 0x2e0   :  { %v952_v58 = vpop.f32.mrb[67].mxu1 }
 0x2e1   :  { %5220 = vmatpush3.bf16.msra.mxu0 %v5219_v33  ;;  %v5288_v58 = vpack.c.bf16 %v1672_v34, %v1671_v38  ;;  %v1867_v38 = vld [vmem:[%s8872_s2 + $0x820] sm:$0xff]  ;;  %v1868_v34 = vld [vmem:[%s8872_s2 + $0x830] sm:$0xff] }
 0x2e2   :  { %5221 = vmatprep.subr.bf16.mxu0 %v6003_v3 }
 0x2e3   :  { %v7295_v33 = vpop.f32.mrb[68].mxu1 }
 0x2e4   :  { %v957_v27 = vpop.f32.mrb[69].mxu1 }
 0x2e5   :  { %5223 = vmatpush3.bf16.msra.mxu0 %v5222_v42 }
 0x2e6   :  { %5224 = vmatprep.subr.bf16.mxu0 %v6003_v3 }
 0x2e7   :  { %v7304_v42 = vpop.f32.mrb[70].mxu1 }
 0x2e8   :  { %v962_v6 = vpop.f32.mrb[71].mxu1 }
 0x2e9   :  { %5226 = vmatpush3.bf16.msra.mxu0 %v5225_v1  ;;  %v620_v1 = vld [vmem:[%s8871_s1 + $0x2b8] sm:$0xff]  ;;  %v1680_v6 = vld [vmem:[%s8872_s2 + $0x6d0] sm:$0xff] }
 0x2ea   :  { %5227 = vmatprep.subr.bf16.mxu0 %v6003_v3  ;;  %3821 = vmatprep.mubr.msk.f32.mxu1 %vm629_vm0, %v620_v1  ;;  %v1681_v1 = vld [vmem:[%s8872_s2 + $0x6e0] sm:$0xff] }
 0x2eb   :  { %1054 = vmatmul.mubr.f32.gmra.mrb[108].mxu1 %v619_v21  ;;  %v1682_v21 = vld [vmem:[%s8872_s2 + $0x6f0] sm:$0xff] }
 0x2ec   :  { %3822 = vmatprep.mubr.msk.f32.mxu1 %vm629_vm0, %v622_v7  ;;  %v1766_v7 = vld [vmem:[%s8872_s2 + $0x700] sm:$0xff] }
 0x2ed   :  { %5229 = vmatpush3.bf16.msra.mxu0 %v5228_v30 }
 0x2ee   :  { %5230 = vmatprep.subr.bf16.mxu0 %v6003_v3 }
 0x2ef   :  { %1059 = vmatmul.mubr.f32.gmra.mrb[110].mxu1 %v621_v8  ;;  %v1767_v8 = vld [vmem:[%s8872_s2 + $0x710] sm:$0xff] }
 0x2f0   :  { %3823 = vmatprep.mubr.msk.f32.mxu1 %vm629_vm0, %v624_v15  ;;  %v1768_v15 = vld [vmem:[%s8872_s2 + $0x720] sm:$0xff] }
 0x2f1   :  { %5232 = vmatpush3.bf16.msra.mxu0 %v5231_v28 }
 0x2f2   :  { %5233 = vmatprep.subr.bf16.mxu0 %v6003_v3 }
 0x2f3   :  { %1064 = vmatmul.mubr.f32.gmra.mrb[112].mxu1 %v623_v48  ;;  %v1769_v48 = vld [vmem:[%s8872_s2 + $0x730] sm:$0xff] }
 0x2f4   :  { %4407 = vmatmul.mubr.f32.vlgmr.msra.gmra.mrb[20].mxu0 %v7002_v32  ;;  %v1474_v32 = vld [vmem:[%s8872_s2 + $0x450] sm:$0xff]  ;;  %3824 = vmatprep.mubr.msk.f32.mxu1 %vm629_vm0, %v626_v18  ;;  %v1770_v18 = vld [vmem:[%s8872_s2 + $0x740] sm:$0xff] }
 0x2f5   :  { %5235 = vmatpush3.bf16.msra.mxu0 %v5234_v9  ;;  %4409 = vmatprep.mubr.msk.f32.mxu0 %vm6005_vm7, %v6004_v12  ;;  %v5240_v31 = vpack.c.bf16 %v1474_v32, %v1473_v43  ;;  %v627_v43 = vld [vmem:[%s8871_s1 + $0x2f0] sm:$0xff]  ;;  %v1580_v32 = vld [vmem:[%s8872_s2 + $0x5c0] sm:$0xff] }
 0x2f6   :  { %5236 = vmatprep.subr.bf16.mxu0 %v6003_v3 }
 0x2f7   :  { %1069 = vmatmul.mubr.f32.gmra.mrb[114].mxu1 %v625_v19  ;;  %v1771_v19 = vld [vmem:[%s8872_s2 + $0x750] sm:$0xff] }
 0x2f8   :  { %4410 = vmatmul.mubr.f32.gmra.mrb[22].mxu0 %v7011_v39  ;;  %v1476_v39 = vld [vmem:[%s8872_s2 + $0x470] sm:$0xff]  ;;  %3825 = vmatprep.mubr.msk.f32.mxu1 %vm629_vm0, %v628_v36  ;;  %vm2716_vm0 = vcmask 195584  }
 0x2f9   :  { %5238 = vmatpush3.bf16.msra.mxu0 %v5237_v25  ;;  %4412 = vmatprep.mubr.msk.f32.mxu0 %vm6005_vm7, %v6004_v12  ;;  %v5243_v49 = vpack.c.bf16 %v1476_v39, %v1475_v14  ;;  %v1579_v25 = vld [vmem:[%s8872_s2 + $0x5b0] sm:$0xff]  ;;  %v7392_v39 = vpop.f32.mrb[72].mxu1 }
 0x2fa   :  { %5239 = vmatprep.subr.bf16.mxu0 %v6003_v3  ;;  %v5273_v26 = vpack.c.bf16 %v1579_v25, %v1578_v23  ;;  %v1583_v14 = vld [vmem:[%s8872_s2 + $0x5f0] sm:$0xff]  ;;  %v5312_v23 = vpack.c.bf16 %v1771_v19, %v1770_v18  ;;  %v1966_v18 = vld [vmem:[%s8872_s2 + $0x920] sm:$0xff] }
 0x2fb   :  { %1074 = vmatmul.mubr.f32.gmra.mrb[116].mxu1 %v627_v43  ;;  %v5279_v51 = vpack.c.bf16 %v1583_v14, %v1582_v45  ;;  %v1773_v25 = vld [vmem:[%s8872_s2 + $0x770] sm:$0xff] }
 0x2fc   :  { %4413 = vmatmul.mubr.f32.gmra.mrb[24].mxu0 %v7020_v41  ;;  %v1478_v41 = vld [vmem:[%s8872_s2 + $0x490] sm:$0xff] }
 0x2fd   :  { %5241 = vmatpush3.bf16.msra.mxu0 %v5240_v31  ;;  %4447 = vmatprep.mubr.msk.f32.mxu0 %vm6005_vm7, %v6004_v12  ;;  %v5246_v10 = vpack.c.bf16 %v1478_v41, %v1477_v53  ;;  %v1581_v31 = vld [vmem:[%s8872_s2 + $0x5d0] sm:$0xff] }
 0x2fe   :  { %5242 = vmatprep.subr.bf16.mxu0 %v6003_v3  ;;  %v5276_v44 = vpack.c.bf16 %v1581_v31, %v1580_v32  ;;  %v1668_v53 = vld [vmem:[%s8872_s2 + $0x610] sm:$0xff] }
 0x2ff   :  { %v5282_v35 = vpack.c.bf16 %v1668_v53, %v1667_v52  ;;  %v1775_v36 = vld [vmem:[%s8872_s2 + $0x790] sm:$0xff] }
 0x300   :  { %v1777_v32 = vld [vmem:[%s8872_s2 + $0x7b0] sm:$0xff] }
 0x301   :  { %5244 = vmatpush3.bf16.msra.mxu0 %v5243_v49  ;;  %v967_v49 = vpop.f32.mrb[73].mxu1  ;;  %v1779_v45 = vld [vmem:[%s8872_s2 + $0x7d0] sm:$0xff] }
 0x302   :  { %5245 = vmatprep.subr.bf16.mxu0 %v6003_v3  ;;  %v7401_v41 = vpop.f32.mrb[74].mxu1  ;;  %v1780_v49 = vld [vmem:[%s8872_s2 + $0x7e0] sm:$0xff]  ;;  %v1967_v19 = vld [vmem:[%s8872_s2 + $0x930] sm:$0xff] }
 0x305   :  { %5247 = vmatpush3.bf16.msra.mxu0 %v5246_v10  ;;  %v972_v10 = vpop.f32.mrb[75].mxu1 }
 0x306   :  { %5248 = vmatprep.subr.bf16.mxu0 %v6003_v3  ;;  %v7410_v59 = vpop.f32.mrb[76].mxu1 }
 0x307   :  { %v977_v40 = vpop.f32.mrb[77].mxu1 }
 0x309   :  { %5250 = vmatpush3.bf16.msra.mxu0 %v5249_v37  ;;  %v1670_v37 = vld [vmem:[%s8872_s2 + $0x630] sm:$0xff] }
 0x30a   :  { %5251 = vmatprep.subr.bf16.mxu0 %v6003_v3 }
 0x30d   :  { %5253 = vmatpush3.bf16.msra.mxu0 %v5252_v47  ;;  %v5285_v47 = vpack.c.bf16 %v1670_v37, %v1669_v56  ;;  %v1866_v56 = vld [vmem:[%s8872_s2 + $0x810] sm:$0xff] }
 0x30e   :  { %5254 = vmatprep.subr.bf16.mxu0 %v6003_v3 }
 0x311   :  { %5256 = vmatpush3.bf16.msra.mxu0 %v5255_v60  ;;  %v1674_v60 = vld [vmem:[%s8872_s2 + $0x670] sm:$0xff] }
 0x312   :  { %5257 = vmatprep.subr.bf16.mxu0 %v6003_v3 }
 0x314   :  { %4448 = vmatmul.mubr.f32.vlgmr.msra.gmra.mrb[20].mxu0 %v7039_v2  ;;  %v1573_v2 = vld [vmem:[%s8872_s2 + $0x550] sm:$0xff] }
 0x315   :  { %5259 = vmatpush3.bf16.msra.mxu0 %v5258_v46  ;;  %4450 = vmatprep.mubr.msk.f32.mxu0 %vm6005_vm7, %v6004_v12  ;;  %v5264_v30 = vpack.c.bf16 %v1573_v2, %v1572_v4  ;;  %v1678_v46 = vld [vmem:[%s8872_s2 + $0x6b0] sm:$0xff]  ;;  %v7463_v4 = vpop.f32.mrb[78].mxu1 }
 0x316   :  { %5260 = vmatprep.subr.bf16.mxu0 %v6003_v3  ;;  %v982_v2 = vpop.f32.mrb[79].mxu1 }
 0x317   :  { %v1879_v2 = vld [vmem:[%s8872_s2 + $0x8e0] sm:$0xff] }
 0x318   :  { %4451 = vmatmul.mubr.f32.gmra.mrb[22].mxu0 %v7058_v11  ;;  %v1575_v11 = vld [vmem:[%s8872_s2 + $0x570] sm:$0xff] }
 0x319   :  { %5262 = vmatpush3.bf16.msra.mxu0 %v5261_v13  ;;  %4453 = vmatprep.mubr.msk.f32.mxu0 %vm6005_vm7, %v6004_v12  ;;  %v5267_v28 = vpack.c.bf16 %v1575_v11, %v1574_v20  ;;  %v5300_v13 = vpack.c.bf16 %v1680_v6, %v1679_v57  ;;  %v7472_v20 = vpop.f32.mrb[80].mxu1  ;;  %v1876_v57 = vld [vmem:[%s8872_s2 + $0x8b0] sm:$0xff] }
 0x31a   :  { %5263 = vmatprep.subr.bf16.mxu0 %v6003_v3  ;;  %v987_v11 = vpop.f32.mrb[81].mxu1 }
 0x31c   :  { %4454 = vmatmul.mubr.f32.gmra.mrb[24].mxu0 %v7077_v61  ;;  %v1577_v61 = vld [vmem:[%s8872_s2 + $0x590] sm:$0xff] }
 0x31d   :  { %5265 = vmatpush3.bf16.msra.mxu0 %v5264_v30  ;;  %4488 = vmatprep.mubr.msk.f32.mxu0 %vm6005_vm7, %v6004_v12  ;;  %v5270_v9 = vpack.c.bf16 %v1577_v61, %v1576_v5  ;;  %v5303_v30 = vpack.c.bf16 %v1682_v21, %v1681_v1  ;;  %v7481_v5 = vpop.f32.mrb[82].mxu1  ;;  %v1878_v1 = vld [vmem:[%s8872_s2 + $0x8d0] sm:$0xff] }
 0x31e   :  { %5266 = vmatprep.subr.bf16.mxu0 %v6003_v3  ;;  %v992_v61 = vpop.f32.mrb[83].mxu1 }
 0x31f   :  { %v7534_v52 = vpop.f32.mrb[84].mxu1 }
 0x320   :  { %v997_v53 = vpop.f32.mrb[85].mxu1 }
 0x321   :  { %5268 = vmatpush3.bf16.msra.mxu0 %v5267_v28  ;;  %v5306_v28 = vpack.c.bf16 %v1767_v8, %v1766_v7  ;;  %v7543_v37 = vpop.f32.mrb[86].mxu1  ;;  %v1978_v53 = vld [vmem:[%s8872_s2 + $0x9e0] sm:$0xff] }
 0x322   :  { %5269 = vmatprep.subr.bf16.mxu0 %v6003_v3  ;;  %v1002_v40 = vpop.f32.mrb[87].mxu1 }
 0x325   :  { %5271 = vmatpush3.bf16.msra.mxu0 %v5270_v9  ;;  %v5309_v9 = vpack.c.bf16 %v1769_v48, %v1768_v15  ;;  %v1965_v15 = vld [vmem:[%s8872_s2 + $0x910] sm:$0xff] }
 0x326   :  { %5272 = vmatprep.subr.bf16.mxu0 %v6003_v3 }
 0x329   :  { %5274 = vmatpush3.bf16.msra.mxu0 %v5273_v26 }
 0x32a   :  { %5275 = vmatprep.subr.bf16.mxu0 %v6003_v3 }
 0x32d   :  { %5277 = vmatpush3.bf16.msra.mxu0 %v5276_v44  ;;  %v1778_v44 = vld [vmem:[%s8872_s2 + $0x7c0] sm:$0xff] }
 0x32e   :  { %5278 = vmatprep.subr.bf16.mxu0 %v6003_v3  ;;  %v5324_v14 = vpack.c.bf16 %v1779_v45, %v1778_v44  ;;  %v1975_v44 = vld [vmem:[%s8872_s2 + $0x9b0] sm:$0xff] }
 0x331   :  { %5280 = vmatpush3.bf16.msra.mxu0 %v5279_v51  ;;  %v1781_v51 = vld [vmem:[%s8872_s2 + $0x7f0] sm:$0xff] }
 0x332   :  { %5281 = vmatprep.subr.bf16.mxu0 %v6003_v3  ;;  %v5327_v10 = vpack.c.bf16 %v1781_v51, %v1780_v49  ;;  %v1977_v49 = vld [vmem:[%s8872_s2 + $0x9d0] sm:$0xff] }
 0x334   :  { %4489 = vmatmul.mubr.f32.vlgmr.msra.gmra.mrb[20].mxu0 %v7086_v24  ;;  %v1673_v24 = vld [vmem:[%s8872_s2 + $0x660] sm:$0xff] }
 0x335   :  { %5283 = vmatpush3.bf16.msra.mxu0 %v5282_v35  ;;  %4491 = vmatprep.mubr.msk.f32.mxu0 %vm6005_vm7, %v6004_v12  ;;  %v5291_v29 = vpack.c.bf16 %v1674_v60, %v1673_v24  ;;  %v1865_v35 = vld [vmem:[%s8872_s2 + $0x800] sm:$0xff]  ;;  %v5333_v60 = vpack.c.bf16 %v1868_v34, %v1867_v38  ;;  %v2064_v38 = vld [vmem:[%s8872_s2 + $0xa10] sm:$0xff] }
 0x336   :  { %5284 = vmatprep.subr.bf16.mxu0 %v6003_v3 }
 0x338   :  { %4492 = vmatmul.mubr.f32.gmra.mrb[22].mxu0 %v7095_v62  ;;  %v1675_v62 = vld [vmem:[%s8872_s2 + $0x680] sm:$0xff] }
 0x339   :  { %5286 = vmatpush3.bf16.msra.mxu0 %v5285_v47  ;;  %4494 = vmatprep.mubr.msk.f32.mxu0 %vm6005_vm7, %v6004_v12  ;;  %v5294_v27 = vpack.c.bf16 %v1676_v22, %v1675_v62  ;;  %v5330_v47 = vpack.c.bf16 %v1866_v56, %v1865_v35  ;;  %v1870_v62 = vld [vmem:[%s8872_s2 + $0x850] sm:$0xff] }
 0x33a   :  { %5287 = vmatprep.subr.bf16.mxu0 %v6003_v3 }
 0x33c   :  { %4495 = vmatmul.mubr.f32.gmra.mrb[24].mxu0 %v7104_v50  ;;  %v1677_v50 = vld [vmem:[%s8872_s2 + $0x6a0] sm:$0xff] }
 0x33d   :  { %5289 = vmatpush3.bf16.msra.mxu0 %v5288_v58  ;;  %4529 = vmatprep.mubr.msk.f32.mxu0 %vm6005_vm7, %v6004_v12  ;;  %v5297_v55 = vpack.c.bf16 %v1678_v46, %v1677_v50  ;;  %v7552_v58 = vpop.f32.mrb[88].mxu1  ;;  %v1874_v46 = vld [vmem:[%s8872_s2 + $0x890] sm:$0xff] }
 0x33e   :  { %5290 = vmatprep.subr.bf16.mxu0 %v6003_v3  ;;  %v1007_v24 = vpop.f32.mrb[89].mxu1 }
 0x33f   :  { %v7605_v7 = vpop.f32.mrb[90].mxu1 }
 0x340   :  { %v1012_v8 = vpop.f32.mrb[91].mxu1 }
 0x341   :  { %5292 = vmatpush3.bf16.msra.mxu0 %v5291_v29  ;;  %v1869_v29 = vld [vmem:[%s8872_s2 + $0x840] sm:$0xff] }
 0x342   :  { %5293 = vmatprep.subr.bf16.mxu0 %v6003_v3  ;;  %v5336_v22 = vpack.c.bf16 %v1870_v62, %v1869_v29  ;;  %v2065_v29 = vld [vmem:[%s8872_s2 + $0xa20] sm:$0xff]  ;;  %v2066_v62 = vld [vmem:[%s8872_s2 + $0xa30] sm:$0xff] }
 0x343   :  { %v2077_v8 = vld [vmem:[%s8872_s2 + $0xae0] sm:$0xff] }
 0x345   :  { %5295 = vmatpush3.bf16.msra.mxu0 %v5294_v27  ;;  %v1872_v27 = vld [vmem:[%s8872_s2 + $0x870] sm:$0xff] }
 0x346   :  { %5296 = vmatprep.subr.bf16.mxu0 %v6003_v3 }
 0x349   :  { %5298 = vmatpush3.bf16.msra.mxu0 %v5297_v55 }
 0x34a   :  { %5299 = vmatprep.subr.bf16.mxu0 %v6003_v3 }
 0x34d   :  { %5301 = vmatpush3.bf16.msra.mxu0 %v5300_v13  ;;  %v1877_v13 = vld [vmem:[%s8872_s2 + $0x8c0] sm:$0xff] }
 0x34e   :  { %5302 = vmatprep.subr.bf16.mxu0 %v6003_v3  ;;  %v5348_v21 = vpack.c.bf16 %v1878_v1, %v1877_v13  ;;  %v2074_v13 = vld [vmem:[%s8872_s2 + $0xab0] sm:$0xff] }
 0x351   :  { %5304 = vmatpush3.bf16.msra.mxu0 %v5303_v30  ;;  %v1880_v30 = vld [vmem:[%s8872_s2 + $0x8f0] sm:$0xff] }
 0x352   :  { %5305 = vmatprep.subr.bf16.mxu0 %v6003_v3  ;;  %v5351_v11 = vpack.c.bf16 %v1880_v30, %v1879_v2  ;;  %v2076_v2 = vld [vmem:[%s8872_s2 + $0xad0] sm:$0xff] }
 0x354   :  { %4530 = vmatmul.mubr.f32.vlgmr.msra.gmra.mrb[20].mxu0 %v7113_v17  ;;  %v1772_v17 = vld [vmem:[%s8872_s2 + $0x760] sm:$0xff] }
 0x355   :  { %5307 = vmatpush3.bf16.msra.mxu0 %v5306_v28  ;;  %4532 = vmatprep.mubr.msk.f32.mxu0 %vm6005_vm7, %v6004_v12  ;;  %v5315_v26 = vpack.c.bf16 %v1773_v25, %v1772_v17  ;;  %v1964_v28 = vld [vmem:[%s8872_s2 + $0x900] sm:$0xff]  ;;  %v5357_v25 = vpack.c.bf16 %v1967_v19, %v1966_v18  ;;  %v2163_v18 = vld [vmem:[%s8872_s2 + $0xb10] sm:$0xff] }
 0x356   :  { %5308 = vmatprep.subr.bf16.mxu0 %v6003_v3 }
 0x358   :  { %4533 = vmatmul.mubr.f32.gmra.mrb[22].mxu0 %v7194_v63  ;;  %v1774_v63 = vld [vmem:[%s8872_s2 + $0x780] sm:$0xff] }
 0x359   :  { %5310 = vmatpush3.bf16.msra.mxu0 %v5309_v9  ;;  %4535 = vmatprep.mubr.msk.f32.mxu0 %vm6005_vm7, %v6004_v12  ;;  %v5318_v43 = vpack.c.bf16 %v1775_v36, %v1774_v63  ;;  %v5354_v9 = vpack.c.bf16 %v1965_v15, %v1964_v28  ;;  %v1969_v63 = vld [vmem:[%s8872_s2 + $0x950] sm:$0xff] }
 0x35a   :  { %5311 = vmatprep.subr.bf16.mxu0 %v6003_v3 }
 0x35c   :  { %4536 = vmatmul.mubr.f32.gmra.mrb[24].mxu0 %v7203_v16  ;;  %v1776_v16 = vld [vmem:[%s8872_s2 + $0x7a0] sm:$0xff] }
 0x35d   :  { %5313 = vmatpush3.bf16.msra.mxu0 %v5312_v23  ;;  %4570 = vmatprep.mubr.msk.f32.mxu0 %vm6005_vm7, %v6004_v12  ;;  %v5321_v31 = vpack.c.bf16 %v1777_v32, %v1776_v16  ;;  %v1973_v32 = vld [vmem:[%s8872_s2 + $0x990] sm:$0xff] }
 0x35e   :  { %5314 = vmatprep.subr.bf16.mxu0 %v6003_v3 }
 0x361   :  { %5316 = vmatpush3.bf16.msra.mxu0 %v5315_v26  ;;  %v1968_v26 = vld [vmem:[%s8872_s2 + $0x940] sm:$0xff] }
 0x362   :  { %5317 = vmatprep.subr.bf16.mxu0 %v6003_v3  ;;  %v5360_v36 = vpack.c.bf16 %v1969_v63, %v1968_v26  ;;  %v2164_v26 = vld [vmem:[%s8872_s2 + $0xb20] sm:$0xff]  ;;  %v2165_v63 = vld [vmem:[%s8872_s2 + $0xb30] sm:$0xff] }
 0x365   :  { %5319 = vmatpush3.bf16.msra.mxu0 %v5318_v43  ;;  %v1971_v43 = vld [vmem:[%s8872_s2 + $0x970] sm:$0xff] }
 0x366   :  { %5320 = vmatprep.subr.bf16.mxu0 %v6003_v3 }
 0x369   :  { %5322 = vmatpush3.bf16.msra.mxu0 %v5321_v31  ;;  %v7614_v48 = vpop.f32.mrb[92].mxu1 }
 0x36a   :  { %5323 = vmatprep.subr.bf16.mxu0 %v6003_v3  ;;  %v1017_v61 = vpop.f32.mrb[93].mxu1 }
 0x36d   :  { %5325 = vmatpush3.bf16.msra.mxu0 %v5324_v14  ;;  %v1976_v14 = vld [vmem:[%s8872_s2 + $0x9c0] sm:$0xff] }
 0x36e   :  { %5326 = vmatprep.subr.bf16.mxu0 %v6003_v3  ;;  %v7623_v23 = vpop.f32.mrb[94].mxu1  ;;  %v5372_v51 = vpack.c.bf16 %v1977_v49, %v1976_v14  ;;  %v2173_v14 = vld [vmem:[%s8872_s2 + $0xbb0] sm:$0xff] }
 0x36f   :  { %v1022_v17 = vpop.f32.mrb[95].mxu1 }
 0x371   :  { %5328 = vmatpush3.bf16.msra.mxu0 %v5327_v10  ;;  %v1979_v10 = vld [vmem:[%s8872_s2 + $0x9f0] sm:$0xff] }
 0x372   :  { %5329 = vmatprep.subr.bf16.mxu0 %v6003_v3  ;;  %v7676_v35 = vpop.f32.mrb[96].mxu1  ;;  %v5375_v40 = vpack.c.bf16 %v1979_v10, %v1978_v53  ;;  %v2175_v53 = vld [vmem:[%s8872_s2 + $0xbd0] sm:$0xff] }
 0x373   :  { %v1027_v56 = vpop.f32.mrb[97].mxu1 }
 0x374   :  { %4571 = vmatmul.mubr.f32.vlgmr.msra.gmra.mrb[20].mxu0 %v7212_v0  ;;  %v1871_v0 = vld [vmem:[%s8872_s2 + $0x860] sm:$0xff] }
 0x375   :  { %5331 = vmatpush3.bf16.msra.mxu0 %v5330_v47  ;;  %4573 = vmatprep.mubr.msk.f32.mxu0 %vm6005_vm7, %v6004_v12  ;;  %v5339_v50 = vpack.c.bf16 %v1872_v27, %v1871_v0  ;;  %v2063_v47 = vld [vmem:[%s8872_s2 + $0xa00] sm:$0xff]  ;;  %v5381_v27 = vpack.c.bf16 %v2066_v62, %v2065_v29  ;;  %v2262_v29 = vld [vmem:[%s8872_s2 + $0xc10] sm:$0xff] }
 0x376   :  { %5332 = vmatprep.subr.bf16.mxu0 %v6003_v3  ;;  %v7685_v34 = vpop.f32.mrb[98].mxu1  ;;  %v2176_v56 = vld [vmem:[%s8872_s2 + $0xbe0] sm:$0xff] }
 0x377   :  { %v1032_v24 = vpop.f32.mrb[99].mxu1 }
 0x378   :  { %4574 = vmatmul.mubr.f32.gmra.mrb[22].mxu0 %v7286_v54  ;;  %v1873_v54 = vld [vmem:[%s8872_s2 + $0x880] sm:$0xff] }
 0x379   :  { %5334 = vmatpush3.bf16.msra.mxu0 %v5333_v60  ;;  %4576 = vmatprep.mubr.msk.f32.mxu0 %vm6005_vm7, %v6004_v12  ;;  %v5342_v55 = vpack.c.bf16 %v1874_v46, %v1873_v54  ;;  %v5378_v60 = vpack.c.bf16 %v2064_v38, %v2063_v47  ;;  %v2068_v54 = vld [vmem:[%s8872_s2 + $0xa50] sm:$0xff] }
 0x37a   :  { %5335 = vmatprep.subr.bf16.mxu0 %v6003_v3 }
 0x37c   :  { %4577 = vmatmul.mubr.f32.gmra.mrb[24].mxu0 %v7295_v33  ;;  %v1875_v33 = vld [vmem:[%s8872_s2 + $0x8a0] sm:$0xff] }
 0x37d   :  { %5337 = vmatpush3.bf16.msra.mxu0 %v5336_v22  ;;  %4611 = vmatprep.mubr.msk.f32.mxu0 %vm6005_vm7, %v6004_v12  ;;  %v5345_v6 = vpack.c.bf16 %v1876_v57, %v1875_v33  ;;  %v7694_v22 = vpop.f32.mrb[100].mxu1  ;;  %v2072_v57 = vld [vmem:[%s8872_s2 + $0xa90] sm:$0xff] }
 0x37e   :  { %5338 = vmatprep.subr.bf16.mxu0 %v6003_v3  ;;  %v1037_v0 = vpop.f32.mrb[101].mxu1 }
 0x381   :  { %5340 = vmatpush3.bf16.msra.mxu0 %v5339_v50  ;;  %v2067_v50 = vld [vmem:[%s8872_s2 + $0xa40] sm:$0xff] }
 0x382   :  { %5341 = vmatprep.subr.bf16.mxu0 %v6003_v3  ;;  %v5384_v46 = vpack.c.bf16 %v2068_v54, %v2067_v50  ;;  %v2263_v50 = vld [vmem:[%s8872_s2 + $0xc20] sm:$0xff]  ;;  %v2264_v54 = vld [vmem:[%s8872_s2 + $0xc30] sm:$0xff] }
 0x385   :  { %5343 = vmatpush3.bf16.msra.mxu0 %v5342_v55  ;;  %v2070_v55 = vld [vmem:[%s8872_s2 + $0xa70] sm:$0xff] }
 0x386   :  { %5344 = vmatprep.subr.bf16.mxu0 %v6003_v3 }
 0x389   :  { %5346 = vmatpush3.bf16.msra.mxu0 %v5345_v6 }
 0x38a   :  { %5347 = vmatprep.subr.bf16.mxu0 %v6003_v3 }
 0x38d   :  { %5349 = vmatpush3.bf16.msra.mxu0 %v5348_v21  ;;  %v2075_v21 = vld [vmem:[%s8872_s2 + $0xac0] sm:$0xff] }
 0x38e   :  { %5350 = vmatprep.subr.bf16.mxu0 %v6003_v3  ;;  %v5396_v30 = vpack.c.bf16 %v2076_v2, %v2075_v21  ;;  %v2269_v2 = vld [vmem:[%s8872_s2 + $0xc80] sm:$0xff] }
 0x391   :  { %5352 = vmatpush3.bf16.msra.mxu0 %v5351_v11  ;;  %v2078_v11 = vld [vmem:[%s8872_s2 + $0xaf0] sm:$0xff] }
 0x392   :  { %5353 = vmatprep.subr.bf16.mxu0 %v6003_v3  ;;  %v5399_v61 = vpack.c.bf16 %v2078_v11, %v2077_v8  ;;  %v2272_v11 = vld [vmem:[%s8872_s2 + $0xcb0] sm:$0xff] }
 0x394   :  { %4612 = vmatmul.mubr.f32.vlgmr.msra.gmra.mrb[20].mxu0 %v7304_v42  ;;  %v1970_v42 = vld [vmem:[%s8872_s2 + $0x960] sm:$0xff] }
 0x395   :  { %5355 = vmatpush3.bf16.msra.mxu0 %v5354_v9  ;;  %4614 = vmatprep.mubr.msk.f32.mxu0 %vm6005_vm7, %v6004_v12  ;;  %v5363_v16 = vpack.c.bf16 %v1971_v43, %v1970_v42  ;;  %v2162_v9 = vld [vmem:[%s8872_s2 + $0xb00] sm:$0xff]  ;;  %v5405_v43 = vpack.c.bf16 %v2165_v63, %v2164_v26 }
 0x396   :  { %5356 = vmatprep.subr.bf16.mxu0 %v6003_v3  ;;  %v2360_v63 = vld [vmem:[%s8872_s2 + $0xd00] sm:$0xff] }
 0x398   :  { %4615 = vmatmul.mubr.f32.gmra.mrb[22].mxu0 %v7392_v39  ;;  %v1972_v39 = vld [vmem:[%s8872_s2 + $0x980] sm:$0xff] }
 0x399   :  { %5358 = vmatpush3.bf16.msra.mxu0 %v5357_v25  ;;  %4617 = vmatprep.mubr.msk.f32.mxu0 %vm6005_vm7, %v6004_v12  ;;  %v5366_v31 = vpack.c.bf16 %v1973_v32, %v1972_v39  ;;  %v5402_v25 = vpack.c.bf16 %v2163_v18, %v2162_v9  ;;  %v2167_v39 = vld [vmem:[%s8872_s2 + $0xb50] sm:$0xff] }
 0x39a   :  { %5359 = vmatprep.subr.bf16.mxu0 %v6003_v3  ;;  %v2274_v9 = vld [vmem:[%s8872_s2 + $0xcd0] sm:$0xff] }
 0x39c   :  { %4618 = vmatmul.mubr.f32.gmra.mrb[24].mxu0 %v7401_v41  ;;  %v1974_v41 = vld [vmem:[%s8872_s2 + $0x9a0] sm:$0xff] }
 0x39d   :  { %5361 = vmatpush3.bf16.msra.mxu0 %v5360_v36  ;;  %4652 = vmatprep.mubr.msk.f32.mxu0 %vm6005_vm7, %v6004_v12  ;;  %v5369_v45 = vpack.c.bf16 %v1975_v44, %v1974_v41  ;;  %v2171_v44 = vld [vmem:[%s8872_s2 + $0xb90] sm:$0xff] }
 0x39e   :  { %5362 = vmatprep.subr.bf16.mxu0 %v6003_v3  ;;  %v7747_v28 = vpop.f32.mrb[102].mxu1 }
 0x39f   :  { %v1042_v15 = vpop.f32.mrb[103].mxu1 }
 0x3a1   :  { %5364 = vmatpush3.bf16.msra.mxu0 %v5363_v16  ;;  %v2166_v16 = vld [vmem:[%s8872_s2 + $0xb40] sm:$0xff] }
 0x3a2   :  { %5365 = vmatprep.subr.bf16.mxu0 %v6003_v3  ;;  %v7756_v19 = vpop.f32.mrb[104].mxu1  ;;  %v5408_v32 = vpack.c.bf16 %v2167_v39, %v2166_v16  ;;  %v2362_v16 = vld [vmem:[%s8872_s2 + $0xd20] sm:$0xff]  ;;  %v2363_v39 = vld [vmem:[%s8872_s2 + $0xd30] sm:$0xff] }
 0x3a3   :  { %v1047_v17 = vpop.f32.mrb[105].mxu1 }
 0x3a4   :  { %v2275_v17 = vld [vmem:[%s8872_s2 + $0xce0] sm:$0xff] }
 0x3a5   :  { %5367 = vmatpush3.bf16.msra.mxu0 %v5366_v31  ;;  %v2169_v31 = vld [vmem:[%s8872_s2 + $0xb70] sm:$0xff] }
 0x3a6   :  { %5368 = vmatprep.subr.bf16.mxu0 %v6003_v3  ;;  %v7765_v36 = vpop.f32.mrb[106].mxu1 }
 0x3a7   :  { %v1052_v42 = vpop.f32.mrb[107].mxu1 }
 0x3a8   :  { %v2361_v42 = vld [vmem:[%s8872_s2 + $0xd10] sm:$0xff] }
 0x3a9   :  { %5370 = vmatpush3.bf16.msra.mxu0 %v5369_v45 }
 0x3aa   :  { %5371 = vmatprep.subr.bf16.mxu0 %v6003_v3 }
 0x3ad   :  { %5373 = vmatpush3.bf16.msra.mxu0 %v5372_v51  ;;  %v2174_v51 = vld [vmem:[%s8872_s2 + $0xbc0] sm:$0xff] }
 0x3ae   :  { %5374 = vmatprep.subr.bf16.mxu0 %v6003_v3  ;;  %v5420_v10 = vpack.c.bf16 %v2175_v53, %v2174_v51  ;;  %v2372_v51 = vld [vmem:[%s8872_s2 + $0xdc0] sm:$0xff]  ;;  %v2373_v53 = vld [vmem:[%s8872_s2 + $0xdd0] sm:$0xff] }
 0x3b1   :  { %5376 = vmatpush3.bf16.msra.mxu0 %v5375_v40  ;;  %v2177_v40 = vld [vmem:[%s8872_s2 + $0xbf0] sm:$0xff] }
 0x3b2   :  { %5377 = vmatprep.subr.bf16.mxu0 %v6003_v3  ;;  %v5423_v24 = vpack.c.bf16 %v2177_v40, %v2176_v56  ;;  %v2374_v56 = vld [vmem:[%s8872_s2 + $0xde0] sm:$0xff]  ;;  %v2375_v40 = vld [vmem:[%s8872_s2 + $0xdf0] sm:$0xff] }
 0x3b4   :  { %4653 = vmatmul.mubr.f32.vlgmr.msra.gmra.mrb[20].mxu0 %v7410_v59  ;;  %v2069_v59 = vld [vmem:[%s8872_s2 + $0xa60] sm:$0xff] }
 0x3b5   :  { %5379 = vmatpush3.bf16.msra.mxu0 %v5378_v60  ;;  %4655 = vmatprep.mubr.msk.f32.mxu0 %vm6005_vm7, %v6004_v12  ;;  %v5387_v33 = vpack.c.bf16 %v2070_v55, %v2069_v59  ;;  %v2261_v60 = vld [vmem:[%s8872_s2 + $0xc00] sm:$0xff]  ;;  %v5429_v55 = vpack.c.bf16 %v2264_v54, %v2263_v50 }
 0x3b6   :  { %5380 = vmatprep.subr.bf16.mxu0 %v6003_v3  ;;  %v2463_v54 = vld [vmem:[%s8872_s2 + $0xe40] sm:$0xff] }
 0x3b8   :  { %4656 = vmatmul.mubr.f32.gmra.mrb[22].mxu0 %v7463_v4  ;;  %v2071_v4 = vld [vmem:[%s8872_s2 + $0xa80] sm:$0xff] }
 0x3b9   :  { %5382 = vmatpush3.bf16.msra.mxu0 %v5381_v27  ;;  %4658 = vmatprep.mubr.msk.f32.mxu0 %vm6005_vm7, %v6004_v12  ;;  %v5390_v6 = vpack.c.bf16 %v2072_v57, %v2071_v4  ;;  %v5426_v27 = vpack.c.bf16 %v2262_v29, %v2261_v60  ;;  %v2266_v4 = vld [vmem:[%s8872_s2 + $0xc50] sm:$0xff] }
 0x3ba   :  { %5383 = vmatprep.subr.bf16.mxu0 %v6003_v3  ;;  %v2460_v60 = vld [vmem:[%s8872_s2 + $0xe10] sm:$0xff] }
 0x3bc   :  { %4659 = vmatmul.mubr.f32.gmra.mrb[24].mxu0 %v7472_v20  ;;  %v2073_v20 = vld [vmem:[%s8872_s2 + $0xaa0] sm:$0xff] }
 0x3bd   :  { %5385 = vmatpush3.bf16.msra.mxu0 %v5384_v46  ;;  %4693 = vmatprep.mubr.msk.f32.mxu0 %vm6005_vm7, %v6004_v12  ;;  %v5393_v1 = vpack.c.bf16 %v2074_v13, %v2073_v20  ;;  %v2267_v20 = vld [vmem:[%s8872_s2 + $0xc60] sm:$0xff]  ;;  %v2268_v13 = vld [vmem:[%s8872_s2 + $0xc70] sm:$0xff] }
 0x3be   :  { %5386 = vmatprep.subr.bf16.mxu0 %v6003_v3  ;;  %v7818_v47 = vpop.f32.mrb[108].mxu1 }
 0x3bf   :  { %v1057_v38 = vpop.f32.mrb[109].mxu1 }
 0x3c0   :  { %v5471_v38 = vpack.c.bf16 %v2375_v40, %v2374_v56 }
 0x3c1   :  { %5388 = vmatpush3.bf16.msra.mxu0 %v5387_v33  ;;  %v2265_v33 = vld [vmem:[%s8872_s2 + $0xc40] sm:$0xff] }
 0x3c2   :  { %5389 = vmatprep.subr.bf16.mxu0 %v6003_v3  ;;  %v7827_v62 = vpop.f32.mrb[110].mxu1 }
 0x3c3   :  { %v1062_v0 = vpop.f32.mrb[111].mxu1 }
 0x3c4   :  { %v2461_v0 = vld [vmem:[%s8872_s2 + $0xe20] sm:$0xff] }
 0x3c5   :  { %5391 = vmatpush3.bf16.msra.mxu0 %v5390_v6 }
 0x3c6   :  { %5392 = vmatprep.subr.bf16.mxu0 %v6003_v3  ;;  %v7836_v46 = vpop.f32.mrb[112].mxu1 }
 0x3c7   :  { %v1067_v59 = vpop.f32.mrb[113].mxu1 }
 0x3c8   :  { %v2464_v59 = vld [vmem:[%s8872_s2 + $0xe50] sm:$0xff] }
 0x3c9   :  { %5394 = vmatpush3.bf16.msra.mxu0 %v5393_v1 }
 0x3ca   :  { %5395 = vmatprep.subr.bf16.mxu0 %v6003_v3  ;;  %v7848_v57 = vpop.f32.mrb[114].mxu1 }
 0x3cb   :  { %v1072_v6 = vpop.f32.mrb[115].mxu1 }
 0x3cc   :  { %v2468_v6 = vld [vmem:[%s8872_s2 + $0xe90] sm:$0xff] }
 0x3cd   :  { %5397 = vmatpush3.bf16.msra.mxu0 %v5396_v30  ;;  %v2270_v30 = vld [vmem:[%s8872_s2 + $0xc90] sm:$0xff] }
 0x3ce   :  { %5398 = vmatprep.subr.bf16.mxu0 %v6003_v3  ;;  %v7860_v1 = vpop.f32.mrb[116].mxu1  ;;  %v5438_v8 = vpack.c.bf16 %v2270_v30, %v2269_v2  ;;  %v2473_v30 = vld [vmem:[%s8872_s2 + $0xee0] sm:$0xff] }
 0x3cf   :  { %v1077_v21 = vpop.f32.mrb[117].mxu1 }
 0x3d0   :  { %v2471_v21 = vld [vmem:[%s8872_s2 + $0xec0] sm:$0xff] }
 0x3d1   :  { %5400 = vmatpush3.bf16.msra.mxu0 %v5399_v61  ;;  %v2273_v61 = vld [vmem:[%s8872_s2 + $0xcc0] sm:$0xff] }
 0x3d2   :  { %5401 = vmatprep.subr.bf16.mxu0 %v6003_v3  ;;  %v5444_v18 = vpack.c.bf16 %v2274_v9, %v2273_v61  ;;  %v2560_v9 = vld [vmem:[%s8872_s2 + $0xf20] sm:$0xff] }
 0x3d4   :  { %4694 = vmatmul.mubr.f32.vlgmr.msra.gmra.mrb[20].mxu0 %v7481_v5  ;;  %v2168_v5 = vld [vmem:[%s8872_s2 + $0xb60] sm:$0xff] }
 0x3d5   :  { %5403 = vmatpush3.bf16.msra.mxu0 %v5402_v25  ;;  %4696 = vmatprep.mubr.msk.f32.mxu0 %vm6005_vm7, %v6004_v12  ;;  %v5411_v41 = vpack.c.bf16 %v2169_v31, %v2168_v5  ;;  %v2276_v25 = vld [vmem:[%s8872_s2 + $0xcf0] sm:$0xff]  ;;  %v2364_v5 = vld [vmem:[%s8872_s2 + $0xd40] sm:$0xff] }
 0x3d6   :  { %5404 = vmatprep.subr.bf16.mxu0 %v6003_v3  ;;  %v5447_v26 = vpack.c.bf16 %v2276_v25, %v2275_v17  ;;  %v2365_v31 = vld [vmem:[%s8872_s2 + $0xd50] sm:$0xff]  ;;  %v2562_v25 = vld [vmem:[%s8872_s2 + $0xf40] sm:$0xff] }
 0x3d8   :  { %4697 = vmatmul.mubr.f32.gmra.mrb[22].mxu0 %v7534_v52  ;;  %v2170_v52 = vld [vmem:[%s8872_s2 + $0xb80] sm:$0xff] }
 0x3d9   :  { %5406 = vmatpush3.bf16.msra.mxu0 %v5405_v43  ;;  %4699 = vmatprep.mubr.msk.f32.mxu0 %vm6005_vm7, %v6004_v12  ;;  %v5414_v45 = vpack.c.bf16 %v2171_v44, %v2170_v52  ;;  %v5450_v43 = vpack.c.bf16 %v2361_v42, %v2360_v63  ;;  %v2367_v52 = vld [vmem:[%s8872_s2 + $0xd70] sm:$0xff] }
 0x3da   :  { %5407 = vmatprep.subr.bf16.mxu0 %v6003_v3  ;;  %v2565_v42 = vld [vmem:[%s8872_s2 + $0xf70] sm:$0xff] }
 0x3dc   :  { %4700 = vmatmul.mubr.f32.gmra.mrb[24].mxu0 %v7543_v37  ;;  %v2172_v37 = vld [vmem:[%s8872_s2 + $0xba0] sm:$0xff] }
 0x3dd   :  { %5409 = vmatpush3.bf16.msra.mxu0 %v5408_v32  ;;  %4734 = vmatprep.mubr.msk.f32.mxu0 %vm6005_vm7, %v6004_v12  ;;  %v5417_v49 = vpack.c.bf16 %v2173_v14, %v2172_v37  ;;  %v5453_v32 = vpack.c.bf16 %v2363_v39, %v2362_v16  ;;  %v2371_v14 = vld [vmem:[%s8872_s2 + $0xdb0] sm:$0xff] }
 0x3de   :  { %5410 = vmatprep.subr.bf16.mxu0 %v6003_v3  ;;  %v2567_v16 = vld [vmem:[%s8872_s2 + $0xf90] sm:$0xff] }
 0x3e1   :  { %5412 = vmatpush3.bf16.msra.mxu0 %v5411_v41  ;;  %v5456_v41 = vpack.c.bf16 %v2365_v31, %v2364_v5  ;;  %v2570_v31 = vld [vmem:[%s8872_s2 + $0xfc0] sm:$0xff] }
 0x3e2   :  { %5413 = vmatprep.subr.bf16.mxu0 %v6003_v3 }
 0x3e5   :  { %5415 = vmatpush3.bf16.msra.mxu0 %v5414_v45  ;;  %v2369_v45 = vld [vmem:[%s8872_s2 + $0xd90] sm:$0xff] }
 0x3e6   :  { %5416 = vmatprep.subr.bf16.mxu0 %v6003_v3 }
 0x3e9   :  { %5418 = vmatpush3.bf16.msra.mxu0 %v5417_v49 }
 0x3ea   :  { %5419 = vmatprep.subr.bf16.mxu0 %v6003_v3 }
 0x3ed   :  { %5421 = vmatpush3.bf16.msra.mxu0 %v5420_v10  ;;  %v5468_v10 = vpack.c.bf16 %v2373_v53, %v2372_v51 }
 0x3ee   :  { %5422 = vmatprep.subr.bf16.mxu0 %v6003_v3 }
 0x3f1   :  { %5424 = vmatpush3.bf16.msra.mxu0 %v5423_v24  ;;  %v2459_v24 = vld [vmem:[%s8872_s2 + $0xe00] sm:$0xff] }
 0x3f2   :  { %5425 = vmatprep.subr.bf16.mxu0 %v6003_v3  ;;  %v5474_v29 = vpack.c.bf16 %v2460_v60, %v2459_v24 }
 0x3f4   :  { %4735 = vmatmul.mubr.f32.vlgmr.msra.gmra.mrb[20].mxu0 %v7552_v58  ;;  %v5432_v58 = vpack.c.bf16 %v2266_v4, %v2265_v33  ;;  %v2466_v33 = vld [vmem:[%s8872_s2 + $0xe70] sm:$0xff] }
 0x3f5   :  { %5427 = vmatpush3.bf16.msra.mxu0 %v5426_v27  ;;  %4737 = vmatprep.mubr.msk.f32.mxu0 %vm6005_vm7, %v6004_v12  ;;  %v2462_v27 = vld [vmem:[%s8872_s2 + $0xe30] sm:$0xff] }
 0x3f6   :  { %5428 = vmatprep.subr.bf16.mxu0 %v6003_v3  ;;  %v5477_v50 = vpack.c.bf16 %v2462_v27, %v2461_v0 }
 0x3f8   :  { %4738 = vmatmul.mubr.f32.gmra.mrb[22].mxu0 %v7605_v7  ;;  %v5435_v7 = vpack.c.bf16 %v2268_v13, %v2267_v20  ;;  %v2470_v20 = vld [vmem:[%s8872_s2 + $0xeb0] sm:$0xff] }
 0x3f9   :  { %5430 = vmatpush3.bf16.msra.mxu0 %v5429_v55  ;;  %4740 = vmatprep.mubr.msk.f32.mxu0 %vm6005_vm7, %v6004_v12  ;;  %v5480_v55 = vpack.c.bf16 %v2464_v59, %v2463_v54 }
 0x3fa   :  { %5431 = vmatprep.subr.bf16.mxu0 %v6003_v3 }
 0x3fc   :  { %4741 = vmatmul.mubr.f32.gmra.mrb[24].mxu0 %v7614_v48  ;;  %v2271_v48 = vld [vmem:[%s8872_s2 + $0xca0] sm:$0xff] }
 0x3fd   :  { %5433 = vmatpush3.bf16.msra.mxu0 %v5432_v58  ;;  %4775 = vmatprep.mubr.msk.f32.mxu0 %vm6005_vm7, %v6004_v12  ;;  %v5441_v15 = vpack.c.bf16 %v2272_v11, %v2271_v48  ;;  %v2558_v11 = vld [vmem:[%s8872_s2 + $0xf00] sm:$0xff] }
 0x3fe   :  { %5434 = vmatprep.subr.bf16.mxu0 %v6003_v3 }
 0x401   :  { %5436 = vmatpush3.bf16.msra.mxu0 %v5435_v7  ;;  %v2472_v7 = vld [vmem:[%s8872_s2 + $0xed0] sm:$0xff] }
 0x402   :  { %5437 = vmatprep.subr.bf16.mxu0 %v6003_v3  ;;  %v5492_v2 = vpack.c.bf16 %v2472_v7, %v2471_v21 }
 0x405   :  { %5439 = vmatpush3.bf16.msra.mxu0 %v5438_v8  ;;  %v2474_v8 = vld [vmem:[%s8872_s2 + $0xef0] sm:$0xff] }
 0x406   :  { %5440 = vmatprep.subr.bf16.mxu0 %v6003_v3  ;;  %v5495_v48 = vpack.c.bf16 %v2474_v8, %v2473_v30  ;;  %v2657_v30 = vld [vmem:[%s8873_s3 + $0x2] ss:$0 sm:$0xff] }
 0x409   :  { %5442 = vmatpush3.bf16.msra.mxu0 %v5441_v15  ;;  %v2559_v15 = vld [vmem:[%s8872_s2 + $0xf10] sm:$0xff] }
 0x40a   :  { %5443 = vmatprep.subr.bf16.mxu0 %v6003_v3  ;;  %v5498_v61 = vpack.c.bf16 %v2559_v15, %v2558_v11 }
 0x40d   :  { %5445 = vmatpush3.bf16.msra.mxu0 %v5444_v18  ;;  %v2561_v18 = vld [vmem:[%s8872_s2 + $0xf30] sm:$0xff] }
 0x40e   :  { %5446 = vmatprep.subr.bf16.mxu0 %v6003_v3  ;;  %v5501_v17 = vpack.c.bf16 %v2561_v18, %v2560_v9 }
 0x411   :  { %5448 = vmatpush3.bf16.msra.mxu0 %v5447_v26  ;;  %v2563_v26 = vld [vmem:[%s8872_s2 + $0xf50] sm:$0xff] }
 0x412   :  { %5449 = vmatprep.subr.bf16.mxu0 %v6003_v3  ;;  %v5504_v63 = vpack.c.bf16 %v2563_v26, %v2562_v25 }
 0x414   :  { %4776 = vmatmul.mubr.f32.vlgmr.msra.gmra.mrb[20].mxu0 %v7623_v23  ;;  %v2366_v23 = vld [vmem:[%s8872_s2 + $0xd60] sm:$0xff] }
 0x415   :  { %5451 = vmatpush3.bf16.msra.mxu0 %v5450_v43  ;;  %4778 = vmatprep.mubr.msk.f32.mxu0 %vm6005_vm7, %v6004_v12  ;;  %v5459_v44 = vpack.c.bf16 %v2367_v52, %v2366_v23  ;;  %v2572_v52 = vld [vmem:[%s8872_s2 + $0xfe0] sm:$0xff] }
 0x416   :  { %5452 = vmatprep.subr.bf16.mxu0 %v6003_v3 }
 0x418   :  { %4779 = vmatmul.mubr.f32.gmra.mrb[22].mxu0 %v7676_v35  ;;  %v2368_v35 = vld [vmem:[%s8872_s2 + $0xd80] sm:$0xff] }
 0x419   :  { %5454 = vmatpush3.bf16.msra.mxu0 %v5453_v32  ;;  %4781 = vmatprep.mubr.msk.f32.mxu0 %vm6005_vm7, %v6004_v12  ;;  %v5462_v37 = vpack.c.bf16 %v2369_v45, %v2368_v35  ;;  %v2569_v32 = vld [vmem:[%s8872_s2 + $0xfb0] sm:$0xff]  ;;  %v2712_v45 = vld [vmem:[%s8871_s1 + $0x300] sm:$0xff] }
 0x41a   :  { %5455 = vmatprep.subr.bf16.mxu0 %v6003_v3  ;;  %4913 = vmatprep.mubr.msk.f32.mxu1 %vm2716_vm0, %v2712_v45  ;;  %v2713_v45 = vld [vmem:[%s8871_s1 + $0x310] sm:$0xff] }
 0x41c   :  { %4782 = vmatmul.mubr.f32.gmra.mrb[24].mxu0 %v7685_v34  ;;  %v2370_v34 = vld [vmem:[%s8872_s2 + $0xda0] sm:$0xff] }
 0x41d   :  { %5457 = vmatpush3.bf16.msra.mxu0 %v5456_v41  ;;  %4816 = vmatprep.mubr.msk.f32.mxu0 %vm6005_vm7, %v6004_v12  ;;  %v5465_v49 = vpack.c.bf16 %v2371_v14, %v2370_v34  ;;  %v2571_v41 = vld [vmem:[%s8872_s2 + $0xfd0] sm:$0xff] }
 0x41e   :  { %5458 = vmatprep.subr.bf16.mxu0 %v6003_v3  ;;  %v5516_v23 = vpack.c.bf16 %v2571_v41, %v2570_v31 }
 0x421   :  { %5460 = vmatpush3.bf16.msra.mxu0 %v5459_v44  ;;  %v2573_v44 = vld [vmem:[%s8872_s2 + $0xff0] sm:$0xff] }
 0x422   :  { %5461 = vmatprep.subr.bf16.mxu0 %v6003_v3  ;;  %v5519_v35 = vpack.c.bf16 %v2573_v44, %v2572_v52  ;;  %v2830_v52 = vld [vmem:[%s8872_s2 + $0x1100] sm:$0xff]  ;;  %v2831_v44 = vld [vmem:[%s8872_s2 + $0x1110] sm:$0xff] }
 0x425   :  { %5463 = vmatpush3.bf16.msra.mxu0 %v5462_v37 }
 0x426   :  { %5464 = vmatprep.subr.bf16.mxu0 %v6003_v3 }
 0x429   :  { %5466 = vmatpush3.bf16.msra.mxu0 %v5465_v49 }
 0x42a   :  { %5467 = vmatprep.subr.bf16.mxu0 %v6003_v3 }
 0x42d   :  { %5469 = vmatpush3.bf16.msra.mxu0 %v5468_v10 }
 0x42e   :  { %5470 = vmatprep.subr.bf16.mxu0 %v6003_v3 }
 0x431   :  { %5472 = vmatpush3.bf16.msra.mxu0 %v5471_v38 }
 0x432   :  { %5473 = vmatprep.subr.bf16.mxu0 %v6003_v3 }
 0x434   :  { %4817 = vmatmul.mubr.f32.vlgmr.msra.gmra.mrb[20].mxu0 %v7694_v22  ;;  %v2465_v22 = vld [vmem:[%s8872_s2 + $0xe60] sm:$0xff] }
 0x435   :  { %5475 = vmatpush3.bf16.msra.mxu0 %v5474_v29  ;;  %4819 = vmatprep.mubr.msk.f32.mxu0 %vm6005_vm7, %v6004_v12  ;;  %v5483_v4 = vpack.c.bf16 %v2466_v33, %v2465_v22 }
 0x436   :  { %5476 = vmatprep.subr.bf16.mxu0 %v6003_v3 }
 0x438   :  { %4820 = vmatmul.mubr.f32.gmra.mrb[22].mxu0 %v7747_v28  ;;  %v2467_v28 = vld [vmem:[%s8872_s2 + $0xe80] sm:$0xff] }
 0x439   :  { %5478 = vmatpush3.bf16.msra.mxu0 %v5477_v50  ;;  %4822 = vmatprep.mubr.msk.f32.mxu0 %vm6005_vm7, %v6004_v12  ;;  %v5486_v58 = vpack.c.bf16 %v2468_v6, %v2467_v28 }
 0x43a   :  { %5479 = vmatprep.subr.bf16.mxu0 %v6003_v3 }
 0x43c   :  { %4823 = vmatmul.mubr.f32.gmra.mrb[24].mxu0 %v7756_v19  ;;  %v2469_v19 = vld [vmem:[%s8872_s2 + $0xea0] sm:$0xff] }
 0x43d   :  { %5481 = vmatpush3.bf16.msra.mxu0 %v5480_v55  ;;  %4857 = vmatprep.mubr.msk.f32.mxu0 %vm6005_vm7, %v6004_v12  ;;  %v5489_v13 = vpack.c.bf16 %v2470_v20, %v2469_v19 }
 0x43e   :  { %5482 = vmatprep.subr.bf16.mxu0 %v6003_v3 }
 0x441   :  { %5484 = vmatpush3.bf16.msra.mxu0 %v5483_v4 }
 0x442   :  { %5485 = vmatprep.subr.bf16.mxu0 %v6003_v3 }
 0x445   :  { %5487 = vmatpush3.bf16.msra.mxu0 %v5486_v58 }
 0x446   :  { %5488 = vmatprep.subr.bf16.mxu0 %v6003_v3 }
 0x449   :  { %5490 = vmatpush3.bf16.msra.mxu0 %v5489_v13 }
 0x44a   :  { %5491 = vmatprep.subr.bf16.mxu0 %v6003_v3 }
 0x44d   :  { %5493 = vmatpush3.bf16.msra.mxu0 %v5492_v2 }
 0x44e   :  { %5494 = vmatprep.subr.bf16.mxu0 %v6003_v3 }
 0x451   :  { %5496 = vmatpush3.bf16.msra.mxu0 %v5495_v48 }
 0x452   :  { %5497 = vmatprep.subr.bf16.mxu0 %v6003_v3 }
 0x454   :  { %4858 = vmatmul.mubr.f32.vlgmr.msra.gmra.mrb[20].mxu0 %v7765_v36  ;;  %v2564_v36 = vld [vmem:[%s8872_s2 + $0xf60] sm:$0xff] }
 0x455   :  { %5499 = vmatpush3.bf16.msra.mxu0 %v5498_v61  ;;  %4860 = vmatprep.mubr.msk.f32.mxu0 %vm6005_vm7, %v6004_v12  ;;  %v5507_v43 = vpack.c.bf16 %v2565_v42, %v2564_v36  ;;  %v2658_v61 = vld [vmem:[%s8873_s3 + $0x3] ss:$0 sm:$0xff] }
 0x456   :  { %5500 = vmatprep.subr.bf16.mxu0 %v6003_v3 }
 0x458   :  { %4861 = vmatmul.mubr.f32.gmra.mrb[22].mxu0 %v7818_v47  ;;  %v2566_v47 = vld [vmem:[%s8872_s2 + $0xf80] sm:$0xff] }
 0x459   :  { %5502 = vmatpush3.bf16.msra.mxu0 %v5501_v17  ;;  %4863 = vmatprep.mubr.msk.f32.mxu0 %vm6005_vm7, %v6004_v12  ;;  %v5510_v39 = vpack.c.bf16 %v2567_v16, %v2566_v47 }
 0x45a   :  { %5503 = vmatprep.subr.bf16.mxu0 %v6003_v3 }
 0x45c   :  { %4864 = vmatmul.mubr.f32.gmra.mrb[24].mxu0 %v7827_v62  ;;  %v2568_v62 = vld [vmem:[%s8872_s2 + $0xfa0] sm:$0xff] }
 0x45d   :  { %5505 = vmatpush3.bf16.msra.mxu0 %v5504_v63  ;;  %4898 = vmatprep.mubr.msk.f32.mxu0 %vm6005_vm7, %v6004_v12  ;;  %v5513_v5 = vpack.c.bf16 %v2569_v32, %v2568_v62 }
 0x45e   :  { %5506 = vmatprep.subr.bf16.mxu0 %v6003_v3 }
 0x461   :  { %5508 = vmatpush3.bf16.msra.mxu0 %v5507_v43 }
 0x462   :  { %5509 = vmatprep.subr.bf16.mxu0 %v6003_v3 }
 0x465   :  { %5511 = vmatpush3.bf16.msra.mxu0 %v5510_v39 }
 0x466   :  { %5512 = vmatprep.subr.bf16.mxu0 %v6003_v3 }
 0x469   :  { %5514 = vmatpush3.bf16.msra.mxu0 %v5513_v5 }
 0x46a   :  { %5515 = vmatprep.subr.bf16.mxu0 %v6003_v3 }
 0x46d   :  { %5517 = vmatpush3.bf16.msra.mxu0 %v5516_v23 }
 0x46e   :  { %5518 = vmatprep.subr.bf16.mxu0 %v6003_v3 }
 0x471   :  { %5520 = vmatpush3.bf16.msra.mxu0 %v5519_v35 }
 0x474   :  { %4899 = vmatmul.mubr.f32.vlgmr.msra.gmra.mrb[20].mxu0 %v7836_v46 }
 0x475   :  { %4901 = vmatprep.mubr.msk.f32.mxu0 %vm6005_vm7, %v6004_v12 }
 0x478   :  { %4902 = vmatmul.mubr.f32.gmra.mrb[22].mxu0 %v7848_v57 }
 0x479   :  { %4904 = vmatprep.mubr.msk.f32.mxu0 %vm6005_vm7, %v6004_v12 }
 0x47c   :  { %4905 = vmatmul.mubr.f32.gmra.mrb[24].mxu0 %v7860_v1 }
 0x547   :  { %v2640_v37 = vpop.f32.mrb[20].mxu0 }
 0x548   :  { %v4900_v34 = vpop.f32.mrb[21].mxu0  ;;  %v2667_v14 = vmul.f32 %v2640_v37, %v2640_v37 }
 0x549   :  { %v2714_v34 = vld [vmem:[%s8871_s1 + $0x320] sm:$0xff] }
 0x54b   :  { %v2645_v46 = vpop.f32.mrb[22].mxu0 }
 0x54c   :  { %v2659_v49 = vadd.f32 %v2645_v46, %v2640_v37  ;;  %v2668_v51 = vmul.f32 %v2645_v46, %v2645_v46  ;;  %v4903_v53 = vpop.f32.mrb[23].mxu0 }
 0x54d   :  { %v2834_v53 = vld [vmem:[%s8872_s2 + $0x1140] sm:$0xff] }
 0x54e   :  { %v2670_v57 = vadd.f32 %v2668_v51, %v2667_v14  ;;  %v2833_v14 = vld [vmem:[%s8872_s2 + $0x1130] sm:$0xff] }
 0x54f   :  { %v2650_v10 = vpop.f32.mrb[24].mxu0 }
 0x550   :  { %v2660_v56 = vadd.f32 %v2659_v49, %v2650_v10  ;;  %v2669_v40 = vmul.f32 %v2650_v10, %v2650_v10  ;;  %v4906_v38 = vpop.f32.mrb[25].mxu0  ;;  %v2715_v49 = vld [vmem:[%s8871_s1 + $0x330] sm:$0xff] }
 0x552   :  { %v2661_v1 = vrot.slane %v2660_v56, 4  ;;  %v2671_v24 = vadd.f32 %v2670_v57, %v2669_v40  ;;  %v2835_v57 = vld [vmem:[%s8872_s2 + $0x1150] sm:$0xff] }
 0x553   :  { %v2837_v40 = vld [vmem:[%s8872_s2 + $0x1170] sm:$0xff] }
 0x554   :  { %v2662_v60 = vadd.f32 %v2661_v1, %v2660_v56  ;;  %v2672_v29 = vrot.slane %v2671_v24, 4  ;;  %v2836_v56 = vld [vmem:[%s8872_s2 + $0x1160] sm:$0xff] }
 0x555   :  { %v5535_v38 = vpack.c.bf16 %v2837_v40, %v2836_v56  ;;  %v2838_v1 = vld [vmem:[%s8872_s2 + $0x1180] sm:$0xff]  ;;  %v2999_v56 = vld [vmem:[%s8872_s2 + $0x12d0] sm:$0xff] }
 0x556   :  { %v2663_v0 = vrot.slane %v2662_v60, 2  ;;  %v2673_v27 = vadd.f32 %v2672_v29, %v2671_v24  ;;  %v2839_v24 = vld [vmem:[%s8872_s2 + $0x1190] sm:$0xff]  ;;  %v2840_v29 = vld [vmem:[%s8872_s2 + $0x11a0] sm:$0xff] }
 0x558   :  { %v2664_v50 = vadd.f32 %v2663_v0, %v2662_v60  ;;  %v2674_v54 = vrot.slane %v2673_v27, 2  ;;  %v5538_v60 = vpack.c.bf16 %v2839_v24, %v2838_v1  ;;  %v2841_v0 = vld [vmem:[%s8872_s2 + $0x11b0] sm:$0xff] }
 0x559   :  { %v3001_v1 = vld [vmem:[%s8872_s2 + $0x12f0] sm:$0xff] }
 0x55a   :  { %v2665_v59 = vrot.slane %v2664_v50, 1  ;;  %v2675_v55 = vadd.f32 %v2674_v54, %v2673_v27  ;;  %v5541_v27 = vpack.c.bf16 %v2841_v0, %v2840_v29  ;;  %v2843_v54 = vld [vmem:[%s8872_s2 + $0x11d0] sm:$0xff] }
 0x55b   :  { %v3074_v29 = vld [vmem:[%s8872_s2 + $0x1310] sm:$0xff] }
 0x55c   :  { %v2666_v22 = vadd.f32 %v2665_v59, %v2664_v50  ;;  %v2676_v33 = vrot.slane %v2675_v55, 1  ;;  %v2842_v50 = vld [vmem:[%s8872_s2 + $0x11c0] sm:$0xff] }
 0x55d   :  { %v5544_v59 = vpack.c.bf16 %v2843_v54, %v2842_v50  ;;  %v3076_v50 = vld [vmem:[%s8872_s2 + $0x1330] sm:$0xff] }
 0x55e   :  { %v2677_v4 = vadd.f32 %v2676_v33, %v2675_v55  ;;  %v2678_v28 = vmul.f32 0.055555556, %v2666_v22  ;;  %v2844_v55 = vld [vmem:[%s8872_s2 + $0x11e0] sm:$0xff]  ;;  %v2845_v22 = vld [vmem:[%s8872_s2 + $0x11f0] sm:$0xff] }
 0x55f   :  { %v5547_v33 = vpack.c.bf16 %v2845_v22, %v2844_v55  ;;  %v3078_v55 = vld [vmem:[%s8872_s2 + $0x1350] sm:$0xff] }
 0x560   :  { %v2679_v6 = vmul.f32 0.055555556, %v2677_v4  ;;  %v2680_v58 = vmul.f32 %v2678_v28, %v2678_v28  ;;  %v2683_v19 = vsub.f32 %v2640_v37, %v2678_v28  ;;  %v2684_v20 = vsub.f32 %v2645_v46, %v2678_v28  ;;  %v2832_v46 = vld [vmem:[%s8872_s2 + $0x1120] sm:$0xff] }
 0x561   :  { %v2685_v13 = vsub.f32 %v2650_v10, %v2678_v28  ;;  %v5526_v37 = vpack.c.bf16 %v2831_v44, %v2830_v52  ;;  %v5529_v51 = vpack.c.bf16 %v2833_v14, %v2832_v46  ;;  %v5532_v10 = vpack.c.bf16 %v2835_v57, %v2834_v53  ;;  %v2814_v4 = vld [vmem:[%s8872_s2 + $0x1000] sm:$0xff]  ;;  %v2815_v28 = vld [vmem:[%s8872_s2 + $0x1010] sm:$0xff] }
 0x562   :  { %v2681_v21 = vsub.f32 %v2679_v6, %v2680_v58  ;;  %v2686_v8 = vmul.f32 %v2683_v19, %v2657_v30  ;;  %v2687_v48 = vmul.f32 %v2684_v20, %v2657_v30  ;;  %v5550_v6 = vpack.c.bf16 %v2815_v28, %v2814_v4  ;;  %v2816_v58 = vld [vmem:[%s8872_s2 + $0x1020] sm:$0xff]  ;;  %v2817_v19 = vld [vmem:[%s8872_s2 + $0x1030] sm:$0xff] }
 0x563   :  { %v2688_v11 = vmul.f32 %v2685_v13, %v2657_v30  ;;  %v2990_v52 = vld [vmem:[%s8872_s2 + $0x1240] sm:$0xff]  ;;  %v2991_v44 = vld [vmem:[%s8872_s2 + $0x1250] sm:$0xff] }
 0x564   :  { %v2682_v7 = vmax.f32 %v2681_v21, 0.0  ;;  %v5553_v21 = vpack.c.bf16 %v2817_v19, %v2816_v58  ;;  %v2994_v46 = vld [vmem:[%s8872_s2 + $0x1280] sm:$0xff]  ;;  %v2995_v14 = vld [vmem:[%s8872_s2 + $0x1290] sm:$0xff] }
 0x565   :  { %v2997_v53 = vld [vmem:[%s8872_s2 + $0x12b0] sm:$0xff] }
 0x566   :  { %v2689_v2 = vadd.f32 1e-05, %v2682_v7  ;;  %v2818_v7 = vld [vmem:[%s8872_s2 + $0x1040] sm:$0xff]  ;;  %v3080_v4 = vld [vmem:[%s8872_s2 + $0x1370] sm:$0xff] }
 0x567   :  { %v3082_v58 = vld [vmem:[%s8872_s2 + $0x1390] sm:$0xff] }
 0x568   :  { %5963 = vrsqrt.f32 %v2689_v2  ;;  %v2819_v2 = vld [vmem:[%s8872_s2 + $0x1050] sm:$0xff] }
 0x572   :  { %v5964_v15 = vpop.eup %5963 }
 0x573   :  { %v2693_v9 = vmul.f32 %v5964_v15, %v2688_v11  ;;  %v2691_v18 = vmul.f32 %v5964_v15, %v2686_v8  ;;  %v2692_v17 = vmul.f32 %v5964_v15, %v2687_v48  ;;  %v5556_v48 = vpack.c.bf16 %v2819_v2, %v2818_v7  ;;  %v2820_v11 = vld [vmem:[%s8872_s2 + $0x1060] sm:$0xff]  ;;  %v2821_v15 = vld [vmem:[%s8872_s2 + $0x1070] sm:$0xff] }
 0x574   :  { %v3085_v7 = vld [vmem:[%s8872_s2 + $0x13c0] sm:$0xff]  ;;  %v3086_v2 = vld [vmem:[%s8872_s2 + $0x13d0] sm:$0xff] }
 0x575   :  { %v2694_v25 = vadd.f32 %v2691_v18, %v2658_v61  ;;  %v2695_v26 = vadd.f32 %v2692_v17, %v2658_v61  ;;  %v2696_v63 = vadd.f32 %v2693_v9, %v2658_v61  ;;  %v5559_v61 = vpack.c.bf16 %v2821_v15, %v2820_v11  ;;  %v2822_v9 = vld [vmem:[%s8872_s2 + $0x1080] sm:$0xff]  ;;  %v2823_v18 = vld [vmem:[%s8872_s2 + $0x1090] sm:$0xff] }
 0x576   :  { %v5562_v17 = vpack.c.bf16 %v2823_v18, %v2822_v9  ;;  %v3088_v11 = vld [vmem:[%s8872_s2 + $0x13f0] sm:$0xff]  ;;  %v3226_v9 = vld [vmem:[%s8872_s2 + $0x1518] sm:$0xff]  ;;  %v3223_v18 = vld [vmem:[%s8872_s2 + $0x1500] sm:$0xff] }
 0x577   :  { %v2700_v36 = vmul.f32 1.442695, %v2694_v25  ;;  %v2702_v42 = vmul.f32 1.442695, %v2695_v26  ;;  %v2704_v43 = vmul.f32 1.442695, %v2696_v63 }
 0x578   :  { %vm2697_vm8 = vcmp.gt.f32.partialorder %v2694_v25, 0.0  ;;  %vm2698_vm9 = vcmp.gt.f32.partialorder %v2695_v26, 0.0  ;;  %vm2699_vm10 = vcmp.gt.f32.partialorder %v2696_v63, 0.0 }
 0x579   :  { %5965 = vpow2.f32 %v2700_v36  ;;  %v2826_v36 = vld [vmem:[%s8872_s2 + $0x10c0] sm:$0xff] }
 0x57a   :  { %5967 = vpow2.f32 %v2702_v42  ;;  %v2827_v42 = vld [vmem:[%s8872_s2 + $0x10d0] sm:$0xff] }
 0x57b   :  { %5969 = vpow2.f32 %v2704_v43  ;;  %v5568_v43 = vpack.c.bf16 %v2827_v42, %v2826_v36  ;;  %v3227_v36 = vld [vmem:[%s8872_s2 + $0x1520] sm:$0xff]  ;;  %v3229_v42 = vld [vmem:[%s8872_s2 + $0x1530] sm:$0xff] }
 0x583   :  { %v5966_v47 = vpop.eup %5965 }
 0x584   :  { %v5968_v16 = vpop.eup %5967  ;;  %v3826_v39 = vadd.f32 -1.0, %v5966_v47  ;;  %v2828_v47 = vld [vmem:[%s8872_s2 + $0x10e0] sm:$0xff] }
 0x585   :  { %v5970_v62 = vpop.eup %5969  ;;  %v3827_v32 = vadd.f32 -1.0, %v5968_v16  ;;  %v2829_v16 = vld [vmem:[%s8872_s2 + $0x10f0] sm:$0xff] }
 0x586   :  { %v2709_v5 = vsel %vm2697_vm8, %v2694_v25, %v3826_v39  ;;  %v3828_v41 = vadd.f32 -1.0, %v5970_v62  ;;  %v2824_v25 = vld [vmem:[%s8872_s2 + $0x10a0] sm:$0xff]  ;;  %v5571_v39 = vpack.c.bf16 %v2829_v16, %v2828_v47  ;;  %v3234_v47 = vld [vmem:[%s8872_s2 + $0x1558] sm:$0xff]  ;;  %v5627_v16 = vpack.c.bf16 %v3229_v42, %v3227_v36 }
 0x587   :  { %v2710_v31 = vsel %vm2698_vm9, %v2695_v26, %v3827_v32  ;;  %v2825_v26 = vld [vmem:[%s8872_s2 + $0x10b0] sm:$0xff]  ;;  %v2986_v62 = vld [vmem:[%s8872_s2 + $0x1200] sm:$0xff] }
 0x588   :  { %v5521_v23 = vpack.c.bf16 %v2710_v31, %v2709_v5  ;;  %v2711_v35 = vsel %vm2699_vm10, %v2696_v63, %v3828_v41  ;;  %v5565_v63 = vpack.c.bf16 %v2825_v26, %v2824_v25  ;;  %v2987_v32 = vld [vmem:[%s8872_s2 + $0x1210] sm:$0xff]  ;;  %v2988_v31 = vld [vmem:[%s8872_s2 + $0x1220] sm:$0xff]  ;;  %v3230_v25 = vld [vmem:[%s8872_s2 + $0x1538] sm:$0xff] }
 0x589   :  { %v5574_v5 = vpack.c.bf16 %v2987_v32, %v2986_v62  ;;  %v2989_v41 = vld [vmem:[%s8872_s2 + $0x1230] sm:$0xff]  ;;  %v3231_v62 = vld [vmem:[%s8872_s2 + $0x1540] sm:$0xff] }
 0x58a   :  { %5522 = vmatprep.subr.bf16.mxu1 %v5521_v23  ;;  %v3233_v32 = vld [vmem:[%s8872_s2 + $0x1550] sm:$0xff]  ;;  %v3160_v42 = vld [vmem:[%s8873_s3 + $0x4] ss:$0 sm:$0xff] }
 0x58b   :  { %5524 = vmatpush3.bf16.msra.mxu1 %v5521_v23  ;;  %v5577_v23 = vpack.c.bf16 %v2989_v41, %v2988_v31  ;;  %v3238_v31 = vld [vmem:[%s8872_s2 + $0x1578] sm:$0xff]  ;;  %v5631_v41 = vpack.c.bf16 %v3233_v32, %v3231_v62 }
 0x58c   :  { %4911 = vmatprep.subr.mxu1 %v2711_v35 }
 0x58f   :  { %4912 = vmatpush3.msra.mxu1 %v2711_v35  ;;  %v5580_v35 = vpack.c.bf16 %v2991_v44, %v2990_v52  ;;  %v3235_v52 = vld [vmem:[%s8872_s2 + $0x1560] sm:$0xff]  ;;  %v3237_v44 = vld [vmem:[%s8872_s2 + $0x1570] sm:$0xff] }
 0x590   :  { %4914 = vmatmul.mubr.msk.f32.vlgmr.msra.gmra.mrb[118].mxu1 %vm2716_vm0, %v2713_v45  ;;  %5525 = vmatprep.subr.bf16.mxu1 %v6003_v3  ;;  %v2992_v45 = vld [vmem:[%s8872_s2 + $0x1260] sm:$0xff] }
 0x591   :  { %4916 = vmatprep.mubr.msk.f32.mxu1 %vm2716_vm0, %v2714_v34  ;;  %5527 = vmatpush3.bf16.msra.mxu1 %v5526_v37  ;;  %v2993_v37 = vld [vmem:[%s8872_s2 + $0x1270] sm:$0xff] }
 0x592   :  { %5528 = vmatprep.subr.bf16.mxu1 %v6003_v3  ;;  %v5583_v34 = vpack.c.bf16 %v2993_v37, %v2992_v45  ;;  %v3242_v45 = vld [vmem:[%s8872_s2 + $0x1598] sm:$0xff]  ;;  %v5635_v37 = vpack.c.bf16 %v3237_v44, %v3235_v52  ;;  %v3196_v52 = vld [vmem:[%s8872_s2 + $0x1428] sm:$0xff] }
 0x593   :  { %v3198_v44 = vld [vmem:[%s8872_s2 + $0x1438] sm:$0xff] }
 0x594   :  { %4917 = vmatmul.mubr.msk.f32.gmra.mrb[120].mxu1 %vm2716_vm0, %v2715_v49  ;;  %v5586_v49 = vpack.c.bf16 %v2995_v14, %v2994_v46  ;;  %v3239_v46 = vld [vmem:[%s8872_s2 + $0x1580] sm:$0xff]  ;;  %v3241_v14 = vld [vmem:[%s8872_s2 + $0x1590] sm:$0xff] }
 0x595   :  { %5530 = vmatpush3.bf16.msra.mxu1 %v5529_v51  ;;  %4951 = vmatprep.mubr.msk.f32.mxu1 %vm6005_vm7, %v6004_v12  ;;  %v2996_v51 = vld [vmem:[%s8872_s2 + $0x12a0] sm:$0xff] }
 0x596   :  { %5531 = vmatprep.subr.bf16.mxu1 %v6003_v3  ;;  %v5589_v57 = vpack.c.bf16 %v2997_v53, %v2996_v51  ;;  %v3246_v51 = vld [vmem:[%s8872_s2 + $0x15b8] sm:$0xff]  ;;  %v5639_v53 = vpack.c.bf16 %v3241_v14, %v3239_v46  ;;  %v3195_v46 = vld [vmem:[%s8872_s2 + $0x1420] sm:$0xff]  ;;  %v3197_v14 = vld [vmem:[%s8872_s2 + $0x1430] sm:$0xff] }
 0x599   :  { %5533 = vmatpush3.bf16.msra.mxu1 %v5532_v10  ;;  %v2998_v10 = vld [vmem:[%s8872_s2 + $0x12c0] sm:$0xff] }
 0x59a   :  { %5534 = vmatprep.subr.bf16.mxu1 %v6003_v3  ;;  %v5592_v40 = vpack.c.bf16 %v2999_v56, %v2998_v10  ;;  %v3243_v10 = vld [vmem:[%s8872_s2 + $0x15a0] sm:$0xff]  ;;  %v3245_v56 = vld [vmem:[%s8872_s2 + $0x15b0] sm:$0xff] }
 0x59d   :  { %5536 = vmatpush3.bf16.msra.mxu1 %v5535_v38  ;;  %v3000_v38 = vld [vmem:[%s8872_s2 + $0x12e0] sm:$0xff] }
 0x59e   :  { %5537 = vmatprep.subr.bf16.mxu1 %v6003_v3  ;;  %v5595_v24 = vpack.c.bf16 %v3001_v1, %v3000_v38  ;;  %v3250_v38 = vld [vmem:[%s8872_s2 + $0x15d8] sm:$0xff]  ;;  %v5643_v1 = vpack.c.bf16 %v3245_v56, %v3243_v10  ;;  %v3199_v10 = vld [vmem:[%s8872_s2 + $0x1440] sm:$0xff]  ;;  %v3201_v56 = vld [vmem:[%s8872_s2 + $0x1450] sm:$0xff] }
 0x5a1   :  { %5539 = vmatpush3.bf16.msra.mxu1 %v5538_v60  ;;  %v3073_v60 = vld [vmem:[%s8872_s2 + $0x1300] sm:$0xff] }
 0x5a2   :  { %5540 = vmatprep.subr.bf16.mxu1 %v6003_v3  ;;  %v5598_v0 = vpack.c.bf16 %v3074_v29, %v3073_v60  ;;  %v3247_v60 = vld [vmem:[%s8872_s2 + $0x15c0] sm:$0xff]  ;;  %v3249_v29 = vld [vmem:[%s8872_s2 + $0x15d0] sm:$0xff] }
 0x5a5   :  { %5542 = vmatpush3.bf16.msra.mxu1 %v5541_v27  ;;  %v3075_v27 = vld [vmem:[%s8872_s2 + $0x1320] sm:$0xff] }
 0x5a6   :  { %5543 = vmatprep.subr.bf16.mxu1 %v6003_v3  ;;  %v5601_v54 = vpack.c.bf16 %v3076_v50, %v3075_v27  ;;  %v3254_v27 = vld [vmem:[%s8872_s2 + $0x15f8] sm:$0xff]  ;;  %v5647_v50 = vpack.c.bf16 %v3249_v29, %v3247_v60  ;;  %v3203_v60 = vld [vmem:[%s8872_s2 + $0x1460] sm:$0xff]  ;;  %v3205_v29 = vld [vmem:[%s8872_s2 + $0x1470] sm:$0xff] }
 0x5a9   :  { %5545 = vmatpush3.bf16.msra.mxu1 %v5544_v59  ;;  %v3077_v59 = vld [vmem:[%s8872_s2 + $0x1340] sm:$0xff] }
 0x5aa   :  { %5546 = vmatprep.subr.bf16.mxu1 %v6003_v3  ;;  %v5604_v22 = vpack.c.bf16 %v3078_v55, %v3077_v59  ;;  %v3251_v59 = vld [vmem:[%s8872_s2 + $0x15e0] sm:$0xff]  ;;  %v3253_v55 = vld [vmem:[%s8872_s2 + $0x15f0] sm:$0xff] }
 0x5ad   :  { %5548 = vmatpush3.bf16.msra.mxu1 %v5547_v33  ;;  %v3079_v33 = vld [vmem:[%s8872_s2 + $0x1360] sm:$0xff] }
 0x5ae   :  { %5549 = vmatprep.subr.bf16.mxu1 %v6003_v3  ;;  %v5607_v28 = vpack.c.bf16 %v3080_v4, %v3079_v33  ;;  %v3194_v33 = vld [vmem:[%s8872_s2 + $0x1418] sm:$0xff]  ;;  %v5651_v4 = vpack.c.bf16 %v3253_v55, %v3251_v59  ;;  %v3207_v59 = vld [vmem:[%s8872_s2 + $0x1480] sm:$0xff]  ;;  %v3209_v55 = vld [vmem:[%s8872_s2 + $0x1490] sm:$0xff] }
 0x663   :  { %v4915_v20 = vpop.f32.mrb[118].mxu1 }
 0x664   :  { %4952 = vmatmul.mubr.f32.vlgmr.msra.gmra.mrb[122].mxu1 %v4915_v20  ;;  %v2795_v13 = vpop.f32.mrb[119].mxu1  ;;  %v3083_v20 = vld [vmem:[%s8872_s2 + $0x13a0] sm:$0xff] }
 0x665   :  { %5551 = vmatpush3.bf16.msra.mxu1 %v5550_v6  ;;  %4986 = vmatprep.mubr.msk.f32.mxu1 %vm6005_vm7, %v6004_v12  ;;  %v3081_v6 = vld [vmem:[%s8872_s2 + $0x1380] sm:$0xff] }
 0x666   :  { %5552 = vmatprep.subr.bf16.mxu1 %v6003_v3  ;;  %v5610_v19 = vpack.c.bf16 %v3082_v58, %v3081_v6 }
 0x667   :  { %v8198_v30 = vpop.f32.mrb[120].mxu1 }
 0x668   :  { %v8200_v8 = vpop.f32.mrb[121].mxu1 }
 0x669   :  { %5554 = vmatpush3.bf16.msra.mxu1 %v5553_v21 }
 0x66a   :  { %5555 = vmatprep.subr.bf16.mxu1 %v6003_v3 }
 0x66d   :  { %5557 = vmatpush3.bf16.msra.mxu1 %v5556_v48  ;;  %v3087_v48 = vld [vmem:[%s8872_s2 + $0x13e0] sm:$0xff] }
 0x66e   :  { %5558 = vmatprep.subr.bf16.mxu1 %v6003_v3  ;;  %v5619_v15 = vpack.c.bf16 %v3088_v11, %v3087_v48 }
 0x671   :  { %5560 = vmatpush3.bf16.msra.mxu1 %v5559_v61  ;;  %v3224_v61 = vld [vmem:[%s8872_s2 + $0x1508] sm:$0xff] }
 0x672   :  { %5561 = vmatprep.subr.bf16.mxu1 %v6003_v3 }
 0x675   :  { %5563 = vmatpush3.bf16.msra.mxu1 %v5562_v17  ;;  %v5621_v17 = vpack.c.bf16 %v3226_v9, %v3224_v61 }
 0x676   :  { %5564 = vmatprep.subr.bf16.mxu1 %v6003_v3 }
 0x679   :  { %5566 = vmatpush3.bf16.msra.mxu1 %v5565_v63 }
 0x67a   :  { %5567 = vmatprep.subr.bf16.mxu1 %v6003_v3 }
 0x67d   :  { %5569 = vmatpush3.bf16.msra.mxu1 %v5568_v43  ;;  %v3232_v43 = vld [vmem:[%s8872_s2 + $0x1548] sm:$0xff] }
 0x67e   :  { %5570 = vmatprep.subr.bf16.mxu1 %v6003_v3 }
 0x681   :  { %5572 = vmatpush3.bf16.msra.mxu1 %v5571_v39  ;;  %v5629_v39 = vpack.c.bf16 %v3234_v47, %v3232_v43 }
 0x682   :  { %5573 = vmatprep.subr.bf16.mxu1 %v6003_v3 }
 0x684   :  { %4987 = vmatmul.mubr.f32.vlgmr.msra.gmra.mrb[122].mxu1 %v2795_v13  ;;  %v3084_v13 = vld [vmem:[%s8872_s2 + $0x13b0] sm:$0xff] }
 0x685   :  { %5575 = vmatpush3.bf16.msra.mxu1 %v5574_v5  ;;  %5021 = vmatprep.mubr.msk.f32.mxu1 %vm6005_vm7, %v6004_v12  ;;  %v5613_v21 = vpack.c.bf16 %v3084_v13, %v3083_v20  ;;  %v3236_v5 = vld [vmem:[%s8872_s2 + $0x1568] sm:$0xff] }
 0x686   :  { %5576 = vmatprep.subr.bf16.mxu1 %v6003_v3 }
 0x689   :  { %5578 = vmatpush3.bf16.msra.mxu1 %v5577_v23  ;;  %v5633_v23 = vpack.c.bf16 %v3238_v31, %v3236_v5  ;;  %v3191_v31 = vld [vmem:[%s8872_s2 + $0x1400] sm:$0xff] }
 0x68a   :  { %5579 = vmatprep.subr.bf16.mxu1 %v6003_v3 }
 0x68d   :  { %5581 = vmatpush3.bf16.msra.mxu1 %v5580_v35  ;;  %v3240_v35 = vld [vmem:[%s8872_s2 + $0x1588] sm:$0xff] }
 0x68e   :  { %5582 = vmatprep.subr.bf16.mxu1 %v6003_v3 }
 0x691   :  { %5584 = vmatpush3.bf16.msra.mxu1 %v5583_v34  ;;  %v5637_v34 = vpack.c.bf16 %v3242_v45, %v3240_v35 }
 0x692   :  { %5585 = vmatprep.subr.bf16.mxu1 %v6003_v3 }
 0x695   :  { %5587 = vmatpush3.bf16.msra.mxu1 %v5586_v49  ;;  %v3244_v49 = vld [vmem:[%s8872_s2 + $0x15a8] sm:$0xff] }
 0x696   :  { %5588 = vmatprep.subr.bf16.mxu1 %v6003_v3 }
 0x699   :  { %5590 = vmatpush3.bf16.msra.mxu1 %v5589_v57  ;;  %v5641_v57 = vpack.c.bf16 %v3246_v51, %v3244_v49  ;;  %v3200_v49 = vld [vmem:[%s8872_s2 + $0x1448] sm:$0xff]  ;;  %v3202_v51 = vld [vmem:[%s8872_s2 + $0x1458] sm:$0xff] }
 0x69a   :  { %5591 = vmatprep.subr.bf16.mxu1 %v6003_v3 }
 0x69d   :  { %5593 = vmatpush3.bf16.msra.mxu1 %v5592_v40  ;;  %v3248_v40 = vld [vmem:[%s8872_s2 + $0x15c8] sm:$0xff] }
 0x69e   :  { %5594 = vmatprep.subr.bf16.mxu1 %v6003_v3 }
 0x6a1   :  { %5596 = vmatpush3.bf16.msra.mxu1 %v5595_v24  ;;  %v5645_v24 = vpack.c.bf16 %v3250_v38, %v3248_v40  ;;  %v3204_v40 = vld [vmem:[%s8872_s2 + $0x1468] sm:$0xff]  ;;  %v3206_v38 = vld [vmem:[%s8872_s2 + $0x1478] sm:$0xff] }
 0x6a2   :  { %5597 = vmatprep.subr.bf16.mxu1 %v6003_v3 }
 0x6a4   :  { %5022 = vmatmul.mubr.f32.vlgmr.msra.gmra.mrb[122].mxu1 %v8200_v8  ;;  %v5616_v8 = vpack.c.bf16 %v3086_v2, %v3085_v7 }
 0x6a5   :  { %5599 = vmatpush3.bf16.msra.mxu1 %v5598_v0  ;;  %5056 = vmatprep.mubr.msk.f32.mxu1 %vm6005_vm7, %v6004_v12  ;;  %v3252_v0 = vld [vmem:[%s8872_s2 + $0x15e8] sm:$0xff] }
 0x6a6   :  { %5600 = vmatprep.subr.bf16.mxu1 %v6003_v3 }
 0x6a9   :  { %5602 = vmatpush3.bf16.msra.mxu1 %v5601_v54  ;;  %v5649_v54 = vpack.c.bf16 %v3254_v27, %v3252_v0  ;;  %v3208_v0 = vld [vmem:[%s8872_s2 + $0x1488] sm:$0xff]  ;;  %v3210_v27 = vld [vmem:[%s8872_s2 + $0x1498] sm:$0xff] }
 0x6aa   :  { %5603 = vmatprep.subr.bf16.mxu1 %v6003_v3 }
 0x6ad   :  { %5605 = vmatpush3.bf16.msra.mxu1 %v5604_v22  ;;  %v3192_v22 = vld [vmem:[%s8872_s2 + $0x1408] sm:$0xff] }
 0x6ae   :  { %5606 = vmatprep.subr.bf16.mxu1 %v6003_v3 }
 0x6b1   :  { %5608 = vmatpush3.bf16.msra.mxu1 %v5607_v28  ;;  %v5653_v28 = vpack.c.bf16 %v3194_v33, %v3192_v22  ;;  %v3212_v22 = vld [vmem:[%s8872_s2 + $0x14a8] sm:$0xff]  ;;  %v3214_v33 = vld [vmem:[%s8872_s2 + $0x14b8] sm:$0xff] }
 0x6b2   :  { %5609 = vmatprep.subr.bf16.mxu1 %v6003_v3 }
 0x6b5   :  { %5611 = vmatpush3.bf16.msra.mxu1 %v5610_v19 }
 0x6b6   :  { %5612 = vmatprep.subr.bf16.mxu1 %v6003_v3 }
 0x6b9   :  { %5614 = vmatpush3.bf16.msra.mxu1 %v5613_v21 }
 0x6ba   :  { %5615 = vmatprep.subr.bf16.mxu1 %v6003_v3 }
 0x6bd   :  { %5617 = vmatpush3.bf16.msra.mxu1 %v5616_v8 }
 0x6be   :  { %5618 = vmatprep.subr.bf16.mxu1 %v6003_v3  ;;  %v3225_v3 = vld [vmem:[%s8872_s2 + $0x1510] sm:$0xff] }
 0x6bf   :  { %v5623_v26 = vpack.c.bf16 %v3225_v3, %v3223_v18 }
 0x6c1   :  { %5620 = vmatpush3.bf16.msra.mxu1 %v5619_v15 }
 0x6c2   :  { %5622 = vmatprep.subr.bf16.mxu1 %v5621_v17 }
 0x6c4   :  { %5057 = vmatmul.mubr.f32.vlgmr.msra.gmra.mrb[122].mxu1 %v8198_v30  ;;  %v3228_v30 = vld [vmem:[%s8872_s2 + $0x1528] sm:$0xff] }
 0x6c5   :  { %3322 = vmatprep.mubr.f32.mxu1 %v6004_v12  ;;  %v5625_v63 = vpack.c.bf16 %v3230_v25, %v3228_v30  ;;  %5624 = vmatpush1.bf16.msra.mxu1 %v5623_v26 }
 0x6c7   :  { %5626 = vmatprep.subr.bf16.mxu1 %v5625_v63 }
 0x6c9   :  { %5628 = vmatpush1.bf16.msra.mxu1 %v5627_v16  ;;  %v3161_v16 = vld [vmem:[%s8873_s3 + $0x5] ss:$0 sm:$0xff] }
 0x6ca   :  { %5630 = vmatprep.subr.bf16.mxu1 %v5629_v39 }
 0x6cd   :  { %5632 = vmatpush1.bf16.msra.mxu1 %v5631_v41  ;;  %v3193_v41 = vld [vmem:[%s8872_s2 + $0x1410] sm:$0xff] }
 0x6ce   :  { %5634 = vmatprep.subr.bf16.mxu1 %v5633_v23  ;;  %v5655_v45 = vpack.c.bf16 %v3193_v41, %v3191_v31  ;;  %v3408_v31 = vld [vmem:[%s8872_s2 + $0x1640] sm:$0xff]  ;;  %v3410_v41 = vld [vmem:[%s8872_s2 + $0x1650] sm:$0xff] }
 0x6d1   :  { %5636 = vmatpush1.bf16.msra.mxu1 %v5635_v37 }
 0x6d2   :  { %5638 = vmatprep.subr.bf16.mxu1 %v5637_v34  ;;  %v5657_v34 = vpack.c.bf16 %v3198_v44, %v3196_v52  ;;  %v3415_v52 = vld [vmem:[%s8872_s2 + $0x1678] sm:$0xff]  ;;  %v5695_v44 = vpack.c.bf16 %v3410_v41, %v3408_v31  ;;  %v3528_v31 = vld [vmem:[%s8872_s2 + $0x17a8] sm:$0xff] }
 0x6d3   :  { %v3530_v41 = vld [vmem:[%s8872_s2 + $0x17b8] sm:$0xff] }
 0x6d5   :  { %5640 = vmatpush1.bf16.msra.mxu1 %v5639_v53  ;;  %v5659_v53 = vpack.c.bf16 %v3197_v14, %v3195_v46  ;;  %v3417_v46 = vld [vmem:[%s8872_s2 + $0x1688] sm:$0xff]  ;;  %v3419_v14 = vld [vmem:[%s8872_s2 + $0x1698] sm:$0xff] }
 0x6d6   :  { %5642 = vmatprep.subr.bf16.mxu1 %v5641_v57  ;;  %v5661_v57 = vpack.c.bf16 %v3202_v51, %v3200_v49  ;;  %v5701_v51 = vpack.c.bf16 %v3419_v14, %v3417_v46 }
 0x6d9   :  { %5644 = vmatpush1.bf16.msra.mxu1 %v5643_v1  ;;  %v5663_v1 = vpack.c.bf16 %v3201_v56, %v3199_v10  ;;  %v3421_v10 = vld [vmem:[%s8872_s2 + $0x16a8] sm:$0xff]  ;;  %v3423_v56 = vld [vmem:[%s8872_s2 + $0x16b8] sm:$0xff] }
 0x6da   :  { %5646 = vmatprep.subr.bf16.mxu1 %v5645_v24  ;;  %v5665_v24 = vpack.c.bf16 %v3206_v38, %v3204_v40  ;;  %v5705_v38 = vpack.c.bf16 %v3423_v56, %v3421_v10 }
 0x6dd   :  { %5648 = vmatpush1.bf16.msra.mxu1 %v5647_v50  ;;  %v5667_v50 = vpack.c.bf16 %v3205_v29, %v3203_v60  ;;  %v3425_v60 = vld [vmem:[%s8872_s2 + $0x16c8] sm:$0xff]  ;;  %v3427_v29 = vld [vmem:[%s8872_s2 + $0x16d8] sm:$0xff] }
 0x6de   :  { %5650 = vmatprep.subr.bf16.mxu1 %v5649_v54  ;;  %v5669_v54 = vpack.c.bf16 %v3210_v27, %v3208_v0  ;;  %v5709_v27 = vpack.c.bf16 %v3427_v29, %v3425_v60 }
 0x6e1   :  { %5652 = vmatpush1.bf16.msra.mxu1 %v5651_v4  ;;  %v5671_v4 = vpack.c.bf16 %v3209_v55, %v3207_v59  ;;  %v3429_v59 = vld [vmem:[%s8872_s2 + $0x16e8] sm:$0xff]  ;;  %v3431_v55 = vld [vmem:[%s8872_s2 + $0x16f8] sm:$0xff] }
 0x6e2   :  { %5654 = vmatprep.subr.bf16.mxu1 %v5653_v28  ;;  %v5673_v28 = vpack.c.bf16 %v3214_v33, %v3212_v22  ;;  %v5713_v33 = vpack.c.bf16 %v3431_v55, %v3429_v59 }
 0x797   :  { %v3155_v6 = vpop.f32.mrb[122].mxu1 }
 0x798   :  { %v3162_v58 = vrot.slane %v3155_v6, 4  ;;  %v3168_v19 = vmul.f32 %v3155_v6, %v3155_v6  ;;  %v5058_v20 = vpop.f32.mrb[123].mxu1 }
 0x799   :  { %v3218_v20 = vld [vmem:[%s8872_s2 + $0x14d8] sm:$0xff] }
 0x79a   :  { %v3163_v13 = vadd.f32 %v3162_v58, %v3155_v6  ;;  %v3169_v21 = vrot.slane %v3168_v19, 4  ;;  %v3213_v58 = vld [vmem:[%s8872_s2 + $0x14b0] sm:$0xff] }
 0x79c   :  { %v3164_v7 = vrot.slane %v3163_v13, 2  ;;  %v3170_v2 = vadd.f32 %v3169_v21, %v3168_v19  ;;  %v3216_v19 = vld [vmem:[%s8872_s2 + $0x14c8] sm:$0xff] }
 0x79d   :  { %v5677_v21 = vpack.c.bf16 %v3218_v20, %v3216_v19 }
 0x79e   :  { %v3165_v8 = vadd.f32 %v3164_v7, %v3163_v13  ;;  %v3171_v48 = vrot.slane %v3170_v2, 2  ;;  %v3215_v7 = vld [vmem:[%s8872_s2 + $0x14c0] sm:$0xff] }
 0x7a0   :  { %v3166_v11 = vrot.slane %v3165_v8, 1  ;;  %v3172_v15 = vadd.f32 %v3171_v48, %v3170_v2  ;;  %v3217_v2 = vld [vmem:[%s8872_s2 + $0x14d0] sm:$0xff]  ;;  %v3222_v48 = vld [vmem:[%s8872_s2 + $0x14f8] sm:$0xff] }
 0x7a2   :  { %v3167_v61 = vadd.f32 %v3166_v11, %v3165_v8  ;;  %v3173_v9 = vrot.slane %v3172_v15, 1  ;;  %v3220_v8 = vld [vmem:[%s8872_s2 + $0x14e8] sm:$0xff]  ;;  %v5679_v11 = vpack.c.bf16 %v3217_v2, %v3215_v7  ;;  %v3514_v2 = vld [vmem:[%s8872_s2 + $0x1738] sm:$0xff] }
 0x7a3   :  { %v3512_v7 = vld [vmem:[%s8872_s2 + $0x1728] sm:$0xff] }
 0x7a4   :  { %v3174_v18 = vadd.f32 %v3173_v9, %v3172_v15  ;;  %v3175_v17 = vmul.f32 0.125, %v3167_v61  ;;  %v5681_v15 = vpack.c.bf16 %v3222_v48, %v3220_v8  ;;  %v3219_v61 = vld [vmem:[%s8872_s2 + $0x14e0] sm:$0xff]  ;;  %v3221_v9 = vld [vmem:[%s8872_s2 + $0x14f0] sm:$0xff] }
 0x7a6   :  { %v3176_v3 = vmul.f32 0.125, %v3174_v18  ;;  %v3177_v30 = vmul.f32 %v3175_v17, %v3175_v17  ;;  %v3180_v36 = vsub.f32 %v3155_v6, %v3175_v17  ;;  %v3211_v6 = vld [vmem:[%s8872_s2 + $0x14a0] sm:$0xff]  ;;  %v3401_v18 = vld [vmem:[%s8872_s2 + $0x1608] sm:$0xff]  ;;  %v3403_v17 = vld [vmem:[%s8872_s2 + $0x1618] sm:$0xff] }
 0x7a7   :  { %v5675_v13 = vpack.c.bf16 %v3213_v58, %v3211_v6  ;;  %v3508_v6 = vld [vmem:[%s8872_s2 + $0x1708] sm:$0xff]  ;;  %v3510_v58 = vld [vmem:[%s8872_s2 + $0x1718] sm:$0xff] }
 0x7a8   :  { %v3178_v25 = vsub.f32 %v3176_v3, %v3177_v30  ;;  %v3181_v43 = vmul.f32 %v3180_v36, %v3160_v42  ;;  %v5683_v3 = vpack.c.bf16 %v3221_v9, %v3219_v61  ;;  %v5685_v30 = vpack.c.bf16 %v3403_v17, %v3401_v18  ;;  %v3407_v36 = vld [vmem:[%s8872_s2 + $0x1638] sm:$0xff]  ;;  %v3513_v61 = vld [vmem:[%s8872_s2 + $0x1730] sm:$0xff]  ;;  %v3516_v9 = vld [vmem:[%s8872_s2 + $0x1748] sm:$0xff] }
 0x7a9   :  { %v5717_v20 = vpack.c.bf16 %v3510_v58, %v3508_v6  ;;  %v3518_v18 = vld [vmem:[%s8872_s2 + $0x1758] sm:$0xff]  ;;  %v3660_v6 = vld [vmem:[%s8872_s2 + $0x1b50] sm:$0xff] }
 0x7aa   :  { %v3179_v26 = vmax.f32 %v3178_v25, 0.0  ;;  %v3400_v25 = vld [vmem:[%s8872_s2 + $0x1600] sm:$0xff] }
 0x7ac   :  { %v3182_v63 = vadd.f32 1e-05, %v3179_v26  ;;  %v3402_v26 = vld [vmem:[%s8872_s2 + $0x1610] sm:$0xff] }
 0x7ad   :  { %v5687_v42 = vpack.c.bf16 %v3402_v26, %v3400_v25  ;;  %v3517_v25 = vld [vmem:[%s8872_s2 + $0x1750] sm:$0xff]  ;;  %v3520_v26 = vld [vmem:[%s8872_s2 + $0x1768] sm:$0xff] }
 0x7ae   :  { %5971 = vrsqrt.f32 %v3182_v63  ;;  %v3405_v63 = vld [vmem:[%s8872_s2 + $0x1628] sm:$0xff] }
 0x7b8   :  { %v5972_v47 = vpop.eup %5971 }
 0x7b9   :  { %v3184_v39 = vmul.f32 %v5972_v47, %v3181_v43  ;;  %v5689_v43 = vpack.c.bf16 %v3407_v36, %v3405_v63  ;;  %v3404_v47 = vld [vmem:[%s8872_s2 + $0x1620] sm:$0xff]  ;;  %v3522_v63 = vld [vmem:[%s8872_s2 + $0x1778] sm:$0xff] }
 0x7ba   :  { %v5729_v36 = vpack.c.bf16 %v3522_v63, %v3520_v26  ;;  %v3649_v63 = vld [vmem:[%s8872_s2 + $0x1aa0] sm:$0xff] }
 0x7bb   :  { %v3185_v62 = vadd.f32 %v3184_v39, %v3161_v16  ;;  %v3406_v16 = vld [vmem:[%s8872_s2 + $0x1630] sm:$0xff]  ;;  %v3409_v39 = vld [vmem:[%s8872_s2 + $0x1648] sm:$0xff] }
 0x7bd   :  { %v3187_v32 = vmul.f32 1.442695, %v3185_v62  ;;  %vm3186_vm11 = vcmp.gt.f32.partialorder %v3185_v62, 0.0 }
 0x7bf   :  { %5973 = vpow2.f32 %v3187_v32  ;;  %v5691_v32 = vpack.c.bf16 %v3406_v16, %v3404_v47  ;;  %v3524_v47 = vld [vmem:[%s8872_s2 + $0x1788] sm:$0xff]  ;;  %v3526_v16 = vld [vmem:[%s8872_s2 + $0x1798] sm:$0xff] }
 0x7c9   :  { %v5974_v5 = vpop.eup %5973 }
 0x7ca   :  { %v3833_v23 = vadd.f32 -1.0, %v5974_v5 }
 0x7cc   :  { %v8477_v35 = vsel %vm3186_vm11, %v3185_v62, %v3833_v23  ;;  %v3411_v62 = vld [vmem:[%s8872_s2 + $0x1658] sm:$0xff]  ;;  %v3413_v23 = vld [vmem:[%s8872_s2 + $0x1668] sm:$0xff] }
 0x7cd   :  { %v3256_v37 = vrot.slane %v8477_v35, 2  ;;  %v5693_v5 = vpack.c.bf16 %v3411_v62, %v3409_v39  ;;  %v3432_v48 = vrot.slane %v8477_v35, 4  ;;  %v5733_v62 = vpack.c.bf16 %v3526_v16, %v3524_v47  ;;  %v3651_v16 = vld [vmem:[%s8872_s2 + $0x1ac0] sm:$0xff] }
 0x7ce   :  { %v3539_v55 = vrot.slane %v8477_v35, 6 }
 0x7cf   :  { %3323 = vmatmul.mubr.f32.vlgmr.msra.gmra.mrb[124].mxu1 %v3256_v37  ;;  %v3412_v37 = vld [vmem:[%s8872_s2 + $0x1660] sm:$0xff] }
 0x7d0   :  { %5656 = vmatpush1.bf16.msra.mxu1 %v5655_v45  ;;  %3393 = vmatprep.mubr.f32.mxu1 %v6004_v12  ;;  %v5697_v45 = vpack.c.bf16 %v3415_v52, %v3413_v23  ;;  %v5737_v52 = vpack.c.bf16 %v3530_v41, %v3528_v31  ;;  %v3653_v41 = vld [vmem:[%s8872_s2 + $0x1ae0] sm:$0xff] }
 0x7d1   :  { %5658 = vmatprep.subr.bf16.mxu1 %v5657_v34  ;;  %v3414_v34 = vld [vmem:[%s8872_s2 + $0x1670] sm:$0xff] }
 0x7d2   :  { %v5699_v49 = vpack.c.bf16 %v3414_v34, %v3412_v37  ;;  %v3532_v37 = vld [vmem:[%s8872_s2 + $0x17c8] sm:$0xff]  ;;  %v3534_v34 = vld [vmem:[%s8872_s2 + $0x17d8] sm:$0xff] }
 0x7d3   :  { %v5741_v14 = vpack.c.bf16 %v3534_v34, %v3532_v37  ;;  %v3834_v34 = vld [vmem:[%s8873_s3 + $0x6] ss:$8 sm:$0x3] }
 0x7d4   :  { %5660 = vmatpush1.bf16.msra.mxu1 %v5659_v53  ;;  %v3416_v53 = vld [vmem:[%s8872_s2 + $0x1680] sm:$0xff] }
 0x7d5   :  { %5662 = vmatprep.subr.bf16.mxu1 %v5661_v57  ;;  %v3418_v57 = vld [vmem:[%s8872_s2 + $0x1690] sm:$0xff] }
 0x7d6   :  { %v5703_v40 = vpack.c.bf16 %v3418_v57, %v3416_v53  ;;  %v3536_v53 = vld [vmem:[%s8872_s2 + $0x17e8] sm:$0xff]  ;;  %v3538_v57 = vld [vmem:[%s8872_s2 + $0x17f8] sm:$0xff] }
 0x7d7   :  { %v5745_v56 = vpack.c.bf16 %v3538_v57, %v3536_v53 }
 0x7d8   :  { %5664 = vmatpush1.bf16.msra.mxu1 %v5663_v1  ;;  %v3420_v1 = vld [vmem:[%s8872_s2 + $0x16a0] sm:$0xff] }
 0x7d9   :  { %5666 = vmatprep.subr.bf16.mxu1 %v5665_v24  ;;  %v3422_v24 = vld [vmem:[%s8872_s2 + $0x16b0] sm:$0xff] }
 0x7da   :  { %v5707_v0 = vpack.c.bf16 %v3422_v24, %v3420_v1  ;;  %v3655_v1 = vld [vmem:[%s8872_s2 + $0x1b00] sm:$0xff]  ;;  %v3656_v24 = vld [vmem:[%s8872_s2 + $0x1b10] sm:$0xff] }
 0x7db   :  { %v5749_v29 = vpack.c.bf16 %v3656_v24, %v3655_v1 }
 0x7dc   :  { %5668 = vmatpush1.bf16.msra.mxu1 %v5667_v50  ;;  %v3424_v50 = vld [vmem:[%s8872_s2 + $0x16c0] sm:$0xff] }
 0x7dd   :  { %5670 = vmatprep.subr.bf16.mxu1 %v5669_v54  ;;  %v3426_v54 = vld [vmem:[%s8872_s2 + $0x16d0] sm:$0xff] }
 0x7de   :  { %v5711_v22 = vpack.c.bf16 %v3426_v54, %v3424_v50  ;;  %v3657_v50 = vld [vmem:[%s8872_s2 + $0x1b20] sm:$0xff]  ;;  %v3658_v54 = vld [vmem:[%s8872_s2 + $0x1b30] sm:$0xff] }
 0x7e0   :  { %5672 = vmatpush1.bf16.msra.mxu1 %v5671_v4  ;;  %v3428_v4 = vld [vmem:[%s8872_s2 + $0x16e0] sm:$0xff] }
 0x7e1   :  { %5674 = vmatprep.subr.bf16.mxu1 %v5673_v28  ;;  %v3430_v28 = vld [vmem:[%s8872_s2 + $0x16f0] sm:$0xff] }
 0x7e2   :  { %v5715_v19 = vpack.c.bf16 %v3430_v28, %v3428_v4  ;;  %v3642_v4 = vld [vmem:[%s8872_s2 + $0x1a30] sm:$0xff]  ;;  %v3659_v28 = vld [vmem:[%s8872_s2 + $0x1b40] sm:$0xff] }
 0x7e3   :  { %v5757_v58 = vpack.c.bf16 %v3660_v6, %v3659_v28 }
 0x7e4   :  { %5676 = vmatpush1.bf16.msra.mxu1 %v5675_v13  ;;  %v3507_v13 = vld [vmem:[%s8872_s2 + $0x1700] sm:$0xff] }
 0x7e5   :  { %5678 = vmatprep.subr.bf16.mxu1 %v5677_v21  ;;  %v3509_v21 = vld [vmem:[%s8872_s2 + $0x1710] sm:$0xff] }
 0x7e6   :  { %v5719_v8 = vpack.c.bf16 %v3509_v21, %v3507_v13  ;;  %v3661_v21 = vld [vmem:[%s8872_s2 + $0x1b60] sm:$0xff] }
 0x7e8   :  { %5680 = vmatpush1.bf16.msra.mxu1 %v5679_v11  ;;  %v5721_v11 = vpack.c.bf16 %v3514_v2, %v3512_v7  ;;  %v3662_v7 = vld [vmem:[%s8872_s2 + $0x1b70] sm:$0xff]  ;;  %v3645_v2 = vld [vmem:[%s8872_s2 + $0x1a60] sm:$0xff] }
 0x7e9   :  { %5682 = vmatprep.subr.bf16.mxu1 %v5681_v15  ;;  %v3511_v15 = vld [vmem:[%s8872_s2 + $0x1720] sm:$0xff] }
 0x7ea   :  { %v5723_v17 = vpack.c.bf16 %v3513_v61, %v3511_v15  ;;  %v3664_v15 = vld [vmem:[%s8872_s2 + $0x1b90] sm:$0xff] }
 0x7ec   :  { %5684 = vmatpush1.bf16.msra.mxu1 %v5683_v3  ;;  %v5725_v3 = vpack.c.bf16 %v3518_v18, %v3516_v9  ;;  %v3647_v18 = vld [vmem:[%s8872_s2 + $0x1a80] sm:$0xff] }
 0x7ed   :  { %5686 = vmatprep.subr.bf16.mxu1 %v5685_v30  ;;  %v3515_v30 = vld [vmem:[%s8872_s2 + $0x1740] sm:$0xff] }
 0x7ef   :  { %3394 = vmatmul.mubr.f32.vlgmr.msra.gmra.mrb[124].mxu1 %v8477_v35 }
 0x7f0   :  { %5688 = vmatpush1.bf16.msra.mxu1 %v5687_v42  ;;  %3498 = vmatprep.mubr.f32.mxu1 %v6004_v12  ;;  %v3519_v42 = vld [vmem:[%s8872_s2 + $0x1760] sm:$0xff] }
 0x7f1   :  { %5690 = vmatprep.subr.bf16.mxu1 %v5689_v43  ;;  %v3521_v43 = vld [vmem:[%s8872_s2 + $0x1770] sm:$0xff] }
 0x7f2   :  { %v5731_v39 = vpack.c.bf16 %v3521_v43, %v3519_v42  ;;  %v3668_v42 = vld [vmem:[%s8872_s2 + $0x1bd0] sm:$0xff] }
 0x7f4   :  { %5692 = vmatpush1.bf16.msra.mxu1 %v5691_v32  ;;  %v3523_v32 = vld [vmem:[%s8872_s2 + $0x1780] sm:$0xff] }
 0x7f5   :  { %5694 = vmatprep.subr.bf16.mxu1 %v5693_v5  ;;  %v3525_v5 = vld [vmem:[%s8872_s2 + $0x1790] sm:$0xff] }
 0x7f6   :  { %v5735_v23 = vpack.c.bf16 %v3525_v5, %v3523_v32  ;;  %v3670_v32 = vld [vmem:[%s8872_s2 + $0x1bf0] sm:$0xff] }
 0x7f8   :  { %5696 = vmatpush1.bf16.msra.mxu1 %v5695_v44  ;;  %v3527_v44 = vld [vmem:[%s8872_s2 + $0x17a0] sm:$0xff] }
 0x7f9   :  { %5698 = vmatprep.subr.bf16.mxu1 %v5697_v45  ;;  %v3529_v45 = vld [vmem:[%s8872_s2 + $0x17b0] sm:$0xff] }
 0x7fa   :  { %v5739_v46 = vpack.c.bf16 %v3529_v45, %v3527_v44  ;;  %v3617_v44 = vlaneseq }
 0x7fc   :  { %5700 = vmatpush1.bf16.msra.mxu1 %v5699_v49  ;;  %v3531_v49 = vld [vmem:[%s8872_s2 + $0x17c0] sm:$0xff]  ;;  %v3618_v45 = vshrl.u32 %v3617_v44, 7 }
 0x7fd   :  { %5702 = vmatprep.subr.bf16.mxu1 %v5701_v51  ;;  %v3533_v51 = vld [vmem:[%s8872_s2 + $0x17d0] sm:$0xff] }
 0x7fe   :  { %v5743_v10 = vpack.c.bf16 %v3533_v51, %v3531_v49  ;;  %v3619_v37 = vsub.s32 0, %v3618_v45 }
 0x800   :  { %5704 = vmatpush1.bf16.msra.mxu1 %v5703_v40  ;;  %v3535_v40 = vld [vmem:[%s8872_s2 + $0x17e0] sm:$0xff] }
 0x801   :  { %5706 = vmatprep.subr.bf16.mxu1 %v5705_v38  ;;  %v3537_v38 = vld [vmem:[%s8872_s2 + $0x17f0] sm:$0xff] }
 0x802   :  { %v5747_v60 = vpack.c.bf16 %v3537_v38, %v3535_v40 }
 0x804   :  { %5708 = vmatpush1.bf16.msra.mxu1 %v5707_v0  ;;  %v3639_v0 = vld [vmem:[%s8872_s2 + $0x1a00] sm:$0xff] }
 0x805   :  { %5710 = vmatprep.subr.bf16.mxu1 %v5709_v27  ;;  %v3640_v27 = vld [vmem:[%s8872_s2 + $0x1a10] sm:$0xff] }
 0x806   :  { %v5751_v59 = vpack.c.bf16 %v3640_v27, %v3639_v0 }
 0x808   :  { %5712 = vmatpush1.bf16.msra.mxu1 %v5711_v22  ;;  %v5753_v22 = vpack.c.bf16 %v3658_v54, %v3657_v50  ;;  %v3671_v54 = vld [vmem:[%s8873_s3 + $0x7] ss:$0 sm:$0xff] }
 0x809   :  { %5714 = vmatprep.subr.bf16.mxu1 %v5713_v33  ;;  %v3641_v33 = vld [vmem:[%s8872_s2 + $0x1a20] sm:$0xff] }
 0x80a   :  { %v5755_v35 = vpack.c.bf16 %v3642_v4, %v3641_v33 }
 0x80c   :  { %5716 = vmatpush1.bf16.msra.mxu1 %v5715_v19  ;;  %v3643_v19 = vld [vmem:[%s8872_s2 + $0x1a40] sm:$0xff] }
 0x80d   :  { %5718 = vmatprep.subr.bf16.mxu1 %v5717_v20  ;;  %v3644_v20 = vld [vmem:[%s8872_s2 + $0x1a50] sm:$0xff] }
 0x80e   :  { %v5759_v13 = vpack.c.bf16 %v3644_v20, %v3643_v19 }
 0x80f   :  { %3499 = vmatmul.mubr.f32.vlgmr.msra.gmra.mrb[124].mxu1 %v3432_v48  ;;  %v3646_v48 = vld [vmem:[%s8872_s2 + $0x1a70] sm:$0xff] }
 0x810   :  { %5720 = vmatpush1.bf16.msra.mxu1 %v5719_v8  ;;  %3605 = vmatprep.mubr.f32.mxu1 %v6004_v12  ;;  %v5727_v12 = vpack.c.bf16 %v3517_v25, %v3515_v30  ;;  %v5761_v8 = vpack.c.bf16 %v3662_v7, %v3661_v21  ;;  %v5763_v61 = vpack.c.bf16 %v3646_v48, %v3645_v2  ;;  %v3666_v30 = vld [vmem:[%s8872_s2 + $0x1bb0] sm:$0xff] }
 0x811   :  { %5722 = vmatprep.subr.bf16.mxu1 %v5721_v11  ;;  %v3663_v11 = vld [vmem:[%s8872_s2 + $0x1b80] sm:$0xff] }
 0x812   :  { %v5765_v9 = vpack.c.bf16 %v3664_v15, %v3663_v11 }
 0x814   :  { %5724 = vmatpush1.bf16.msra.mxu1 %v5723_v17  ;;  %v3648_v17 = vld [vmem:[%s8872_s2 + $0x1a90] sm:$0xff] }
 0x815   :  { %5726 = vmatprep.subr.bf16.mxu1 %v5725_v3  ;;  %v3665_v3 = vld [vmem:[%s8872_s2 + $0x1ba0] sm:$0xff]  ;;  %v5767_v25 = vpack.c.bf16 %v3648_v17, %v3647_v18 }
 0x816   :  { %v5769_v26 = vpack.c.bf16 %v3666_v30, %v3665_v3 }
 0x818   :  { %5728 = vmatpush1.bf16.msra.mxu1 %v5727_v12  ;;  %v3650_v12 = vld [vmem:[%s8872_s2 + $0x1ab0] sm:$0xff] }
 0x819   :  { %5730 = vmatprep.subr.bf16.mxu1 %v5729_v36  ;;  %v3667_v36 = vld [vmem:[%s8872_s2 + $0x1bc0] sm:$0xff]  ;;  %v5771_v43 = vpack.c.bf16 %v3650_v12, %v3649_v63 }
 0x81a   :  { %v5773_v47 = vpack.c.bf16 %v3668_v42, %v3667_v36 }
 0x81c   :  { %5732 = vmatpush1.bf16.msra.mxu1 %v5731_v39  ;;  %v3652_v39 = vld [vmem:[%s8872_s2 + $0x1ad0] sm:$0xff] }
 0x81d   :  { %5734 = vmatprep.subr.bf16.mxu1 %v5733_v62  ;;  %v3669_v62 = vld [vmem:[%s8872_s2 + $0x1be0] sm:$0xff]  ;;  %v5775_v5 = vpack.c.bf16 %v3652_v39, %v3651_v16 }
 0x81e   :  { %v5777_v31 = vpack.c.bf16 %v3670_v32, %v3669_v62 }
 0x820   :  { %5736 = vmatpush1.bf16.msra.mxu1 %v5735_v23  ;;  %v3654_v23 = vld [vmem:[%s8872_s2 + $0x1af0] sm:$0xff] }
 0x821   :  { %5738 = vmatprep.subr.bf16.mxu1 %v5737_v52  ;;  %v5779_v52 = vpack.c.bf16 %v3654_v23, %v3653_v41 }
 0x824   :  { %5740 = vmatpush1.bf16.msra.mxu1 %v5739_v46  ;;  %v3623_v46 = vsub.s32 1, %v3618_v45 }
 0x825   :  { %5742 = vmatprep.subr.bf16.mxu1 %v5741_v14  ;;  %v3620_v14 = vrot.slane %v3834_v34, %v3619_v37 }
 0x826   :  { %v3624_v49 = vrot.slane %v3834_v34, %v3623_v46 }
 0x828   :  { %5744 = vmatpush1.bf16.msra.mxu1 %v5743_v10 }
 0x829   :  { %5746 = vmatprep.subr.bf16.mxu1 %v5745_v56 }
 0x82c   :  { %5748 = vmatpush1.bf16.msra.mxu1 %v5747_v60 }
 0x82d   :  { %5750 = vmatprep.subr.bf16.mxu1 %v5749_v29 }
 0x82f   :  { %3606 = vmatmul.mubr.f32.vlgmr.msra.gmra.mrb[124].mxu1 %v3539_v55 }
 0x830   :  { %5752 = vmatpush3.bf16.msra.mxu1 %v5751_v59 }
 0x831   :  { %5754 = vmatprep.subr.bf16.mxu1 %v5753_v22 }
 0x834   :  { %5756 = vmatpush3.bf16.msra.mxu1 %v5755_v35 }
 0x835   :  { %5758 = vmatprep.subr.bf16.mxu1 %v5757_v58 }
 0x838   :  { %5760 = vmatpush3.bf16.msra.mxu1 %v5759_v13 }
 0x839   :  { %5762 = vmatprep.subr.bf16.mxu1 %v5761_v8 }
 0x83c   :  { %5764 = vmatpush3.bf16.msra.mxu1 %v5763_v61 }
 0x83d   :  { %5766 = vmatprep.subr.bf16.mxu1 %v5765_v9 }
 0x840   :  { %5768 = vmatpush3.bf16.msra.mxu1 %v5767_v25 }
 0x841   :  { %5770 = vmatprep.subr.bf16.mxu1 %v5769_v26 }
 0x844   :  { %5772 = vmatpush3.bf16.msra.mxu1 %v5771_v43 }
 0x845   :  { %5774 = vmatprep.subr.bf16.mxu1 %v5773_v47 }
 0x848   :  { %5776 = vmatpush3.bf16.msra.mxu1 %v5775_v5 }
 0x849   :  { %5778 = vmatprep.subr.bf16.mxu1 %v5777_v31 }
 0x84c   :  { %5780 = vmatpush3.bf16.msra.mxu1 %v5779_v52 }
 0x902   :  { %v3607_v51 = vpop.f32.mrb[124].mxu1 }
 0x903   :  { %v3627_v53 = vadd.f32 %v3620_v14, %v3607_v51  ;;  %v3609_v57 = vpop.f32.mrb[125].mxu1 }
 0x904   :  { %v3628_v10 = vadd.f32 %v3624_v49, %v3609_v57 }
 0x905   :  { %v3631_v56 = vmul.f32 1.442695, %v3627_v53  ;;  %vm3629_vm13 = vcmp.gt.f32.partialorder %v3627_v53, 0.0 }
 0x906   :  { %v3633_v40 = vmul.f32 1.442695, %v3628_v10  ;;  %vm3630_vm12 = vcmp.gt.f32.partialorder %v3628_v10, 0.0 }
 0x907   :  { %5975 = vpow2.f32 %v3631_v56 }
 0x908   :  { %5977 = vpow2.f32 %v3633_v40 }
 0x911   :  { %v5976_v38 = vpop.eup %5975 }
 0x912   :  { %v5978_v1 = vpop.eup %5977  ;;  %v3835_v24 = vadd.f32 -1.0, %v5976_v38 }
 0x913   :  { %v3836_v60 = vadd.f32 -1.0, %v5978_v1 }
 0x914   :  { %v3637_v0 = vsel %vm3629_vm13, %v3627_v53, %v3835_v24 }
 0x915   :  { %v3638_v29 = vsel %vm3630_vm12, %v3628_v10, %v3836_v60 }
 0x916   :  { %3736 = vmatprep.mubr.f32.mxu1 %v3638_v29 }
 0x917   :  { %3737 = vmatmul.mubr.f32.vlgmr.msra.gmra.mrb[126].mxu1 %v3637_v0 }
 0x9ea   :  { %v4248_v27 = vpop.f32.mrb[126].mxu1 }
 0x9eb   :  { %v4249_v50 = vpop.f32.mrb[127].mxu1 }
 0x9ec   :  { %v4250_v59 = vadd.f32 %v4249_v50, %v4248_v27 }
 0x9ee   :  { %v3739_v55 = vadd.f32 %v4250_v59, %v3671_v54 }
 0x9f0   :  { %3742 = vst [vmem:[#allocation2] sm:$0x3] %v3739_v55 }
 0x9f1   :  { %5990 = shalt.err (!%p5987_p4)
}
 0x9f2   :  { %s5991_s1 = scalar_lea.hbm %s8874_s4, 32 }
 0x9f3   :  { %p5992_p5 = scmp.ne.s32.totalorder %s8874_s4, %s5991_s1  ;;  %p5995_p6 = scmp.lt.u32.totalorder %s5991_s1, %s8874_s4 }
 0x9f5   :  { %p5997_p7 = pnand %p5995_p6, %p5992_p5 }
 0x9f7   :  { %6000 = shalt.err (!%p5997_p7)
}
 0x9f8   :  { %3752 = dma.vmem_to_hbm [thread:$0]  %s3750_s6, 32, %s8874_s4, [#allocation3]  }
 0x9f9   :  { %6001 = dma.done.wait [#allocation3], 32  }
 0x9fa   :  { %6002 = vsyncadd [#allocation3], 4294967264 }
 0x9fb   :  { %3756 = vsyncpa [#allocation3], 1 }

</bundles_post_ra>
